<compile_context>
chip_gen: v7x
topology: tpu7x:2x2x1
jax: 0.10.0
libtpu: 0.0.40
codegen_flags: <defaults>
</compile_context>

<pallas_src>
import functools
import math

import jax
import jax.numpy as jnp
from jax.experimental import pallas as pl
from jax.experimental.pallas import tpu as pltpu

BN_EPS = 1e-3                               # nn.BatchNorm2d(eps=0.001)
_BN_SCALE = 1.0 / math.sqrt(1.0 + BN_EPS)   # eval-mode BN with fresh stats -> constant scale


# ----------------------------- fused block kernel ----------------------------

def _fused_block_kernel(*refs, k, Ho, Wo, with_pre):
    """One fused InvertedResidual block (optionally with the 3x3-s2 stem matmul fused in front)
    for one batch element, entirely out of VMEM.

    Input layout: 4 stride-2 parity planes of the block input, flattened to (4*Ho*Wo, Cin);
    plane p = 2*py+px, row y*Wo+x holds the block input at spatial position (2y+py, 2x+px).
    """
    if with_pre:
        (xp_ref, pw0, pb0, ew, eb, dwt, db,
         sw1, sb1, sw2, sb2, prw, prb, o_ref, hp_ref) = refs
    else:
        (xp_ref, ew, eb, dwt, db,
         sw1, sb1, sw2, sb2, prw, prb, o_ref, hp_ref) = refs
        pw0 = pb0 = None

    Cexp = hp_ref.shape[-1]
    pad = (k - 1) // 2
    HWp = Ho * Wo

    # Zero the padded parity-plane scratch: its 1-wide halo supplies the depthwise conv's
    # zero padding (stride 2 + pad<=2 never reaches farther than 1 plane row/col outside).
    hp_ref[...] = jnp.zeros(hp_ref.shape, hp_ref.dtype)

    # ---- (stem matmul) + 1x1 expand + BN + ReLU : one MXU matmul chain per parity plane ----
    for p in range(4):
        a = xp_ref[0, p * HWp:(p + 1) * HWp, :]                         # (Ho*Wo, Cin)
        if with_pre:
            a = jnp.maximum(
                jnp.dot(a, pw0[...], preferred_element_type=jnp.float32) + pb0[...], 0.0)
        h_p = jnp.maximum(
            jnp.dot(a, ew[...], preferred_element_type=jnp.float32) + eb[...], 0.0)
        # single store per plane into the zero-padded scratch
        hp_ref[p, 1:1 + Ho, 1:1 + Wo, :] = h_p.reshape(Ho, Wo, Cexp)

    # ---- depthwise k x k stride-2 conv + BN + ReLU (static tap unroll over parity planes) ----
    acc = jnp.zeros((Ho, Wo, Cexp), jnp.float32)
    for di in range(k):
        for dj in range(k):
            ry, rx = di - pad, dj - pad
            py, px = ry % 2, rx % 2                                     # which parity plane
            qy, qx = (ry - py) // 2, (rx - px) // 2                     # shift inside the plane
            tap = hp_ref[2 * py + px,
                         1 + qy:1 + qy + Ho,
                         1 + qx:1 + qx + Wo, :]                         # (Ho, Wo, Cexp)
            w = dwt[di * k + dj:di * k + dj + 1, :].reshape(1, 1, Cexp)
            acc = acc + tap * w
    h = jnp.maximum(acc + db[...].reshape(1, 1, Cexp), 0.0).reshape(HWp, Cexp)

    # ---- SqueezeExcitation: avgpool -> fc -> ReLU -> fc -> hardsigmoid -> rescale ----
    pooled = jnp.mean(h, axis=0, keepdims=True)                         # (1, Cexp)
    s = jnp.maximum(
        jnp.dot(pooled, sw1[...], preferred_element_type=jnp.float32) + sb1[...], 0.0)
    s = jnp.dot(s, sw2[...], preferred_element_type=jnp.float32) + sb2[...]
    scale = jnp.clip(s + 3.0, 0.0, 6.0) * (1.0 / 6.0)                   # hardsigmoid
    h = h * scale

    # ---- 1x1 project + BN (no activation; stride 2 -> no residual connection) ----
    out = jnp.dot(h, prw[...], preferred_element_type=jnp.float32) + prb[...]
    o_ref[0] = out.astype(o_ref.dtype)


def _fused_block(xp, weights, *, k, Ho, Wo, Cexp, Cout, with_pre):
    """xp: (N, 4*Ho*Wo, Cin) parity-plane input. Returns (N, Ho*Wo, Cout)."""
    N, R, Cin = xp.shape
    kern = functools.partial(_fused_block_kernel, k=k, Ho=Ho, Wo=Wo, with_pre=with_pre)
    in_specs = [pl.BlockSpec((1, R, Cin), lambda n: (n, 0, 0))]
    # all weights / biases are 2-D, kept whole in VMEM (constant index map -> no re-fetch)
    in_specs += [pl.BlockSpec(w.shape, lambda n: (0, 0)) for w in weights]
    return pl.pallas_call(
        kern,
        out_shape=jax.ShapeDtypeStruct((N, Ho * Wo, Cout), jnp.float32),
        grid=(N,),
        in_specs=in_specs,
        out_specs=pl.BlockSpec((1, Ho * Wo, Cout), lambda n: (n, 0, 0)),
        scratch_shapes=[
            pltpu.VMEM((4, Ho + 2, Wo + 2, Cexp), jnp.float32),  # zero-padded parity planes
        ],
        compiler_params=pltpu.CompilerParams(dimension_semantics=("parallel",)),
    )(xp, *weights)


# ------------------------------- plain-JAX glue -------------------------------

def _parity_split(x):
    """(N, H, W, C) -> (N, 4*(H//2)*(W//2), C); plane p=2*py+px, row y*Wo+x = x[:, 2y+py, 2x+px, :]."""
    N, H, W, C = x.shape
    Ho, Wo = H // 2, W // 2
    x = x.reshape(N, Ho, 2, Wo, 2, C)
    x = jnp.transpose(x, (0, 2, 4, 1, 3, 5))          # (N, py, px, y, x, C)
    return x.reshape(N, 4 * Ho * Wo, C)


def _stem_patches(x_nhwc):
    """im2col taps of the 3x3/s2/p1 stem conv: (N,H,W,3) -> (N,H//2,W//2,32) (K padded 27->32)."""
    N, H, W, _ = x_nhwc.shape
    Ho, Wo = H // 2, W // 2
    xp = jnp.pad(x_nhwc, ((0, 0), (1, 1), (1, 1), (0, 0)))
    taps = []
    for i in range(3):
        for j in range(3):
            taps.append(xp[:, i:i + 2 * Ho:2, j:j + 2 * Wo:2, :])
    p = jnp.concatenate(taps, axis=-1)                # (N, Ho, Wo, 27), tap-major (h, w, cin)
    return jnp.pad(p, ((0, 0), (0, 0), (0, 0), (0, 5)))


@jax.jit
def blocks_forward(x_nchw, fp):
    N, _, H, W = x_nchw.shape
    x = jnp.transpose(x_nchw, (0, 2, 3, 1)).astype(jnp.float32)     # NCHW -> NHWC

    # ---- stage 1: stem (3x3 s2) fused with inverted-residual block 1 ----
    Ho1, Wo1 = H // 4, W // 4
    sp = _parity_split(_stem_patches(x))                            # (N, 4*Ho1*Wo1, 32)
    y1 = _fused_block(
        sp,
        [fp["stem_w"], fp["stem_b"],
         fp["b1_exp_w"], fp["b1_exp_b"], fp["b1_dw_w"], fp["b1_dw_b"],
         fp["b1_se_w1"], fp["b1_se_b1"], fp["b1_se_w2"], fp["b1_se_b2"],
         fp["b1_proj_w"], fp["b1_proj_b"]],
        k=5, Ho=Ho1, Wo=Wo1, Cexp=128, Cout=64, with_pre=True)      # (N, Ho1*Wo1, 64)

    # ---- stage 2: inverted-residual block 2 ----
    Ho2, Wo2 = Ho1 // 2, Wo1 // 2
    xp2 = _parity_split(y1.reshape(N, Ho1, Wo1, 64))                # (N, 4*Ho2*Wo2, 64)
    y2 = _fused_block(
        xp2,
        [fp["b2_exp_w"], fp["b2_exp_b"], fp["b2_dw_w"], fp["b2_dw_b"],
         fp["b2_se_w1"], fp["b2_se_b1"], fp["b2_se_w2"], fp["b2_se_b2"],
         fp["b2_proj_w"], fp["b2_proj_b"]],
        k=3, Ho=Ho2, Wo=Wo2, Cexp=256, Cout=128, with_pre=False)    # (N, Ho2*Wo2, 128)

    return jnp.transpose(y2.reshape(N, Ho2, Wo2, 128), (0, 3, 1, 2))  # NHWC -> NCHW


# ------------------------ deterministic init + BN fold ------------------------

def _kaiming_out(key, shape, fan_out):
    return jax.random.normal(key, shape, jnp.float32) * math.sqrt(2.0 / fan_out)


def init_params(key):
    ks = jax.random.split(key, 11)
    p = {}
    # stem: 3x3 conv 3->64 (HWIO), kaiming_normal_ fan_out = 64*3*3
    p["stem_w"] = _kaiming_out(ks[0], (3, 3, 3, 64), 64 * 9)
    # block 1: 64 -> 128 (exp) -> dw 5x5 -> SE(32) -> 64
    p["b1_exp_w"] = _kaiming_out(ks[1], (64, 128), 128)
    p["b1_dw_w"] = _kaiming_out(ks[2], (25, 128), 128 * 25)   # torch fan_out = out_ch * k * k
    p["b1_se_w1"] = _kaiming_out(ks[3], (128, 32), 32)
    p["b1_se_b1"] = jnp.zeros((32,), jnp.float32)
    p["b1_se_w2"] = _kaiming_out(ks[4], (32, 128), 128)
    p["b1_se_b2"] = jnp.zeros((128,), jnp.float32)
    p["b1_proj_w"] = _kaiming_out(ks[5], (128, 64), 64)
    # block 2: 64 -> 256 (exp) -> dw 3x3 -> SE(64) -> 128
    p["b2_exp_w"] = _kaiming_out(ks[6], (64, 256), 256)
    p["b2_dw_w"] = _kaiming_out(ks[7], (9, 256), 256 * 9)
    p["b2_se_w1"] = _kaiming_out(ks[8], (256, 64), 64)
    p["b2_se_b1"] = jnp.zeros((64,), jnp.float32)
    p["b2_se_w2"] = _kaiming_out(ks[9], (64, 256), 256)
    p["b2_se_b2"] = jnp.zeros((256,), jnp.float32)
    p["b2_proj_w"] = _kaiming_out(ks[10], (256, 128), 128)
    return p


def fold_bn_params(p):
    """Fold eval-mode BN (gamma=1, beta=0, mean=0, var=1, eps=1e-3) into conv weights and
    reshape everything into the layouts the fused kernels expect. Done ONCE, outside jit."""
    z = lambda c: jnp.zeros((1, c), jnp.float32)
    f = {}
    # stem HWIO (3,3,3,64) -> (27,64) folded, contraction zero-padded 27 -> 32
    f["stem_w"] = jnp.pad(p["stem_w"].reshape(27, 64) * _BN_SCALE, ((0, 5), (0, 0)))
    f["stem_b"] = z(64)
    for b, (cexp, csq, cout) in (("b1", (128, 32, 64)), ("b2", (256, 64, 128))):
        f[f"{b}_exp_w"] = p[f"{b}_exp_w"] * _BN_SCALE
        f[f"{b}_exp_b"] = z(cexp)
        f[f"{b}_dw_w"] = p[f"{b}_dw_w"] * _BN_SCALE
        f[f"{b}_dw_b"] = z(cexp)
        f[f"{b}_se_w1"] = p[f"{b}_se_w1"]
        f[f"{b}_se_b1"] = p[f"{b}_se_b1"].reshape(1, csq)
        f[f"{b}_se_w2"] = p[f"{b}_se_w2"]
        f[f"{b}_se_b2"] = p[f"{b}_se_b2"].reshape(1, cexp)
        f[f"{b}_proj_w"] = p[f"{b}_proj_w"] * _BN_SCALE
        f[f"{b}_proj_b"] = z(cout)
    return f


if __name__ == "__main__":
    key = jax.random.PRNGKey(0)
    pkey, xkey = jax.random.split(key)
    params = init_params(pkey)
    fparams = fold_bn_params(params)                            # BN folded once, outside jit
    x = jax.random.normal(xkey, (2, 3, 32, 32), jnp.float32)    # NCHW, like the PyTorch module
    y = blocks_forward(x, fparams)
    jax.block_until_ready(y)
    assert y.shape == (2, 128, 4, 4), y.shape                   # 32 / 2 / 2 / 2 = 4 spatial
    assert y.dtype == jnp.float32
    assert bool(jnp.all(jnp.isfinite(y)))
    print("KERNEL_OK")
</pallas_src>

<mosaic_0001>
module attributes {stable_mosaic.version = 11 : i64} {
  func.func @_fused_block_kernel(%arg0: i32, %arg1: memref<1x256x32xf32, #tpu.memory_space<vmem>>, %arg2: memref<32x64xf32, #tpu.memory_space<vmem>>, %arg3: memref<1x64xf32, #tpu.memory_space<vmem>>, %arg4: memref<64x128xf32, #tpu.memory_space<vmem>>, %arg5: memref<1x128xf32, #tpu.memory_space<vmem>>, %arg6: memref<25x128xf32, #tpu.memory_space<vmem>>, %arg7: memref<1x128xf32, #tpu.memory_space<vmem>>, %arg8: memref<128x32xf32, #tpu.memory_space<vmem>>, %arg9: memref<1x32xf32, #tpu.memory_space<vmem>>, %arg10: memref<32x128xf32, #tpu.memory_space<vmem>>, %arg11: memref<1x128xf32, #tpu.memory_space<vmem>>, %arg12: memref<128x64xf32, #tpu.memory_space<vmem>>, %arg13: memref<1x64xf32, #tpu.memory_space<vmem>>, %arg14: memref<1x64x64xf32, #tpu.memory_space<vmem>>, %arg15: memref<4x10x10x128xf32, #tpu.memory_space<vmem>>) attributes {dimension_semantics = [#tpu.dimension_semantics<parallel>], iteration_bounds = array<i64: 2>, scalar_prefetch = 0 : i64, scratch_operands = 1 : i64, tpu.core_type = #tpu.core_type<tc>, window_params = [{transform_indices = @transform_0, window_bounds = array<i64: 1, 256, 32>}, {pipeline_mode = #tpu.pipeline_mode<synchronous>, transform_indices = @transform_1, window_bounds = array<i64: 32, 64>}, {pipeline_mode = #tpu.pipeline_mode<synchronous>, transform_indices = @transform_2, window_bounds = array<i64: 1, 64>}, {pipeline_mode = #tpu.pipeline_mode<synchronous>, transform_indices = @transform_3, window_bounds = array<i64: 64, 128>}, {pipeline_mode = #tpu.pipeline_mode<synchronous>, transform_indices = @transform_4, window_bounds = array<i64: 1, 128>}, {pipeline_mode = #tpu.pipeline_mode<synchronous>, transform_indices = @transform_5, window_bounds = array<i64: 25, 128>}, {pipeline_mode = #tpu.pipeline_mode<synchronous>, transform_indices = @transform_6, window_bounds = array<i64: 1, 128>}, {pipeline_mode = #tpu.pipeline_mode<synchronous>, transform_indices = @transform_7, window_bounds = array<i64: 128, 32>}, {pipeline_mode = #tpu.pipeline_mode<synchronous>, transform_indices = @transform_8, window_bounds = array<i64: 1, 32>}, {pipeline_mode = #tpu.pipeline_mode<synchronous>, transform_indices = @transform_9, window_bounds = array<i64: 32, 128>}, {pipeline_mode = #tpu.pipeline_mode<synchronous>, transform_indices = @transform_10, window_bounds = array<i64: 1, 128>}, {pipeline_mode = #tpu.pipeline_mode<synchronous>, transform_indices = @transform_11, window_bounds = array<i64: 128, 64>}, {pipeline_mode = #tpu.pipeline_mode<synchronous>, transform_indices = @transform_12, window_bounds = array<i64: 1, 64>}, {transform_indices = @transform_13, window_bounds = array<i64: 1, 64, 64>}]} {
    %cst = arith.constant 0.000000e+00 : f32
    %0 = vector.broadcast %cst : f32 to vector<4x10x10x128xf32>
    %c0 = arith.constant 0 : index
    %c0_0 = arith.constant 0 : index
    %c0_1 = arith.constant 0 : index
    %c0_2 = arith.constant 0 : index
    %1 = vector.load %arg15[%c0, %c0_0, %c0_1, %c0_2] : memref<4x10x10x128xf32, #tpu.memory_space<vmem>>, vector<4x10x10x128xf32>
    tpu.vector_store %arg15[%c0, %c0_0, %c0_1, %c0_2], %0 {strides = array<i32>} : memref<4x10x10x128xf32, #tpu.memory_space<vmem>>, vector<4x10x10x128xf32>,
    %c0_3 = arith.constant 0 : index
    %c0_4 = arith.constant 0 : index
    %c0_5 = arith.constant 0 : index
    %2 = vector.load %arg1[%c0_3, %c0_4, %c0_5] : memref<1x256x32xf32, #tpu.memory_space<vmem>>, vector<1x64x32xf32>
    %3 = vector.shape_cast %2 : vector<1x64x32xf32> to vector<64x32xf32>
    %c0_6 = arith.constant 0 : index
    %c0_7 = arith.constant 0 : index
    %4 = vector.load %arg2[%c0_6, %c0_7] : memref<32x64xf32, #tpu.memory_space<vmem>>, vector<32x64xf32>
    %cst_8 = arith.constant dense<0.000000e+00> : vector<64x64xf32>
    %5 = tpu.matmul %3, %4, %cst_8 {dimension_numbers = #tpu.dot_dimension_numbers<[1], [0], [0], [1], [0, 0, 1, 1], [], []>} : vector<64x32xf32>, vector<32x64xf32>, vector<64x64xf32> -> vector<64x64xf32>
    %c0_9 = arith.constant 0 : index
    %c0_10 = arith.constant 0 : index
    %6 = vector.load %arg3[%c0_9, %c0_10] : memref<1x64xf32, #tpu.memory_space<vmem>>, vector<1x64xf32>
    %7 = vector.broadcast %6 : vector<1x64xf32> to vector<64x64xf32>
    %8 = arith.addf %5, %7 : vector<64x64xf32>
    %cst_11 = arith.constant 0.000000e+00 : f32
    %9 = vector.broadcast %cst_11 : f32 to vector<64x64xf32>
    %10 = arith.maximumf %8, %9 : vector<64x64xf32>
    %c0_12 = arith.constant 0 : index
    %c0_13 = arith.constant 0 : index
    %11 = vector.load %arg4[%c0_12, %c0_13] : memref<64x128xf32, #tpu.memory_space<vmem>>, vector<64x128xf32>
    %cst_14 = arith.constant dense<0.000000e+00> : vector<64x128xf32>
    %12 = tpu.matmul %10, %11, %cst_14 {dimension_numbers = #tpu.dot_dimension_numbers<[1], [0], [0], [1], [0, 0, 1, 1], [], []>} : vector<64x64xf32>, vector<64x128xf32>, vector<64x128xf32> -> vector<64x128xf32>
    %c0_15 = arith.constant 0 : index
    %c0_16 = arith.constant 0 : index
    %13 = vector.load %arg5[%c0_15, %c0_16] : memref<1x128xf32, #tpu.memory_space<vmem>>, vector<1x128xf32>
    %14 = vector.broadcast %13 : vector<1x128xf32> to vector<64x128xf32>
    %15 = arith.addf %12, %14 : vector<64x128xf32>
    %cst_17 = arith.constant 0.000000e+00 : f32
    %16 = vector.broadcast %cst_17 : f32 to vector<64x128xf32>
    %17 = arith.maximumf %15, %16 : vector<64x128xf32>
    %18 = vector.shape_cast %17 : vector<64x128xf32> to vector<8x8x128xf32>
    %c0_18 = arith.constant 0 : index
    %c1 = arith.constant 1 : index
    %c1_19 = arith.constant 1 : index
    %c0_20 = arith.constant 0 : index
    %19 = vector.load %arg15[%c0_18, %c1, %c1_19, %c0_20] : memref<4x10x10x128xf32, #tpu.memory_space<vmem>>, vector<1x8x8x128xf32>
    %20 = vector.shape_cast %19 : vector<1x8x8x128xf32> to vector<8x8x128xf32>
    %21 = vector.shape_cast %18 : vector<8x8x128xf32> to vector<1x8x8x128xf32>
    tpu.vector_store %arg15[%c0_18, %c1, %c1_19, %c0_20], %21 {strides = array<i32>} : memref<4x10x10x128xf32, #tpu.memory_space<vmem>>, vector<1x8x8x128xf32>,
    %c0_21 = arith.constant 0 : index
    %c64 = arith.constant 64 : index
    %c0_22 = arith.constant 0 : index
    %22 = vector.load %arg1[%c0_21, %c64, %c0_22] : memref<1x256x32xf32, #tpu.memory_space<vmem>>, vector<1x64x32xf32>
    %23 = vector.shape_cast %22 : vector<1x64x32xf32> to vector<64x32xf32>
    %c0_23 = arith.constant 0 : index
    %c0_24 = arith.constant 0 : index
    %24 = vector.load %arg2[%c0_23, %c0_24] : memref<32x64xf32, #tpu.memory_space<vmem>>, vector<32x64xf32>
    %cst_25 = arith.constant dense<0.000000e+00> : vector<64x64xf32>
    %25 = tpu.matmul %23, %24, %cst_25 {dimension_numbers = #tpu.dot_dimension_numbers<[1], [0], [0], [1], [0, 0, 1, 1], [], []>} : vector<64x32xf32>, vector<32x64xf32>, vector<64x64xf32> -> vector<64x64xf32>
    %c0_26 = arith.constant 0 : index
    %c0_27 = arith.constant 0 : index
    %26 = vector.load %arg3[%c0_26, %c0_27] : memref<1x64xf32, #tpu.memory_space<vmem>>, vector<1x64xf32>
    %27 = vector.broadcast %26 : vector<1x64xf32> to vector<64x64xf32>
    %28 = arith.addf %25, %27 : vector<64x64xf32>
    %cst_28 = arith.constant 0.000000e+00 : f32
    %29 = vector.broadcast %cst_28 : f32 to vector<64x64xf32>
    %30 = arith.maximumf %28, %29 : vector<64x64xf32>
    %c0_29 = arith.constant 0 : index
    %c0_30 = arith.constant 0 : index
    %31 = vector.load %arg4[%c0_29, %c0_30] : memref<64x128xf32, #tpu.memory_space<vmem>>, vector<64x128xf32>
    %cst_31 = arith.constant dense<0.000000e+00> : vector<64x128xf32>
    %32 = tpu.matmul %30, %31, %cst_31 {dimension_numbers = #tpu.dot_dimension_numbers<[1], [0], [0], [1], [0, 0, 1, 1], [], []>} : vector<64x64xf32>, vector<64x128xf32>, vector<64x128xf32> -> vector<64x128xf32>
    %c0_32 = arith.constant 0 : index
    %c0_33 = arith.constant 0 : index
    %33 = vector.load %arg5[%c0_32, %c0_33] : memref<1x128xf32, #tpu.memory_space<vmem>>, vector<1x128xf32>
    %34 = vector.broadcast %33 : vector<1x128xf32> to vector<64x128xf32>
    %35 = arith.addf %32, %34 : vector<64x128xf32>
    %cst_34 = arith.constant 0.000000e+00 : f32
    %36 = vector.broadcast %cst_34 : f32 to vector<64x128xf32>
    %37 = arith.maximumf %35, %36 : vector<64x128xf32>
    %38 = vector.shape_cast %37 : vector<64x128xf32> to vector<8x8x128xf32>
    %c1_35 = arith.constant 1 : index
    %c1_36 = arith.constant 1 : index
    %c1_37 = arith.constant 1 : index
    %c0_38 = arith.constant 0 : index
    %39 = vector.load %arg15[%c1_35, %c1_36, %c1_37, %c0_38] : memref<4x10x10x128xf32, #tpu.memory_space<vmem>>, vector<1x8x8x128xf32>
    %40 = vector.shape_cast %39 : vector<1x8x8x128xf32> to vector<8x8x128xf32>
    %41 = vector.shape_cast %38 : vector<8x8x128xf32> to vector<1x8x8x128xf32>
    tpu.vector_store %arg15[%c1_35, %c1_36, %c1_37, %c0_38], %41 {strides = array<i32>} : memref<4x10x10x128xf32, #tpu.memory_space<vmem>>, vector<1x8x8x128xf32>,
    %c0_39 = arith.constant 0 : index
    %c128 = arith.constant 128 : index
    %c0_40 = arith.constant 0 : index
    %42 = vector.load %arg1[%c0_39, %c128, %c0_40] : memref<1x256x32xf32, #tpu.memory_space<vmem>>, vector<1x64x32xf32>
    %43 = vector.shape_cast %42 : vector<1x64x32xf32> to vector<64x32xf32>
    %c0_41 = arith.constant 0 : index
    %c0_42 = arith.constant 0 : index
    %44 = vector.load %arg2[%c0_41, %c0_42] : memref<32x64xf32, #tpu.memory_space<vmem>>, vector<32x64xf32>
    %cst_43 = arith.constant dense<0.000000e+00> : vector<64x64xf32>
    %45 = tpu.matmul %43, %44, %cst_43 {dimension_numbers = #tpu.dot_dimension_numbers<[1], [0], [0], [1], [0, 0, 1, 1], [], []>} : vector<64x32xf32>, vector<32x64xf32>, vector<64x64xf32> -> vector<64x64xf32>
    %c0_44 = arith.constant 0 : index
    %c0_45 = arith.constant 0 : index
    %46 = vector.load %arg3[%c0_44, %c0_45] : memref<1x64xf32, #tpu.memory_space<vmem>>, vector<1x64xf32>
    %47 = vector.broadcast %46 : vector<1x64xf32> to vector<64x64xf32>
    %48 = arith.addf %45, %47 : vector<64x64xf32>
    %cst_46 = arith.constant 0.000000e+00 : f32
    %49 = vector.broadcast %cst_46 : f32 to vector<64x64xf32>
    %50 = arith.maximumf %48, %49 : vector<64x64xf32>
    %c0_47 = arith.constant 0 : index
    %c0_48 = arith.constant 0 : index
    %51 = vector.load %arg4[%c0_47, %c0_48] : memref<64x128xf32, #tpu.memory_space<vmem>>, vector<64x128xf32>
    %cst_49 = arith.constant dense<0.000000e+00> : vector<64x128xf32>
    %52 = tpu.matmul %50, %51, %cst_49 {dimension_numbers = #tpu.dot_dimension_numbers<[1], [0], [0], [1], [0, 0, 1, 1], [], []>} : vector<64x64xf32>, vector<64x128xf32>, vector<64x128xf32> -> vector<64x128xf32>
    %c0_50 = arith.constant 0 : index
    %c0_51 = arith.constant 0 : index
    %53 = vector.load %arg5[%c0_50, %c0_51] : memref<1x128xf32, #tpu.memory_space<vmem>>, vector<1x128xf32>
    %54 = vector.broadcast %53 : vector<1x128xf32> to vector<64x128xf32>
    %55 = arith.addf %52, %54 : vector<64x128xf32>
    %cst_52 = arith.constant 0.000000e+00 : f32
    %56 = vector.broadcast %cst_52 : f32 to vector<64x128xf32>
    %57 = arith.maximumf %55, %56 : vector<64x128xf32>
    %58 = vector.shape_cast %57 : vector<64x128xf32> to vector<8x8x128xf32>
    %c2 = arith.constant 2 : index
    %c1_53 = arith.constant 1 : index
    %c1_54 = arith.constant 1 : index
    %c0_55 = arith.constant 0 : index
    %59 = vector.load %arg15[%c2, %c1_53, %c1_54, %c0_55] : memref<4x10x10x128xf32, #tpu.memory_space<vmem>>, vector<1x8x8x128xf32>
    %60 = vector.shape_cast %59 : vector<1x8x8x128xf32> to vector<8x8x128xf32>
    %61 = vector.shape_cast %58 : vector<8x8x128xf32> to vector<1x8x8x128xf32>
    tpu.vector_store %arg15[%c2, %c1_53, %c1_54, %c0_55], %61 {strides = array<i32>} : memref<4x10x10x128xf32, #tpu.memory_space<vmem>>, vector<1x8x8x128xf32>,
    %c0_56 = arith.constant 0 : index
    %c192 = arith.constant 192 : index
    %c0_57 = arith.constant 0 : index
    %62 = vector.load %arg1[%c0_56, %c192, %c0_57] : memref<1x256x32xf32, #tpu.memory_space<vmem>>, vector<1x64x32xf32>
    %63 = vector.shape_cast %62 : vector<1x64x32xf32> to vector<64x32xf32>
    %c0_58 = arith.constant 0 : index
    %c0_59 = arith.constant 0 : index
    %64 = vector.load %arg2[%c0_58, %c0_59] : memref<32x64xf32, #tpu.memory_space<vmem>>, vector<32x64xf32>
    %cst_60 = arith.constant dense<0.000000e+00> : vector<64x64xf32>
    %65 = tpu.matmul %63, %64, %cst_60 {dimension_numbers = #tpu.dot_dimension_numbers<[1], [0], [0], [1], [0, 0, 1, 1], [], []>} : vector<64x32xf32>, vector<32x64xf32>, vector<64x64xf32> -> vector<64x64xf32>
    %c0_61 = arith.constant 0 : index
    %c0_62 = arith.constant 0 : index
    %66 = vector.load %arg3[%c0_61, %c0_62] : memref<1x64xf32, #tpu.memory_space<vmem>>, vector<1x64xf32>
    %67 = vector.broadcast %66 : vector<1x64xf32> to vector<64x64xf32>
    %68 = arith.addf %65, %67 : vector<64x64xf32>
    %cst_63 = arith.constant 0.000000e+00 : f32
    %69 = vector.broadcast %cst_63 : f32 to vector<64x64xf32>
    %70 = arith.maximumf %68, %69 : vector<64x64xf32>
    %c0_64 = arith.constant 0 : index
    %c0_65 = arith.constant 0 : index
    %71 = vector.load %arg4[%c0_64, %c0_65] : memref<64x128xf32, #tpu.memory_space<vmem>>, vector<64x128xf32>
    %cst_66 = arith.constant dense<0.000000e+00> : vector<64x128xf32>
    %72 = tpu.matmul %70, %71, %cst_66 {dimension_numbers = #tpu.dot_dimension_numbers<[1], [0], [0], [1], [0, 0, 1, 1], [], []>} : vector<64x64xf32>, vector<64x128xf32>, vector<64x128xf32> -> vector<64x128xf32>
    %c0_67 = arith.constant 0 : index
    %c0_68 = arith.constant 0 : index
    %73 = vector.load %arg5[%c0_67, %c0_68] : memref<1x128xf32, #tpu.memory_space<vmem>>, vector<1x128xf32>
    %74 = vector.broadcast %73 : vector<1x128xf32> to vector<64x128xf32>
    %75 = arith.addf %72, %74 : vector<64x128xf32>
    %cst_69 = arith.constant 0.000000e+00 : f32
    %76 = vector.broadcast %cst_69 : f32 to vector<64x128xf32>
    %77 = arith.maximumf %75, %76 : vector<64x128xf32>
    %78 = vector.shape_cast %77 : vector<64x128xf32> to vector<8x8x128xf32>
    %c3 = arith.constant 3 : index
    %c1_70 = arith.constant 1 : index
    %c1_71 = arith.constant 1 : index
    %c0_72 = arith.constant 0 : index
    %79 = vector.load %arg15[%c3, %c1_70, %c1_71, %c0_72] : memref<4x10x10x128xf32, #tpu.memory_space<vmem>>, vector<1x8x8x128xf32>
    %80 = vector.shape_cast %79 : vector<1x8x8x128xf32> to vector<8x8x128xf32>
    %81 = vector.shape_cast %78 : vector<8x8x128xf32> to vector<1x8x8x128xf32>
    tpu.vector_store %arg15[%c3, %c1_70, %c1_71, %c0_72], %81 {strides = array<i32>} : memref<4x10x10x128xf32, #tpu.memory_space<vmem>>, vector<1x8x8x128xf32>,
    %cst_73 = arith.constant 0.000000e+00 : f32
    %82 = vector.broadcast %cst_73 : f32 to vector<8x8x128xf32>
    %c0_74 = arith.constant 0 : index
    %c0_75 = arith.constant 0 : index
    %c0_76 = arith.constant 0 : index
    %c0_77 = arith.constant 0 : index
    %83 = vector.load %arg15[%c0_74, %c0_75, %c0_76, %c0_77] : memref<4x10x10x128xf32, #tpu.memory_space<vmem>>, vector<1x8x8x128xf32>
    %84 = vector.shape_cast %83 : vector<1x8x8x128xf32> to vector<8x8x128xf32>
    %c0_78 = arith.constant 0 : index
    %c0_79 = arith.constant 0 : index
    %85 = vector.load %arg6[%c0_78, %c0_79] : memref<25x128xf32, #tpu.memory_space<vmem>>, vector<1x128xf32>
    %86 = vector.shape_cast %85 : vector<1x128xf32> to vector<1x1x128xf32>
    %87 = vector.broadcast %86 : vector<1x1x128xf32> to vector<8x8x128xf32>
    %88 = arith.mulf %84, %87 : vector<8x8x128xf32>
    %89 = arith.addf %82, %88 : vector<8x8x128xf32>
    %c1_80 = arith.constant 1 : index
    %c0_81 = arith.constant 0 : index
    %c0_82 = arith.constant 0 : index
    %c0_83 = arith.constant 0 : index
    %90 = vector.load %arg15[%c1_80, %c0_81, %c0_82, %c0_83] : memref<4x10x10x128xf32, #tpu.memory_space<vmem>>, vector<1x8x8x128xf32>
    %91 = vector.shape_cast %90 : vector<1x8x8x128xf32> to vector<8x8x128xf32>
    %c1_84 = arith.constant 1 : index
    %c0_85 = arith.constant 0 : index
    %92 = vector.load %arg6[%c1_84, %c0_85] : memref<25x128xf32, #tpu.memory_space<vmem>>, vector<1x128xf32>
    %93 = vector.shape_cast %92 : vector<1x128xf32> to vector<1x1x128xf32>
    %94 = vector.broadcast %93 : vector<1x1x128xf32> to vector<8x8x128xf32>
    %95 = arith.mulf %91, %94 : vector<8x8x128xf32>
    %96 = arith.addf %89, %95 : vector<8x8x128xf32>
    %c0_86 = arith.constant 0 : index
    %c0_87 = arith.constant 0 : index
    %c1_88 = arith.constant 1 : index
    %c0_89 = arith.constant 0 : index
    %97 = vector.load %arg15[%c0_86, %c0_87, %c1_88, %c0_89] : memref<4x10x10x128xf32, #tpu.memory_space<vmem>>, vector<1x8x8x128xf32>
    %98 = vector.shape_cast %97 : vector<1x8x8x128xf32> to vector<8x8x128xf32>
    %c2_90 = arith.constant 2 : index
    %c0_91 = arith.constant 0 : index
    %99 = vector.load %arg6[%c2_90, %c0_91] : memref<25x128xf32, #tpu.memory_space<vmem>>, vector<1x128xf32>
    %100 = vector.shape_cast %99 : vector<1x128xf32> to vector<1x1x128xf32>
    %101 = vector.broadcast %100 : vector<1x1x128xf32> to vector<8x8x128xf32>
    %102 = arith.mulf %98, %101 : vector<8x8x128xf32>
    %103 = arith.addf %96, %102 : vector<8x8x128xf32>
    %c1_92 = arith.constant 1 : index
    %c0_93 = arith.constant 0 : index
    %c1_94 = arith.constant 1 : index
    %c0_95 = arith.constant 0 : index
    %104 = vector.load %arg15[%c1_92, %c0_93, %c1_94, %c0_95] : memref<4x10x10x128xf32, #tpu.memory_space<vmem>>, vector<1x8x8x128xf32>
    %105 = vector.shape_cast %104 : vector<1x8x8x128xf32> to vector<8x8x128xf32>
    %c3_96 = arith.constant 3 : index
    %c0_97 = arith.constant 0 : index
    %106 = vector.load %arg6[%c3_96, %c0_97] : memref<25x128xf32, #tpu.memory_space<vmem>>, vector<1x128xf32>
    %107 = vector.shape_cast %106 : vector<1x128xf32> to vector<1x1x128xf32>
    %108 = vector.broadcast %107 : vector<1x1x128xf32> to vector<8x8x128xf32>
    %109 = arith.mulf %105, %108 : vector<8x8x128xf32>
    %110 = arith.addf %103, %109 : vector<8x8x128xf32>
    %c0_98 = arith.constant 0 : index
    %c0_99 = arith.constant 0 : index
    %c2_100 = arith.constant 2 : index
    %c0_101 = arith.constant 0 : index
    %111 = vector.load %arg15[%c0_98, %c0_99, %c2_100, %c0_101] : memref<4x10x10x128xf32, #tpu.memory_space<vmem>>, vector<1x8x8x128xf32>
    %112 = vector.shape_cast %111 : vector<1x8x8x128xf32> to vector<8x8x128xf32>
    %c4 = arith.constant 4 : index
    %c0_102 = arith.constant 0 : index
    %113 = vector.load %arg6[%c4, %c0_102] : memref<25x128xf32, #tpu.memory_space<vmem>>, vector<1x128xf32>
    %114 = vector.shape_cast %113 : vector<1x128xf32> to vector<1x1x128xf32>
    %115 = vector.broadcast %114 : vector<1x1x128xf32> to vector<8x8x128xf32>
    %116 = arith.mulf %112, %115 : vector<8x8x128xf32>
    %117 = arith.addf %110, %116 : vector<8x8x128xf32>
    %c2_103 = arith.constant 2 : index
    %c0_104 = arith.constant 0 : index
    %c0_105 = arith.constant 0 : index
    %c0_106 = arith.constant 0 : index
    %118 = vector.load %arg15[%c2_103, %c0_104, %c0_105, %c0_106] : memref<4x10x10x128xf32, #tpu.memory_space<vmem>>, vector<1x8x8x128xf32>
    %119 = vector.shape_cast %118 : vector<1x8x8x128xf32> to vector<8x8x128xf32>
    %c5 = arith.constant 5 : index
    %c0_107 = arith.constant 0 : index
    %120 = vector.load %arg6[%c5, %c0_107] : memref<25x128xf32, #tpu.memory_space<vmem>>, vector<1x128xf32>
    %121 = vector.shape_cast %120 : vector<1x128xf32> to vector<1x1x128xf32>
    %122 = vector.broadcast %121 : vector<1x1x128xf32> to vector<8x8x128xf32>
    %123 = arith.mulf %119, %122 : vector<8x8x128xf32>
    %124 = arith.addf %117, %123 : vector<8x8x128xf32>
    %c3_108 = arith.constant 3 : index
    %c0_109 = arith.constant 0 : index
    %c0_110 = arith.constant 0 : index
    %c0_111 = arith.constant 0 : index
    %125 = vector.load %arg15[%c3_108, %c0_109, %c0_110, %c0_111] : memref<4x10x10x128xf32, #tpu.memory_space<vmem>>, vector<1x8x8x128xf32>
    %126 = vector.shape_cast %125 : vector<1x8x8x128xf32> to vector<8x8x128xf32>
    %c6 = arith.constant 6 : index
    %c0_112 = arith.constant 0 : index
    %127 = vector.load %arg6[%c6, %c0_112] : memref<25x128xf32, #tpu.memory_space<vmem>>, vector<1x128xf32>
    %128 = vector.shape_cast %127 : vector<1x128xf32> to vector<1x1x128xf32>
    %129 = vector.broadcast %128 : vector<1x1x128xf32> to vector<8x8x128xf32>
    %130 = arith.mulf %126, %129 : vector<8x8x128xf32>
    %131 = arith.addf %124, %130 : vector<8x8x128xf32>
    %c2_113 = arith.constant 2 : index
    %c0_114 = arith.constant 0 : index
    %c1_115 = arith.constant 1 : index
    %c0_116 = arith.constant 0 : index
    %132 = vector.load %arg15[%c2_113, %c0_114, %c1_115, %c0_116] : memref<4x10x10x128xf32, #tpu.memory_space<vmem>>, vector<1x8x8x128xf32>
    %133 = vector.shape_cast %132 : vector<1x8x8x128xf32> to vector<8x8x128xf32>
    %c7 = arith.constant 7 : index
    %c0_117 = arith.constant 0 : index
    %134 = vector.load %arg6[%c7, %c0_117] : memref<25x128xf32, #tpu.memory_space<vmem>>, vector<1x128xf32>
    %135 = vector.shape_cast %134 : vector<1x128xf32> to vector<1x1x128xf32>
    %136 = vector.broadcast %135 : vector<1x1x128xf32> to vector<8x8x128xf32>
    %137 = arith.mulf %133, %136 : vector<8x8x128xf32>
    %138 = arith.addf %131, %137 : vector<8x8x128xf32>
    %c3_118 = arith.constant 3 : index
    %c0_119 = arith.constant 0 : index
    %c1_120 = arith.constant 1 : index
    %c0_121 = arith.constant 0 : index
    %139 = vector.load %arg15[%c3_118, %c0_119, %c1_120, %c0_121] : memref<4x10x10x128xf32, #tpu.memory_space<vmem>>, vector<1x8x8x128xf32>
    %140 = vector.shape_cast %139 : vector<1x8x8x128xf32> to vector<8x8x128xf32>
    %c8 = arith.constant 8 : index
    %c0_122 = arith.constant 0 : index
    %141 = vector.load %arg6[%c8, %c0_122] : memref<25x128xf32, #tpu.memory_space<vmem>>, vector<1x128xf32>
    %142 = vector.shape_cast %141 : vector<1x128xf32> to vector<1x1x128xf32>
    %143 = vector.broadcast %142 : vector<1x1x128xf32> to vector<8x8x128xf32>
    %144 = arith.mulf %140, %143 : vector<8x8x128xf32>
    %145 = arith.addf %138, %144 : vector<8x8x128xf32>
    %c2_123 = arith.constant 2 : index
    %c0_124 = arith.constant 0 : index
    %c2_125 = arith.constant 2 : index
    %c0_126 = arith.constant 0 : index
    %146 = vector.load %arg15[%c2_123, %c0_124, %c2_125, %c0_126] : memref<4x10x10x128xf32, #tpu.memory_space<vmem>>, vector<1x8x8x128xf32>
    %147 = vector.shape_cast %146 : vector<1x8x8x128xf32> to vector<8x8x128xf32>
    %c9 = arith.constant 9 : index
    %c0_127 = arith.constant 0 : index
    %148 = vector.load %arg6[%c9, %c0_127] : memref<25x128xf32, #tpu.memory_space<vmem>>, vector<1x128xf32>
    %149 = vector.shape_cast %148 : vector<1x128xf32> to vector<1x1x128xf32>
    %150 = vector.broadcast %149 : vector<1x1x128xf32> to vector<8x8x128xf32>
    %151 = arith.mulf %147, %150 : vector<8x8x128xf32>
    %152 = arith.addf %145, %151 : vector<8x8x128xf32>
    %c0_128 = arith.constant 0 : index
    %c1_129 = arith.constant 1 : index
    %c0_130 = arith.constant 0 : index
    %c0_131 = arith.constant 0 : index
    %153 = vector.load %arg15[%c0_128, %c1_129, %c0_130, %c0_131] : memref<4x10x10x128xf32, #tpu.memory_space<vmem>>, vector<1x8x8x128xf32>
    %154 = vector.shape_cast %153 : vector<1x8x8x128xf32> to vector<8x8x128xf32>
    %c10 = arith.constant 10 : index
    %c0_132 = arith.constant 0 : index
    %155 = vector.load %arg6[%c10, %c0_132] : memref<25x128xf32, #tpu.memory_space<vmem>>, vector<1x128xf32>
    %156 = vector.shape_cast %155 : vector<1x128xf32> to vector<1x1x128xf32>
    %157 = vector.broadcast %156 : vector<1x1x128xf32> to vector<8x8x128xf32>
    %158 = arith.mulf %154, %157 : vector<8x8x128xf32>
    %159 = arith.addf %152, %158 : vector<8x8x128xf32>
    %c1_133 = arith.constant 1 : index
    %c1_134 = arith.constant 1 : index
    %c0_135 = arith.constant 0 : index
    %c0_136 = arith.constant 0 : index
    %160 = vector.load %arg15[%c1_133, %c1_134, %c0_135, %c0_136] : memref<4x10x10x128xf32, #tpu.memory_space<vmem>>, vector<1x8x8x128xf32>
    %161 = vector.shape_cast %160 : vector<1x8x8x128xf32> to vector<8x8x128xf32>
    %c11 = arith.constant 11 : index
    %c0_137 = arith.constant 0 : index
    %162 = vector.load %arg6[%c11, %c0_137] : memref<25x128xf32, #tpu.memory_space<vmem>>, vector<1x128xf32>
    %163 = vector.shape_cast %162 : vector<1x128xf32> to vector<1x1x128xf32>
    %164 = vector.broadcast %163 : vector<1x1x128xf32> to vector<8x8x128xf32>
    %165 = arith.mulf %161, %164 : vector<8x8x128xf32>
    %166 = arith.addf %159, %165 : vector<8x8x128xf32>
    %c0_138 = arith.constant 0 : index
    %c1_139 = arith.constant 1 : index
    %c1_140 = arith.constant 1 : index
    %c0_141 = arith.constant 0 : index
    %167 = vector.load %arg15[%c0_138, %c1_139, %c1_140, %c0_141] : memref<4x10x10x128xf32, #tpu.memory_space<vmem>>, vector<1x8x8x128xf32>
    %168 = vector.shape_cast %167 : vector<1x8x8x128xf32> to vector<8x8x128xf32>
    %c12 = arith.constant 12 : index
    %c0_142 = arith.constant 0 : index
    %169 = vector.load %arg6[%c12, %c0_142] : memref<25x128xf32, #tpu.memory_space<vmem>>, vector<1x128xf32>
    %170 = vector.shape_cast %169 : vector<1x128xf32> to vector<1x1x128xf32>
    %171 = vector.broadcast %170 : vector<1x1x128xf32> to vector<8x8x128xf32>
    %172 = arith.mulf %168, %171 : vector<8x8x128xf32>
    %173 = arith.addf %166, %172 : vector<8x8x128xf32>
    %c1_143 = arith.constant 1 : index
    %c1_144 = arith.constant 1 : index
    %c1_145 = arith.constant 1 : index
    %c0_146 = arith.constant 0 : index
    %174 = vector.load %arg15[%c1_143, %c1_144, %c1_145, %c0_146] : memref<4x10x10x128xf32, #tpu.memory_space<vmem>>, vector<1x8x8x128xf32>
    %175 = vector.shape_cast %174 : vector<1x8x8x128xf32> to vector<8x8x128xf32>
    %c13 = arith.constant 13 : index
    %c0_147 = arith.constant 0 : index
    %176 = vector.load %arg6[%c13, %c0_147] : memref<25x128xf32, #tpu.memory_space<vmem>>, vector<1x128xf32>
    %177 = vector.shape_cast %176 : vector<1x128xf32> to vector<1x1x128xf32>
    %178 = vector.broadcast %177 : vector<1x1x128xf32> to vector<8x8x128xf32>
    %179 = arith.mulf %175, %178 : vector<8x8x128xf32>
    %180 = arith.addf %173, %179 : vector<8x8x128xf32>
    %c0_148 = arith.constant 0 : index
    %c1_149 = arith.constant 1 : index
    %c2_150 = arith.constant 2 : index
    %c0_151 = arith.constant 0 : index
    %181 = vector.load %arg15[%c0_148, %c1_149, %c2_150, %c0_151] : memref<4x10x10x128xf32, #tpu.memory_space<vmem>>, vector<1x8x8x128xf32>
    %182 = vector.shape_cast %181 : vector<1x8x8x128xf32> to vector<8x8x128xf32>
    %c14 = arith.constant 14 : index
    %c0_152 = arith.constant 0 : index
    %183 = vector.load %arg6[%c14, %c0_152] : memref<25x128xf32, #tpu.memory_space<vmem>>, vector<1x128xf32>
    %184 = vector.shape_cast %183 : vector<1x128xf32> to vector<1x1x128xf32>
    %185 = vector.broadcast %184 : vector<1x1x128xf32> to vector<8x8x128xf32>
    %186 = arith.mulf %182, %185 : vector<8x8x128xf32>
    %187 = arith.addf %180, %186 : vector<8x8x128xf32>
    %c2_153 = arith.constant 2 : index
    %c1_154 = arith.constant 1 : index
    %c0_155 = arith.constant 0 : index
    %c0_156 = arith.constant 0 : index
    %188 = vector.load %arg15[%c2_153, %c1_154, %c0_155, %c0_156] : memref<4x10x10x128xf32, #tpu.memory_space<vmem>>, vector<1x8x8x128xf32>
    %189 = vector.shape_cast %188 : vector<1x8x8x128xf32> to vector<8x8x128xf32>
    %c15 = arith.constant 15 : index
    %c0_157 = arith.constant 0 : index
    %190 = vector.load %arg6[%c15, %c0_157] : memref<25x128xf32, #tpu.memory_space<vmem>>, vector<1x128xf32>
    %191 = vector.shape_cast %190 : vector<1x128xf32> to vector<1x1x128xf32>
    %192 = vector.broadcast %191 : vector<1x1x128xf32> to vector<8x8x128xf32>
    %193 = arith.mulf %189, %192 : vector<8x8x128xf32>
    %194 = arith.addf %187, %193 : vector<8x8x128xf32>
    %c3_158 = arith.constant 3 : index
    %c1_159 = arith.constant 1 : index
    %c0_160 = arith.constant 0 : index
    %c0_161 = arith.constant 0 : index
    %195 = vector.load %arg15[%c3_158, %c1_159, %c0_160, %c0_161] : memref<4x10x10x128xf32, #tpu.memory_space<vmem>>, vector<1x8x8x128xf32>
    %196 = vector.shape_cast %195 : vector<1x8x8x128xf32> to vector<8x8x128xf32>
    %c16 = arith.constant 16 : index
    %c0_162 = arith.constant 0 : index
    %197 = vector.load %arg6[%c16, %c0_162] : memref<25x128xf32, #tpu.memory_space<vmem>>, vector<1x128xf32>
    %198 = vector.shape_cast %197 : vector<1x128xf32> to vector<1x1x128xf32>
    %199 = vector.broadcast %198 : vector<1x1x128xf32> to vector<8x8x128xf32>
    %200 = arith.mulf %196, %199 : vector<8x8x128xf32>
    %201 = arith.addf %194, %200 : vector<8x8x128xf32>
    %c2_163 = arith.constant 2 : index
    %c1_164 = arith.constant 1 : index
    %c1_165 = arith.constant 1 : index
    %c0_166 = arith.constant 0 : index
    %202 = vector.load %arg15[%c2_163, %c1_164, %c1_165, %c0_166] : memref<4x10x10x128xf32, #tpu.memory_space<vmem>>, vector<1x8x8x128xf32>
    %203 = vector.shape_cast %202 : vector<1x8x8x128xf32> to vector<8x8x128xf32>
    %c17 = arith.constant 17 : index
    %c0_167 = arith.constant 0 : index
    %204 = vector.load %arg6[%c17, %c0_167] : memref<25x128xf32, #tpu.memory_space<vmem>>, vector<1x128xf32>
    %205 = vector.shape_cast %204 : vector<1x128xf32> to vector<1x1x128xf32>
    %206 = vector.broadcast %205 : vector<1x1x128xf32> to vector<8x8x128xf32>
    %207 = arith.mulf %203, %206 : vector<8x8x128xf32>
    %208 = arith.addf %201, %207 : vector<8x8x128xf32>
    %c3_168 = arith.constant 3 : index
    %c1_169 = arith.constant 1 : index
    %c1_170 = arith.constant 1 : index
    %c0_171 = arith.constant 0 : index
    %209 = vector.load %arg15[%c3_168, %c1_169, %c1_170, %c0_171] : memref<4x10x10x128xf32, #tpu.memory_space<vmem>>, vector<1x8x8x128xf32>
    %210 = vector.shape_cast %209 : vector<1x8x8x128xf32> to vector<8x8x128xf32>
    %c18 = arith.constant 18 : index
    %c0_172 = arith.constant 0 : index
    %211 = vector.load %arg6[%c18, %c0_172] : memref<25x128xf32, #tpu.memory_space<vmem>>, vector<1x128xf32>
    %212 = vector.shape_cast %211 : vector<1x128xf32> to vector<1x1x128xf32>
    %213 = vector.broadcast %212 : vector<1x1x128xf32> to vector<8x8x128xf32>
    %214 = arith.mulf %210, %213 : vector<8x8x128xf32>
    %215 = arith.addf %208, %214 : vector<8x8x128xf32>
    %c2_173 = arith.constant 2 : index
    %c1_174 = arith.constant 1 : index
    %c2_175 = arith.constant 2 : index
    %c0_176 = arith.constant 0 : index
    %216 = vector.load %arg15[%c2_173, %c1_174, %c2_175, %c0_176] : memref<4x10x10x128xf32, #tpu.memory_space<vmem>>, vector<1x8x8x128xf32>
    %217 = vector.shape_cast %216 : vector<1x8x8x128xf32> to vector<8x8x128xf32>
    %c19 = arith.constant 19 : index
    %c0_177 = arith.constant 0 : index
    %218 = vector.load %arg6[%c19, %c0_177] : memref<25x128xf32, #tpu.memory_space<vmem>>, vector<1x128xf32>
    %219 = vector.shape_cast %218 : vector<1x128xf32> to vector<1x1x128xf32>
    %220 = vector.broadcast %219 : vector<1x1x128xf32> to vector<8x8x128xf32>
    %221 = arith.mulf %217, %220 : vector<8x8x128xf32>
    %222 = arith.addf %215, %221 : vector<8x8x128xf32>
    %c0_178 = arith.constant 0 : index
    %c2_179 = arith.constant 2 : index
    %c0_180 = arith.constant 0 : index
    %c0_181 = arith.constant 0 : index
    %223 = vector.load %arg15[%c0_178, %c2_179, %c0_180, %c0_181] : memref<4x10x10x128xf32, #tpu.memory_space<vmem>>, vector<1x8x8x128xf32>
    %224 = vector.shape_cast %223 : vector<1x8x8x128xf32> to vector<8x8x128xf32>
    %c20 = arith.constant 20 : index
    %c0_182 = arith.constant 0 : index
    %225 = vector.load %arg6[%c20, %c0_182] : memref<25x128xf32, #tpu.memory_space<vmem>>, vector<1x128xf32>
    %226 = vector.shape_cast %225 : vector<1x128xf32> to vector<1x1x128xf32>
    %227 = vector.broadcast %226 : vector<1x1x128xf32> to vector<8x8x128xf32>
    %228 = arith.mulf %224, %227 : vector<8x8x128xf32>
    %229 = arith.addf %222, %228 : vector<8x8x128xf32>
    %c1_183 = arith.constant 1 : index
    %c2_184 = arith.constant 2 : index
    %c0_185 = arith.constant 0 : index
    %c0_186 = arith.constant 0 : index
    %230 = vector.load %arg15[%c1_183, %c2_184, %c0_185, %c0_186] : memref<4x10x10x128xf32, #tpu.memory_space<vmem>>, vector<1x8x8x128xf32>
    %231 = vector.shape_cast %230 : vector<1x8x8x128xf32> to vector<8x8x128xf32>
    %c21 = arith.constant 21 : index
    %c0_187 = arith.constant 0 : index
    %232 = vector.load %arg6[%c21, %c0_187] : memref<25x128xf32, #tpu.memory_space<vmem>>, vector<1x128xf32>
    %233 = vector.shape_cast %232 : vector<1x128xf32> to vector<1x1x128xf32>
    %234 = vector.broadcast %233 : vector<1x1x128xf32> to vector<8x8x128xf32>
    %235 = arith.mulf %231, %234 : vector<8x8x128xf32>
    %236 = arith.addf %229, %235 : vector<8x8x128xf32>
    %c0_188 = arith.constant 0 : index
    %c2_189 = arith.constant 2 : index
    %c1_190 = arith.constant 1 : index
    %c0_191 = arith.constant 0 : index
    %237 = vector.load %arg15[%c0_188, %c2_189, %c1_190, %c0_191] : memref<4x10x10x128xf32, #tpu.memory_space<vmem>>, vector<1x8x8x128xf32>
    %238 = vector.shape_cast %237 : vector<1x8x8x128xf32> to vector<8x8x128xf32>
    %c22 = arith.constant 22 : index
    %c0_192 = arith.constant 0 : index
    %239 = vector.load %arg6[%c22, %c0_192] : memref<25x128xf32, #tpu.memory_space<vmem>>, vector<1x128xf32>
    %240 = vector.shape_cast %239 : vector<1x128xf32> to vector<1x1x128xf32>
    %241 = vector.broadcast %240 : vector<1x1x128xf32> to vector<8x8x128xf32>
    %242 = arith.mulf %238, %241 : vector<8x8x128xf32>
    %243 = arith.addf %236, %242 : vector<8x8x128xf32>
    %c1_193 = arith.constant 1 : index
    %c2_194 = arith.constant 2 : index
    %c1_195 = arith.constant 1 : index
    %c0_196 = arith.constant 0 : index
    %244 = vector.load %arg15[%c1_193, %c2_194, %c1_195, %c0_196] : memref<4x10x10x128xf32, #tpu.memory_space<vmem>>, vector<1x8x8x128xf32>
    %245 = vector.shape_cast %244 : vector<1x8x8x128xf32> to vector<8x8x128xf32>
    %c23 = arith.constant 23 : index
    %c0_197 = arith.constant 0 : index
    %246 = vector.load %arg6[%c23, %c0_197] : memref<25x128xf32, #tpu.memory_space<vmem>>, vector<1x128xf32>
    %247 = vector.shape_cast %246 : vector<1x128xf32> to vector<1x1x128xf32>
    %248 = vector.broadcast %247 : vector<1x1x128xf32> to vector<8x8x128xf32>
    %249 = arith.mulf %245, %248 : vector<8x8x128xf32>
    %250 = arith.addf %243, %249 : vector<8x8x128xf32>
    %c0_198 = arith.constant 0 : index
    %c2_199 = arith.constant 2 : index
    %c2_200 = arith.constant 2 : index
    %c0_201 = arith.constant 0 : index
    %251 = vector.load %arg15[%c0_198, %c2_199, %c2_200, %c0_201] : memref<4x10x10x128xf32, #tpu.memory_space<vmem>>, vector<1x8x8x128xf32>
    %252 = vector.shape_cast %251 : vector<1x8x8x128xf32> to vector<8x8x128xf32>
    %c24 = arith.constant 24 : index
    %c0_202 = arith.constant 0 : index
    %253 = vector.load %arg6[%c24, %c0_202] : memref<25x128xf32, #tpu.memory_space<vmem>>, vector<1x128xf32>
    %254 = vector.shape_cast %253 : vector<1x128xf32> to vector<1x1x128xf32>
    %255 = vector.broadcast %254 : vector<1x1x128xf32> to vector<8x8x128xf32>
    %256 = arith.mulf %252, %255 : vector<8x8x128xf32>
    %257 = arith.addf %250, %256 : vector<8x8x128xf32>
    %c0_203 = arith.constant 0 : index
    %c0_204 = arith.constant 0 : index
    %258 = vector.load %arg7[%c0_203, %c0_204] : memref<1x128xf32, #tpu.memory_space<vmem>>, vector<1x128xf32>
    %259 = vector.shape_cast %258 : vector<1x128xf32> to vector<1x1x128xf32>
    %260 = vector.broadcast %259 : vector<1x1x128xf32> to vector<8x8x128xf32>
    %261 = arith.addf %257, %260 : vector<8x8x128xf32>
    %cst_205 = arith.constant 0.000000e+00 : f32
    %262 = vector.broadcast %cst_205 : f32 to vector<8x8x128xf32>
    %263 = arith.maximumf %261, %262 : vector<8x8x128xf32>
    %264 = vector.shape_cast %263 : vector<8x8x128xf32> to vector<64x128xf32>
    %cst_206 = arith.constant dense<0.000000e+00> : vector<128xf32>
    %265 = vector.multi_reduction <add>, %264, %cst_206 [0] : vector<64x128xf32> to vector<128xf32>
    %266 = vector.shape_cast %265 : vector<128xf32> to vector<1x128xf32>
    %cst_207 = arith.constant 6.400000e+01 : f32
    %267 = vector.broadcast %cst_207 : f32 to vector<1x128xf32>
    %268 = arith.divf %266, %267 : vector<1x128xf32>
    %c0_208 = arith.constant 0 : index
    %c0_209 = arith.constant 0 : index
    %269 = vector.load %arg8[%c0_208, %c0_209] : memref<128x32xf32, #tpu.memory_space<vmem>>, vector<128x32xf32>
    %cst_210 = arith.constant dense<0.000000e+00> : vector<1x32xf32>
    %270 = tpu.matmul %268, %269, %cst_210 {dimension_numbers = #tpu.dot_dimension_numbers<[1], [0], [0], [1], [0, 0, 1, 1], [], []>} : vector<1x128xf32>, vector<128x32xf32>, vector<1x32xf32> -> vector<1x32xf32>
    %c0_211 = arith.constant 0 : index
    %c0_212 = arith.constant 0 : index
    %271 = vector.load %arg9[%c0_211, %c0_212] : memref<1x32xf32, #tpu.memory_space<vmem>>, vector<1x32xf32>
    %272 = arith.addf %270, %271 : vector<1x32xf32>
    %cst_213 = arith.constant 0.000000e+00 : f32
    %273 = vector.broadcast %cst_213 : f32 to vector<1x32xf32>
    %274 = arith.maximumf %272, %273 : vector<1x32xf32>
    %c0_214 = arith.constant 0 : index
    %c0_215 = arith.constant 0 : index
    %275 = vector.load %arg10[%c0_214, %c0_215] : memref<32x128xf32, #tpu.memory_space<vmem>>, vector<32x128xf32>
    %cst_216 = arith.constant dense<0.000000e+00> : vector<1x128xf32>
    %276 = tpu.matmul %274, %275, %cst_216 {dimension_numbers = #tpu.dot_dimension_numbers<[1], [0], [0], [1], [0, 0, 1, 1], [], []>} : vector<1x32xf32>, vector<32x128xf32>, vector<1x128xf32> -> vector<1x128xf32>
    %c0_217 = arith.constant 0 : index
    %c0_218 = arith.constant 0 : index
    %277 = vector.load %arg11[%c0_217, %c0_218] : memref<1x128xf32, #tpu.memory_space<vmem>>, vector<1x128xf32>
    %278 = arith.addf %276, %277 : vector<1x128xf32>
    %cst_219 = arith.constant 3.000000e+00 : f32
    %279 = vector.broadcast %cst_219 : f32 to vector<1x128xf32>
    %280 = arith.addf %278, %279 : vector<1x128xf32>
    %cst_220 = arith.constant 0.000000e+00 : f32
    %cst_221 = arith.constant 6.000000e+00 : f32
    %281 = vector.broadcast %cst_220 : f32 to vector<1x128xf32>
    %282 = arith.maximumf %281, %280 : vector<1x128xf32>
    %283 = vector.broadcast %cst_221 : f32 to vector<1x128xf32>
    %284 = arith.minimumf %283, %282 : vector<1x128xf32>
    %cst_222 = arith.constant 0.166666672 : f32
    %285 = vector.broadcast %cst_222 : f32 to vector<1x128xf32>
    %286 = arith.mulf %284, %285 : vector<1x128xf32>
    %287 = vector.broadcast %286 : vector<1x128xf32> to vector<64x128xf32>
    %288 = arith.mulf %264, %287 : vector<64x128xf32>
    %c0_223 = arith.constant 0 : index
    %c0_224 = arith.constant 0 : index
    %289 = vector.load %arg12[%c0_223, %c0_224] : memref<128x64xf32, #tpu.memory_space<vmem>>, vector<128x64xf32>
    %cst_225 = arith.constant dense<0.000000e+00> : vector<64x64xf32>
    %290 = tpu.matmul %288, %289, %cst_225 {dimension_numbers = #tpu.dot_dimension_numbers<[1], [0], [0], [1], [0, 0, 1, 1], [], []>} : vector<64x128xf32>, vector<128x64xf32>, vector<64x64xf32> -> vector<64x64xf32>
    %c0_226 = arith.constant 0 : index
    %c0_227 = arith.constant 0 : index
    %291 = vector.load %arg13[%c0_226, %c0_227] : memref<1x64xf32, #tpu.memory_space<vmem>>, vector<1x64xf32>
    %292 = vector.broadcast %291 : vector<1x64xf32> to vector<64x64xf32>
    %293 = arith.addf %290, %292 : vector<64x64xf32>
    %c0_228 = arith.constant 0 : index
    %c0_229 = arith.constant 0 : index
    %c0_230 = arith.constant 0 : index
    %294 = vector.load %arg14[%c0_228, %c0_229, %c0_230] : memref<1x64x64xf32, #tpu.memory_space<vmem>>, vector<1x64x64xf32>
    %295 = vector.shape_cast %294 : vector<1x64x64xf32> to vector<64x64xf32>
    %296 = vector.shape_cast %293 : vector<64x64xf32> to vector<1x64x64xf32>
    tpu.vector_store %arg14[%c0_228, %c0_229, %c0_230], %296 {strides = array<i32>} : memref<1x64x64xf32, #tpu.memory_space<vmem>>, vector<1x64x64xf32>,
    return
  }
  func.func @transform_0(%arg0: i32) -> (i32, i32, i32) {
    %c0_i32 = arith.constant 0 : i32
    %c0_i32_0 = arith.constant 0 : i32
    %c0_i32_1 = arith.constant 0 : i32
    return %arg0, %c0_i32, %c0_i32_0 : i32, i32, i32
  }
  func.func @transform_1(%arg0: i32) -> (i32, i32) {
    %c0_i32 = arith.constant 0 : i32
    %c0_i32_0 = arith.constant 0 : i32
    %c0_i32_1 = arith.constant 0 : i32
    return %c0_i32, %c0_i32_0 : i32, i32
  }
  func.func @transform_2(%arg0: i32) -> (i32, i32) {
    %c0_i32 = arith.constant 0 : i32
    %c0_i32_0 = arith.constant 0 : i32
    %c0_i32_1 = arith.constant 0 : i32
    return %c0_i32, %c0_i32_0 : i32, i32
  }
  func.func @transform_3(%arg0: i32) -> (i32, i32) {
    %c0_i32 = arith.constant 0 : i32
    %c0_i32_0 = arith.constant 0 : i32
    %c0_i32_1 = arith.constant 0 : i32
    return %c0_i32, %c0_i32_0 : i32, i32
  }
  func.func @transform_4(%arg0: i32) -> (i32, i32) {
    %c0_i32 = arith.constant 0 : i32
    %c0_i32_0 = arith.constant 0 : i32
    %c0_i32_1 = arith.constant 0 : i32
    return %c0_i32, %c0_i32_0 : i32, i32
  }
  func.func @transform_5(%arg0: i32) -> (i32, i32) {
    %c0_i32 = arith.constant 0 : i32
    %c0_i32_0 = arith.constant 0 : i32
    %c0_i32_1 = arith.constant 0 : i32
    return %c0_i32, %c0_i32_0 : i32, i32
  }
  func.func @transform_6(%arg0: i32) -> (i32, i32) {
    %c0_i32 = arith.constant 0 : i32
    %c0_i32_0 = arith.constant 0 : i32
    %c0_i32_1 = arith.constant 0 : i32
    return %c0_i32, %c0_i32_0 : i32, i32
  }
  func.func @transform_7(%arg0: i32) -> (i32, i32) {
    %c0_i32 = arith.constant 0 : i32
    %c0_i32_0 = arith.constant 0 : i32
    %c0_i32_1 = arith.constant 0 : i32
    return %c0_i32, %c0_i32_0 : i32, i32
  }
  func.func @transform_8(%arg0: i32) -> (i32, i32) {
    %c0_i32 = arith.constant 0 : i32
    %c0_i32_0 = arith.constant 0 : i32
    %c0_i32_1 = arith.constant 0 : i32
    return %c0_i32, %c0_i32_0 : i32, i32
  }
  func.func @transform_9(%arg0: i32) -> (i32, i32) {
    %c0_i32 = arith.constant 0 : i32
    %c0_i32_0 = arith.constant 0 : i32
    %c0_i32_1 = arith.constant 0 : i32
    return %c0_i32, %c0_i32_0 : i32, i32
  }
  func.func @transform_10(%arg0: i32) -> (i32, i32) {
    %c0_i32 = arith.constant 0 : i32
    %c0_i32_0 = arith.constant 0 : i32
    %c0_i32_1 = arith.constant 0 : i32
    return %c0_i32, %c0_i32_0 : i32, i32
  }
  func.func @transform_11(%arg0: i32) -> (i32, i32) {
    %c0_i32 = arith.constant 0 : i32
    %c0_i32_0 = arith.constant 0 : i32
    %c0_i32_1 = arith.constant 0 : i32
    return %c0_i32, %c0_i32_0 : i32, i32
  }
  func.func @transform_12(%arg0: i32) -> (i32, i32) {
    %c0_i32 = arith.constant 0 : i32
    %c0_i32_0 = arith.constant 0 : i32
    %c0_i32_1 = arith.constant 0 : i32
    return %c0_i32, %c0_i32_0 : i32, i32
  }
  func.func @transform_13(%arg0: i32) -> (i32, i32, i32) {
    %c0_i32 = arith.constant 0 : i32
    %c0_i32_0 = arith.constant 0 : i32
    %c0_i32_1 = arith.constant 0 : i32
    return %arg0, %c0_i32, %c0_i32_0 : i32, i32, i32
  }
}

module attributes {stable_mosaic.version = 11 : i64} {
  func.func @_fused_block_kernel(%arg0: i32, %arg1: memref<1x64x64xf32, #tpu.memory_space<vmem>>, %arg2: memref<64x256xf32, #tpu.memory_space<vmem>>, %arg3: memref<1x256xf32, #tpu.memory_space<vmem>>, %arg4: memref<9x256xf32, #tpu.memory_space<vmem>>, %arg5: memref<1x256xf32, #tpu.memory_space<vmem>>, %arg6: memref<256x64xf32, #tpu.memory_space<vmem>>, %arg7: memref<1x64xf32, #tpu.memory_space<vmem>>, %arg8: memref<64x256xf32, #tpu.memory_space<vmem>>, %arg9: memref<1x256xf32, #tpu.memory_space<vmem>>, %arg10: memref<256x128xf32, #tpu.memory_space<vmem>>, %arg11: memref<1x128xf32, #tpu.memory_space<vmem>>, %arg12: memref<1x16x128xf32, #tpu.memory_space<vmem>>, %arg13: memref<4x6x6x256xf32, #tpu.memory_space<vmem>>) attributes {dimension_semantics = [#tpu.dimension_semantics<parallel>], iteration_bounds = array<i64: 2>, scalar_prefetch = 0 : i64, scratch_operands = 1 : i64, tpu.core_type = #tpu.core_type<tc>, window_params = [{transform_indices = @transform_0, window_bounds = array<i64: 1, 64, 64>}, {pipeline_mode = #tpu.pipeline_mode<synchronous>, transform_indices = @transform_1, window_bounds = array<i64: 64, 256>}, {pipeline_mode = #tpu.pipeline_mode<synchronous>, transform_indices = @transform_2, window_bounds = array<i64: 1, 256>}, {pipeline_mode = #tpu.pipeline_mode<synchronous>, transform_indices = @transform_3, window_bounds = array<i64: 9, 256>}, {pipeline_mode = #tpu.pipeline_mode<synchronous>, transform_indices = @transform_4, window_bounds = array<i64: 1, 256>}, {pipeline_mode = #tpu.pipeline_mode<synchronous>, transform_indices = @transform_5, window_bounds = array<i64: 256, 64>}, {pipeline_mode = #tpu.pipeline_mode<synchronous>, transform_indices = @transform_6, window_bounds = array<i64: 1, 64>}, {pipeline_mode = #tpu.pipeline_mode<synchronous>, transform_indices = @transform_7, window_bounds = array<i64: 64, 256>}, {pipeline_mode = #tpu.pipeline_mode<synchronous>, transform_indices = @transform_8, window_bounds = array<i64: 1, 256>}, {pipeline_mode = #tpu.pipeline_mode<synchronous>, transform_indices = @transform_9, window_bounds = array<i64: 256, 128>}, {pipeline_mode = #tpu.pipeline_mode<synchronous>, transform_indices = @transform_10, window_bounds = array<i64: 1, 128>}, {transform_indices = @transform_11, window_bounds = array<i64: 1, 16, 128>}]} {
    %cst = arith.constant 0.000000e+00 : f32
    %0 = vector.broadcast %cst : f32 to vector<4x6x6x256xf32>
    %c0 = arith.constant 0 : index
    %c0_0 = arith.constant 0 : index
    %c0_1 = arith.constant 0 : index
    %c0_2 = arith.constant 0 : index
    %1 = vector.load %arg13[%c0, %c0_0, %c0_1, %c0_2] : memref<4x6x6x256xf32, #tpu.memory_space<vmem>>, vector<4x6x6x256xf32>
    tpu.vector_store %arg13[%c0, %c0_0, %c0_1, %c0_2], %0 {strides = array<i32>} : memref<4x6x6x256xf32, #tpu.memory_space<vmem>>, vector<4x6x6x256xf32>,
    %c0_3 = arith.constant 0 : index
    %c0_4 = arith.constant 0 : index
    %c0_5 = arith.constant 0 : index
    %2 = vector.load %arg1[%c0_3, %c0_4, %c0_5] : memref<1x64x64xf32, #tpu.memory_space<vmem>>, vector<1x16x64xf32>
    %3 = vector.shape_cast %2 : vector<1x16x64xf32> to vector<16x64xf32>
    %c0_6 = arith.constant 0 : index
    %c0_7 = arith.constant 0 : index
    %4 = vector.load %arg2[%c0_6, %c0_7] : memref<64x256xf32, #tpu.memory_space<vmem>>, vector<64x256xf32>
    %cst_8 = arith.constant dense<0.000000e+00> : vector<16x256xf32>
    %5 = tpu.matmul %3, %4, %cst_8 {dimension_numbers = #tpu.dot_dimension_numbers<[1], [0], [0], [1], [0, 0, 1, 1], [], []>} : vector<16x64xf32>, vector<64x256xf32>, vector<16x256xf32> -> vector<16x256xf32>
    %c0_9 = arith.constant 0 : index
    %c0_10 = arith.constant 0 : index
    %6 = vector.load %arg3[%c0_9, %c0_10] : memref<1x256xf32, #tpu.memory_space<vmem>>, vector<1x256xf32>
    %7 = vector.broadcast %6 : vector<1x256xf32> to vector<16x256xf32>
    %8 = arith.addf %5, %7 : vector<16x256xf32>
    %cst_11 = arith.constant 0.000000e+00 : f32
    %9 = vector.broadcast %cst_11 : f32 to vector<16x256xf32>
    %10 = arith.maximumf %8, %9 : vector<16x256xf32>
    %11 = vector.shape_cast %10 : vector<16x256xf32> to vector<4x4x256xf32>
    %c0_12 = arith.constant 0 : index
    %c1 = arith.constant 1 : index
    %c1_13 = arith.constant 1 : index
    %c0_14 = arith.constant 0 : index
    %12 = vector.load %arg13[%c0_12, %c1, %c1_13, %c0_14] : memref<4x6x6x256xf32, #tpu.memory_space<vmem>>, vector<1x4x4x256xf32>
    %13 = vector.shape_cast %12 : vector<1x4x4x256xf32> to vector<4x4x256xf32>
    %14 = vector.shape_cast %11 : vector<4x4x256xf32> to vector<1x4x4x256xf32>
    tpu.vector_store %arg13[%c0_12, %c1, %c1_13, %c0_14], %14 {strides = array<i32>} : memref<4x6x6x256xf32, #tpu.memory_space<vmem>>, vector<1x4x4x256xf32>,
    %c0_15 = arith.constant 0 : index
    %c16 = arith.constant 16 : index
    %c0_16 = arith.constant 0 : index
    %15 = vector.load %arg1[%c0_15, %c16, %c0_16] : memref<1x64x64xf32, #tpu.memory_space<vmem>>, vector<1x16x64xf32>
    %16 = vector.shape_cast %15 : vector<1x16x64xf32> to vector<16x64xf32>
    %c0_17 = arith.constant 0 : index
    %c0_18 = arith.constant 0 : index
    %17 = vector.load %arg2[%c0_17, %c0_18] : memref<64x256xf32, #tpu.memory_space<vmem>>, vector<64x256xf32>
    %cst_19 = arith.constant dense<0.000000e+00> : vector<16x256xf32>
    %18 = tpu.matmul %16, %17, %cst_19 {dimension_numbers = #tpu.dot_dimension_numbers<[1], [0], [0], [1], [0, 0, 1, 1], [], []>} : vector<16x64xf32>, vector<64x256xf32>, vector<16x256xf32> -> vector<16x256xf32>
    %c0_20 = arith.constant 0 : index
    %c0_21 = arith.constant 0 : index
    %19 = vector.load %arg3[%c0_20, %c0_21] : memref<1x256xf32, #tpu.memory_space<vmem>>, vector<1x256xf32>
    %20 = vector.broadcast %19 : vector<1x256xf32> to vector<16x256xf32>
    %21 = arith.addf %18, %20 : vector<16x256xf32>
    %cst_22 = arith.constant 0.000000e+00 : f32
    %22 = vector.broadcast %cst_22 : f32 to vector<16x256xf32>
    %23 = arith.maximumf %21, %22 : vector<16x256xf32>
    %24 = vector.shape_cast %23 : vector<16x256xf32> to vector<4x4x256xf32>
    %c1_23 = arith.constant 1 : index
    %c1_24 = arith.constant 1 : index
    %c1_25 = arith.constant 1 : index
    %c0_26 = arith.constant 0 : index
    %25 = vector.load %arg13[%c1_23, %c1_24, %c1_25, %c0_26] : memref<4x6x6x256xf32, #tpu.memory_space<vmem>>, vector<1x4x4x256xf32>
    %26 = vector.shape_cast %25 : vector<1x4x4x256xf32> to vector<4x4x256xf32>
    %27 = vector.shape_cast %24 : vector<4x4x256xf32> to vector<1x4x4x256xf32>
    tpu.vector_store %arg13[%c1_23, %c1_24, %c1_25, %c0_26], %27 {strides = array<i32>} : memref<4x6x6x256xf32, #tpu.memory_space<vmem>>, vector<1x4x4x256xf32>,
    %c0_27 = arith.constant 0 : index
    %c32 = arith.constant 32 : index
    %c0_28 = arith.constant 0 : index
    %28 = vector.load %arg1[%c0_27, %c32, %c0_28] : memref<1x64x64xf32, #tpu.memory_space<vmem>>, vector<1x16x64xf32>
    %29 = vector.shape_cast %28 : vector<1x16x64xf32> to vector<16x64xf32>
    %c0_29 = arith.constant 0 : index
    %c0_30 = arith.constant 0 : index
    %30 = vector.load %arg2[%c0_29, %c0_30] : memref<64x256xf32, #tpu.memory_space<vmem>>, vector<64x256xf32>
    %cst_31 = arith.constant dense<0.000000e+00> : vector<16x256xf32>
    %31 = tpu.matmul %29, %30, %cst_31 {dimension_numbers = #tpu.dot_dimension_numbers<[1], [0], [0], [1], [0, 0, 1, 1], [], []>} : vector<16x64xf32>, vector<64x256xf32>, vector<16x256xf32> -> vector<16x256xf32>
    %c0_32 = arith.constant 0 : index
    %c0_33 = arith.constant 0 : index
    %32 = vector.load %arg3[%c0_32, %c0_33] : memref<1x256xf32, #tpu.memory_space<vmem>>, vector<1x256xf32>
    %33 = vector.broadcast %32 : vector<1x256xf32> to vector<16x256xf32>
    %34 = arith.addf %31, %33 : vector<16x256xf32>
    %cst_34 = arith.constant 0.000000e+00 : f32
    %35 = vector.broadcast %cst_34 : f32 to vector<16x256xf32>
    %36 = arith.maximumf %34, %35 : vector<16x256xf32>
    %37 = vector.shape_cast %36 : vector<16x256xf32> to vector<4x4x256xf32>
    %c2 = arith.constant 2 : index
    %c1_35 = arith.constant 1 : index
    %c1_36 = arith.constant 1 : index
    %c0_37 = arith.constant 0 : index
    %38 = vector.load %arg13[%c2, %c1_35, %c1_36, %c0_37] : memref<4x6x6x256xf32, #tpu.memory_space<vmem>>, vector<1x4x4x256xf32>
    %39 = vector.shape_cast %38 : vector<1x4x4x256xf32> to vector<4x4x256xf32>
    %40 = vector.shape_cast %37 : vector<4x4x256xf32> to vector<1x4x4x256xf32>
    tpu.vector_store %arg13[%c2, %c1_35, %c1_36, %c0_37], %40 {strides = array<i32>} : memref<4x6x6x256xf32, #tpu.memory_space<vmem>>, vector<1x4x4x256xf32>,
    %c0_38 = arith.constant 0 : index
    %c48 = arith.constant 48 : index
    %c0_39 = arith.constant 0 : index
    %41 = vector.load %arg1[%c0_38, %c48, %c0_39] : memref<1x64x64xf32, #tpu.memory_space<vmem>>, vector<1x16x64xf32>
    %42 = vector.shape_cast %41 : vector<1x16x64xf32> to vector<16x64xf32>
    %c0_40 = arith.constant 0 : index
    %c0_41 = arith.constant 0 : index
    %43 = vector.load %arg2[%c0_40, %c0_41] : memref<64x256xf32, #tpu.memory_space<vmem>>, vector<64x256xf32>
    %cst_42 = arith.constant dense<0.000000e+00> : vector<16x256xf32>
    %44 = tpu.matmul %42, %43, %cst_42 {dimension_numbers = #tpu.dot_dimension_numbers<[1], [0], [0], [1], [0, 0, 1, 1], [], []>} : vector<16x64xf32>, vector<64x256xf32>, vector<16x256xf32> -> vector<16x256xf32>
    %c0_43 = arith.constant 0 : index
    %c0_44 = arith.constant 0 : index
    %45 = vector.load %arg3[%c0_43, %c0_44] : memref<1x256xf32, #tpu.memory_space<vmem>>, vector<1x256xf32>
    %46 = vector.broadcast %45 : vector<1x256xf32> to vector<16x256xf32>
    %47 = arith.addf %44, %46 : vector<16x256xf32>
    %cst_45 = arith.constant 0.000000e+00 : f32
    %48 = vector.broadcast %cst_45 : f32 to vector<16x256xf32>
    %49 = arith.maximumf %47, %48 : vector<16x256xf32>
    %50 = vector.shape_cast %49 : vector<16x256xf32> to vector<4x4x256xf32>
    %c3 = arith.constant 3 : index
    %c1_46 = arith.constant 1 : index
    %c1_47 = arith.constant 1 : index
    %c0_48 = arith.constant 0 : index
    %51 = vector.load %arg13[%c3, %c1_46, %c1_47, %c0_48] : memref<4x6x6x256xf32, #tpu.memory_space<vmem>>, vector<1x4x4x256xf32>
    %52 = vector.shape_cast %51 : vector<1x4x4x256xf32> to vector<4x4x256xf32>
    %53 = vector.shape_cast %50 : vector<4x4x256xf32> to vector<1x4x4x256xf32>
    tpu.vector_store %arg13[%c3, %c1_46, %c1_47, %c0_48], %53 {strides = array<i32>} : memref<4x6x6x256xf32, #tpu.memory_space<vmem>>, vector<1x4x4x256xf32>,
    %cst_49 = arith.constant 0.000000e+00 : f32
    %54 = vector.broadcast %cst_49 : f32 to vector<4x4x256xf32>
    %c3_50 = arith.constant 3 : index
    %c0_51 = arith.constant 0 : index
    %c0_52 = arith.constant 0 : index
    %c0_53 = arith.constant 0 : index
    %55 = vector.load %arg13[%c3_50, %c0_51, %c0_52, %c0_53] : memref<4x6x6x256xf32, #tpu.memory_space<vmem>>, vector<1x4x4x256xf32>
    %56 = vector.shape_cast %55 : vector<1x4x4x256xf32> to vector<4x4x256xf32>
    %c0_54 = arith.constant 0 : index
    %c0_55 = arith.constant 0 : index
    %57 = vector.load %arg4[%c0_54, %c0_55] : memref<9x256xf32, #tpu.memory_space<vmem>>, vector<1x256xf32>
    %58 = vector.shape_cast %57 : vector<1x256xf32> to vector<1x1x256xf32>
    %59 = vector.broadcast %58 : vector<1x1x256xf32> to vector<4x4x256xf32>
    %60 = arith.mulf %56, %59 : vector<4x4x256xf32>
    %61 = arith.addf %54, %60 : vector<4x4x256xf32>
    %c2_56 = arith.constant 2 : index
    %c0_57 = arith.constant 0 : index
    %c1_58 = arith.constant 1 : index
    %c0_59 = arith.constant 0 : index
    %62 = vector.load %arg13[%c2_56, %c0_57, %c1_58, %c0_59] : memref<4x6x6x256xf32, #tpu.memory_space<vmem>>, vector<1x4x4x256xf32>
    %63 = vector.shape_cast %62 : vector<1x4x4x256xf32> to vector<4x4x256xf32>
    %c1_60 = arith.constant 1 : index
    %c0_61 = arith.constant 0 : index
    %64 = vector.load %arg4[%c1_60, %c0_61] : memref<9x256xf32, #tpu.memory_space<vmem>>, vector<1x256xf32>
    %65 = vector.shape_cast %64 : vector<1x256xf32> to vector<1x1x256xf32>
    %66 = vector.broadcast %65 : vector<1x1x256xf32> to vector<4x4x256xf32>
    %67 = arith.mulf %63, %66 : vector<4x4x256xf32>
    %68 = arith.addf %61, %67 : vector<4x4x256xf32>
    %c3_62 = arith.constant 3 : index
    %c0_63 = arith.constant 0 : index
    %c1_64 = arith.constant 1 : index
    %c0_65 = arith.constant 0 : index
    %69 = vector.load %arg13[%c3_62, %c0_63, %c1_64, %c0_65] : memref<4x6x6x256xf32, #tpu.memory_space<vmem>>, vector<1x4x4x256xf32>
    %70 = vector.shape_cast %69 : vector<1x4x4x256xf32> to vector<4x4x256xf32>
    %c2_66 = arith.constant 2 : index
    %c0_67 = arith.constant 0 : index
    %71 = vector.load %arg4[%c2_66, %c0_67] : memref<9x256xf32, #tpu.memory_space<vmem>>, vector<1x256xf32>
    %72 = vector.shape_cast %71 : vector<1x256xf32> to vector<1x1x256xf32>
    %73 = vector.broadcast %72 : vector<1x1x256xf32> to vector<4x4x256xf32>
    %74 = arith.mulf %70, %73 : vector<4x4x256xf32>
    %75 = arith.addf %68, %74 : vector<4x4x256xf32>
    %c1_68 = arith.constant 1 : index
    %c1_69 = arith.constant 1 : index
    %c0_70 = arith.constant 0 : index
    %c0_71 = arith.constant 0 : index
    %76 = vector.load %arg13[%c1_68, %c1_69, %c0_70, %c0_71] : memref<4x6x6x256xf32, #tpu.memory_space<vmem>>, vector<1x4x4x256xf32>
    %77 = vector.shape_cast %76 : vector<1x4x4x256xf32> to vector<4x4x256xf32>
    %c3_72 = arith.constant 3 : index
    %c0_73 = arith.constant 0 : index
    %78 = vector.load %arg4[%c3_72, %c0_73] : memref<9x256xf32, #tpu.memory_space<vmem>>, vector<1x256xf32>
    %79 = vector.shape_cast %78 : vector<1x256xf32> to vector<1x1x256xf32>
    %80 = vector.broadcast %79 : vector<1x1x256xf32> to vector<4x4x256xf32>
    %81 = arith.mulf %77, %80 : vector<4x4x256xf32>
    %82 = arith.addf %75, %81 : vector<4x4x256xf32>
    %c0_74 = arith.constant 0 : index
    %c1_75 = arith.constant 1 : index
    %c1_76 = arith.constant 1 : index
    %c0_77 = arith.constant 0 : index
    %83 = vector.load %arg13[%c0_74, %c1_75, %c1_76, %c0_77] : memref<4x6x6x256xf32, #tpu.memory_space<vmem>>, vector<1x4x4x256xf32>
    %84 = vector.shape_cast %83 : vector<1x4x4x256xf32> to vector<4x4x256xf32>
    %c4 = arith.constant 4 : index
    %c0_78 = arith.constant 0 : index
    %85 = vector.load %arg4[%c4, %c0_78] : memref<9x256xf32, #tpu.memory_space<vmem>>, vector<1x256xf32>
    %86 = vector.shape_cast %85 : vector<1x256xf32> to vector<1x1x256xf32>
    %87 = vector.broadcast %86 : vector<1x1x256xf32> to vector<4x4x256xf32>
    %88 = arith.mulf %84, %87 : vector<4x4x256xf32>
    %89 = arith.addf %82, %88 : vector<4x4x256xf32>
    %c1_79 = arith.constant 1 : index
    %c1_80 = arith.constant 1 : index
    %c1_81 = arith.constant 1 : index
    %c0_82 = arith.constant 0 : index
    %90 = vector.load %arg13[%c1_79, %c1_80, %c1_81, %c0_82] : memref<4x6x6x256xf32, #tpu.memory_space<vmem>>, vector<1x4x4x256xf32>
    %91 = vector.shape_cast %90 : vector<1x4x4x256xf32> to vector<4x4x256xf32>
    %c5 = arith.constant 5 : index
    %c0_83 = arith.constant 0 : index
    %92 = vector.load %arg4[%c5, %c0_83] : memref<9x256xf32, #tpu.memory_space<vmem>>, vector<1x256xf32>
    %93 = vector.shape_cast %92 : vector<1x256xf32> to vector<1x1x256xf32>
    %94 = vector.broadcast %93 : vector<1x1x256xf32> to vector<4x4x256xf32>
    %95 = arith.mulf %91, %94 : vector<4x4x256xf32>
    %96 = arith.addf %89, %95 : vector<4x4x256xf32>
    %c3_84 = arith.constant 3 : index
    %c1_85 = arith.constant 1 : index
    %c0_86 = arith.constant 0 : index
    %c0_87 = arith.constant 0 : index
    %97 = vector.load %arg13[%c3_84, %c1_85, %c0_86, %c0_87] : memref<4x6x6x256xf32, #tpu.memory_space<vmem>>, vector<1x4x4x256xf32>
    %98 = vector.shape_cast %97 : vector<1x4x4x256xf32> to vector<4x4x256xf32>
    %c6 = arith.constant 6 : index
    %c0_88 = arith.constant 0 : index
    %99 = vector.load %arg4[%c6, %c0_88] : memref<9x256xf32, #tpu.memory_space<vmem>>, vector<1x256xf32>
    %100 = vector.shape_cast %99 : vector<1x256xf32> to vector<1x1x256xf32>
    %101 = vector.broadcast %100 : vector<1x1x256xf32> to vector<4x4x256xf32>
    %102 = arith.mulf %98, %101 : vector<4x4x256xf32>
    %103 = arith.addf %96, %102 : vector<4x4x256xf32>
    %c2_89 = arith.constant 2 : index
    %c1_90 = arith.constant 1 : index
    %c1_91 = arith.constant 1 : index
    %c0_92 = arith.constant 0 : index
    %104 = vector.load %arg13[%c2_89, %c1_90, %c1_91, %c0_92] : memref<4x6x6x256xf32, #tpu.memory_space<vmem>>, vector<1x4x4x256xf32>
    %105 = vector.shape_cast %104 : vector<1x4x4x256xf32> to vector<4x4x256xf32>
    %c7 = arith.constant 7 : index
    %c0_93 = arith.constant 0 : index
    %106 = vector.load %arg4[%c7, %c0_93] : memref<9x256xf32, #tpu.memory_space<vmem>>, vector<1x256xf32>
    %107 = vector.shape_cast %106 : vector<1x256xf32> to vector<1x1x256xf32>
    %108 = vector.broadcast %107 : vector<1x1x256xf32> to vector<4x4x256xf32>
    %109 = arith.mulf %105, %108 : vector<4x4x256xf32>
    %110 = arith.addf %103, %109 : vector<4x4x256xf32>
    %c3_94 = arith.constant 3 : index
    %c1_95 = arith.constant 1 : index
    %c1_96 = arith.constant 1 : index
    %c0_97 = arith.constant 0 : index
    %111 = vector.load %arg13[%c3_94, %c1_95, %c1_96, %c0_97] : memref<4x6x6x256xf32, #tpu.memory_space<vmem>>, vector<1x4x4x256xf32>
    %112 = vector.shape_cast %111 : vector<1x4x4x256xf32> to vector<4x4x256xf32>
    %c8 = arith.constant 8 : index
    %c0_98 = arith.constant 0 : index
    %113 = vector.load %arg4[%c8, %c0_98] : memref<9x256xf32, #tpu.memory_space<vmem>>, vector<1x256xf32>
    %114 = vector.shape_cast %113 : vector<1x256xf32> to vector<1x1x256xf32>
    %115 = vector.broadcast %114 : vector<1x1x256xf32> to vector<4x4x256xf32>
    %116 = arith.mulf %112, %115 : vector<4x4x256xf32>
    %117 = arith.addf %110, %116 : vector<4x4x256xf32>
    %c0_99 = arith.constant 0 : index
    %c0_100 = arith.constant 0 : index
    %118 = vector.load %arg5[%c0_99, %c0_100] : memref<1x256xf32, #tpu.memory_space<vmem>>, vector<1x256xf32>
    %119 = vector.shape_cast %118 : vector<1x256xf32> to vector<1x1x256xf32>
    %120 = vector.broadcast %119 : vector<1x1x256xf32> to vector<4x4x256xf32>
    %121 = arith.addf %117, %120 : vector<4x4x256xf32>
    %cst_101 = arith.constant 0.000000e+00 : f32
    %122 = vector.broadcast %cst_101 : f32 to vector<4x4x256xf32>
    %123 = arith.maximumf %121, %122 : vector<4x4x256xf32>
    %124 = vector.shape_cast %123 : vector<4x4x256xf32> to vector<16x256xf32>
    %cst_102 = arith.constant dense<0.000000e+00> : vector<256xf32>
    %125 = vector.multi_reduction <add>, %124, %cst_102 [0] : vector<16x256xf32> to vector<256xf32>
    %126 = vector.shape_cast %125 : vector<256xf32> to vector<1x256xf32>
    %cst_103 = arith.constant 1.600000e+01 : f32
    %127 = vector.broadcast %cst_103 : f32 to vector<1x256xf32>
    %128 = arith.divf %126, %127 : vector<1x256xf32>
    %c0_104 = arith.constant 0 : index
    %c0_105 = arith.constant 0 : index
    %129 = vector.load %arg6[%c0_104, %c0_105] : memref<256x64xf32, #tpu.memory_space<vmem>>, vector<256x64xf32>
    %cst_106 = arith.constant dense<0.000000e+00> : vector<1x64xf32>
    %130 = tpu.matmul %128, %129, %cst_106 {dimension_numbers = #tpu.dot_dimension_numbers<[1], [0], [0], [1], [0, 0, 1, 1], [], []>} : vector<1x256xf32>, vector<256x64xf32>, vector<1x64xf32> -> vector<1x64xf32>
    %c0_107 = arith.constant 0 : index
    %c0_108 = arith.constant 0 : index
    %131 = vector.load %arg7[%c0_107, %c0_108] : memref<1x64xf32, #tpu.memory_space<vmem>>, vector<1x64xf32>
    %132 = arith.addf %130, %131 : vector<1x64xf32>
    %cst_109 = arith.constant 0.000000e+00 : f32
    %133 = vector.broadcast %cst_109 : f32 to vector<1x64xf32>
    %134 = arith.maximumf %132, %133 : vector<1x64xf32>
    %c0_110 = arith.constant 0 : index
    %c0_111 = arith.constant 0 : index
    %135 = vector.load %arg8[%c0_110, %c0_111] : memref<64x256xf32, #tpu.memory_space<vmem>>, vector<64x256xf32>
    %cst_112 = arith.constant dense<0.000000e+00> : vector<1x256xf32>
    %136 = tpu.matmul %134, %135, %cst_112 {dimension_numbers = #tpu.dot_dimension_numbers<[1], [0], [0], [1], [0, 0, 1, 1], [], []>} : vector<1x64xf32>, vector<64x256xf32>, vector<1x256xf32> -> vector<1x256xf32>
    %c0_113 = arith.constant 0 : index
    %c0_114 = arith.constant 0 : index
    %137 = vector.load %arg9[%c0_113, %c0_114] : memref<1x256xf32, #tpu.memory_space<vmem>>, vector<1x256xf32>
    %138 = arith.addf %136, %137 : vector<1x256xf32>
    %cst_115 = arith.constant 3.000000e+00 : f32
    %139 = vector.broadcast %cst_115 : f32 to vector<1x256xf32>
    %140 = arith.addf %138, %139 : vector<1x256xf32>
    %cst_116 = arith.constant 0.000000e+00 : f32
    %cst_117 = arith.constant 6.000000e+00 : f32
    %141 = vector.broadcast %cst_116 : f32 to vector<1x256xf32>
    %142 = arith.maximumf %141, %140 : vector<1x256xf32>
    %143 = vector.broadcast %cst_117 : f32 to vector<1x256xf32>
    %144 = arith.minimumf %143, %142 : vector<1x256xf32>
    %cst_118 = arith.constant 0.166666672 : f32
    %145 = vector.broadcast %cst_118 : f32 to vector<1x256xf32>
    %146 = arith.mulf %144, %145 : vector<1x256xf32>
    %147 = vector.broadcast %146 : vector<1x256xf32> to vector<16x256xf32>
    %148 = arith.mulf %124, %147 : vector<16x256xf32>
    %c0_119 = arith.constant 0 : index
    %c0_120 = arith.constant 0 : index
    %149 = vector.load %arg10[%c0_119, %c0_120] : memref<256x128xf32, #tpu.memory_space<vmem>>, vector<256x128xf32>
    %cst_121 = arith.constant dense<0.000000e+00> : vector<16x128xf32>
    %150 = tpu.matmul %148, %149, %cst_121 {dimension_numbers = #tpu.dot_dimension_numbers<[1], [0], [0], [1], [0, 0, 1, 1], [], []>} : vector<16x256xf32>, vector<256x128xf32>, vector<16x128xf32> -> vector<16x128xf32>
    %c0_122 = arith.constant 0 : index
    %c0_123 = arith.constant 0 : index
    %151 = vector.load %arg11[%c0_122, %c0_123] : memref<1x128xf32, #tpu.memory_space<vmem>>, vector<1x128xf32>
    %152 = vector.broadcast %151 : vector<1x128xf32> to vector<16x128xf32>
    %153 = arith.addf %150, %152 : vector<16x128xf32>
    %c0_124 = arith.constant 0 : index
    %c0_125 = arith.constant 0 : index
    %c0_126 = arith.constant 0 : index
    %154 = vector.load %arg12[%c0_124, %c0_125, %c0_126] : memref<1x16x128xf32, #tpu.memory_space<vmem>>, vector<1x16x128xf32>
    %155 = vector.shape_cast %154 : vector<1x16x128xf32> to vector<16x128xf32>
    %156 = vector.shape_cast %153 : vector<16x128xf32> to vector<1x16x128xf32>
    tpu.vector_store %arg12[%c0_124, %c0_125, %c0_126], %156 {strides = array<i32>} : memref<1x16x128xf32, #tpu.memory_space<vmem>>, vector<1x16x128xf32>,
    return
  }
  func.func @transform_0(%arg0: i32) -> (i32, i32, i32) {
    %c0_i32 = arith.constant 0 : i32
    %c0_i32_0 = arith.constant 0 : i32
    %c0_i32_1 = arith.constant 0 : i32
    return %arg0, %c0_i32, %c0_i32_0 : i32, i32, i32
  }
  func.func @transform_1(%arg0: i32) -> (i32, i32) {
    %c0_i32 = arith.constant 0 : i32
    %c0_i32_0 = arith.constant 0 : i32
    %c0_i32_1 = arith.constant 0 : i32
    return %c0_i32, %c0_i32_0 : i32, i32
  }
  func.func @transform_2(%arg0: i32) -> (i32, i32) {
    %c0_i32 = arith.constant 0 : i32
    %c0_i32_0 = arith.constant 0 : i32
    %c0_i32_1 = arith.constant 0 : i32
    return %c0_i32, %c0_i32_0 : i32, i32
  }
  func.func @transform_3(%arg0: i32) -> (i32, i32) {
    %c0_i32 = arith.constant 0 : i32
    %c0_i32_0 = arith.constant 0 : i32
    %c0_i32_1 = arith.constant 0 : i32
    return %c0_i32, %c0_i32_0 : i32, i32
  }
  func.func @transform_4(%arg0: i32) -> (i32, i32) {
    %c0_i32 = arith.constant 0 : i32
    %c0_i32_0 = arith.constant 0 : i32
    %c0_i32_1 = arith.constant 0 : i32
    return %c0_i32, %c0_i32_0 : i32, i32
  }
  func.func @transform_5(%arg0: i32) -> (i32, i32) {
    %c0_i32 = arith.constant 0 : i32
    %c0_i32_0 = arith.constant 0 : i32
    %c0_i32_1 = arith.constant 0 : i32
    return %c0_i32, %c0_i32_0 : i32, i32
  }
  func.func @transform_6(%arg0: i32) -> (i32, i32) {
    %c0_i32 = arith.constant 0 : i32
    %c0_i32_0 = arith.constant 0 : i32
    %c0_i32_1 = arith.constant 0 : i32
    return %c0_i32, %c0_i32_0 : i32, i32
  }
  func.func @transform_7(%arg0: i32) -> (i32, i32) {
    %c0_i32 = arith.constant 0 : i32
    %c0_i32_0 = arith.constant 0 : i32
    %c0_i32_1 = arith.constant 0 : i32
    return %c0_i32, %c0_i32_0 : i32, i32
  }
  func.func @transform_8(%arg0: i32) -> (i32, i32) {
    %c0_i32 = arith.constant 0 : i32
    %c0_i32_0 = arith.constant 0 : i32
    %c0_i32_1 = arith.constant 0 : i32
    return %c0_i32, %c0_i32_0 : i32, i32
  }
  func.func @transform_9(%arg0: i32) -> (i32, i32) {
    %c0_i32 = arith.constant 0 : i32
    %c0_i32_0 = arith.constant 0 : i32
    %c0_i32_1 = arith.constant 0 : i32
    return %c0_i32, %c0_i32_0 : i32, i32
  }
  func.func @transform_10(%arg0: i32) -> (i32, i32) {
    %c0_i32 = arith.constant 0 : i32
    %c0_i32_0 = arith.constant 0 : i32
    %c0_i32_1 = arith.constant 0 : i32
    return %c0_i32, %c0_i32_0 : i32, i32
  }
  func.func @transform_11(%arg0: i32) -> (i32, i32, i32) {
    %c0_i32 = arith.constant 0 : i32
    %c0_i32_0 = arith.constant 0 : i32
    %c0_i32_1 = arith.constant 0 : i32
    return %arg0, %c0_i32, %c0_i32_0 : i32, i32, i32
  }
}

</mosaic_0001>

<bundles_post_ra>
// kernel: blocks_forward.3
= control target key start
LH: loop header
LB: loop body
LE: loop exit
PB: predicated region body
PF: predicated region fallthrough
CT: control target
= control target key end

     0   :  { %s3376_s0 = inlined_call_operand.vmem [shape: f32[2,64,64], index: 0, kind: input, shape index: {}]   ;;  %s3377_s1 = inlined_call_operand.vmem [shape: f32[64,256], index: 1, kind: input, shape index: {}]   ;;  %s3378_s2 = inlined_call_operand.vmem [shape: f32[1,256], index: 2, kind: input, shape index: {}]   ;;  %s3379_s3 = inlined_call_operand.vmem [shape: f32[9,256], index: 3, kind: input, shape index: {}]   ;;  %s3380_s4 = inlined_call_operand.vmem [shape: f32[1,256], index: 4, kind: input, shape index: {}]   ;;  %s3381_s5 = inlined_call_operand.vmem [shape: f32[256,64], index: 5, kind: input, shape index: {}]   ;;  %s3382_s6 = inlined_call_operand.vmem [shape: f32[1,64], index: 6, kind: input, shape index: {}]   ;;  %s3383_s7 = inlined_call_operand.vmem [shape: f32[64,256], index: 7, kind: input, shape index: {}]   ;;  %s3384_s8 = inlined_call_operand.vmem [shape: f32[1,256], index: 8, kind: input, shape index: {}]   ;;  %s3385_s9 = inlined_call_operand.vmem [shape: f32[256,128], index: 9, kind: input, shape index: {}]   ;;  %s3386_s10 = inlined_call_operand.vmem [shape: f32[1,128], index: 10, kind: input, shape index: {}]   ;;  %s3387_s11 = inlined_call_operand.hbm [shape: f32[2,16,128], index: 11, kind: output, shape index: {}]  }
   0x1   :  { %3397 = sst [smem:[#allocation20_spill]] %s3376_s0 }
   0x2   :  { %16 = vsyncpa [#allocation4], 0 }
   0x3   :  { %18 = vsyncpa [#allocation4 + $0x1], 0  ;;  %s2472_s17 = smov 0   ;;  %s2474_s18 = smov 0  }
   0x4   :  { %s2476_s19 = smov 0   ;;  %s2478_s20 = smov 0  }
   0x5 LB: > { %s2493_s21 = sadd.s32 4294967295, %s2406_s20   ;;  %s2033_s22 = sadd.s32 4294967294, %s2406_s20   ;;  %s2406_s20 = sphi %s2478_s20, %s3452_s20   ;;  %s2402_s19 = sphi %s2476_s19, %s3451_s19   ;;  %s2398_s18 = sphi %s2474_s18, %s3450_s18   ;;  %s2394_s17 = sphi %s2472_s17, %s3449_s17  }
   0x6   : > { %s2497_s23 = sadd.s32 1, %s2406_s20   ;;  %s267_s24 = sadd.s32 1, %s2402_s19 }
   0x7   : > { %s264_s25 = ssub.s32 %s2406_s20, %s2497_s23  ;;  %p277_p0 = scmp.ne.s32.totalorder %s2402_s19, %s2398_s18 }
   0x8   : > { %p265_p1 = scmp.eq.s32.totalorder %s264_s25, 0  ;;  %p278_p2 = scmp.eq.s32.totalorder %s2493_s21, 1 }
   0x9   : > { %p283_p3 = scmp.ne.s32.totalorder %s2398_s18, %s2394_s17  ;;  %p284_p4 = scmp.eq.s32.totalorder %s2033_s22, 1 }
   0xa   : > { %s2508_s26 = scalar_select %p265_p1, %s2402_s19, %s267_s24  }
   0xb   : > { %p2510_p5 = por %p278_p2, %p277_p0  ;;  %p2514_p6 = por %p284_p4, %p283_p3 }
   0xc   : > { %p2036_p7 = scmp.ge.s32.totalorder %s2406_s20, 1  ;;  %p340_p8 = scmp.lt.s32.totalorder %s2406_s20, 3 }
   0xe   : > { %p341_p9 = pnand %p2036_p7, %p340_p8 }
  0x10   : > { %344 = sbr.rel (%p341_p9) target bundleno = 1046 (0x416), region = 64 }
  0x17   : > { %v436_v0 = vld [vmem:[%s3377_s1 + $0x8] sm:$0xff]  ;;  %v438_v1 = vld [vmem:[%s3377_s1 + $0x18] sm:$0xff]  ;;  %v435_v2 = vld [vmem:[%s3377_s1] sm:$0xff]  ;;  %v2408_v7 = vmov 0.0   ;;  %p380_p10 = scmp.lt.s32.totalorder %s2493_s21, 1  ;;  %s3400_s0 = sld [smem:[#allocation20_spill]] }
  0x18   : > { %v2529_v3 = vpack.c.bf16 %v438_v1, %v436_v0  ;;  %v437_v4 = vld [vmem:[%s3377_s1 + $0x10] sm:$0xff]  ;;  %v440_v5 = vld [vmem:[%s3377_s1 + $0x28] sm:$0xff]  ;;  %v442_v6 = vld [vmem:[%s3377_s1 + $0x38] sm:$0xff]  ;;  %534 = vmatprep.mubr.f32.mxu0 %v2408_v7  ;;  %387 = vst [vmem:[#allocation2 + $0x10] sm:$0x3f] %v2408_v7  ;;  %996 = vmatprep.mubr.f32.mxu1 %v2408_v7  ;;  %vm463_vm0 = vcmask 523264  }
  0x19   : > { %388 = vst [vmem:[#allocation2 + $0x18] sm:$0x3f] %v2408_v7  ;;  %389 = vst [vmem:[#allocation2 + $0x20] sm:$0x3f] %v2408_v7  ;;  %v2160_v8 = vpack.c.bf16 %v437_v4, %v435_v2  ;;  %v2162_v9 = vpack.c.bf16 %v442_v6, %v440_v5  ;;  %v439_v10 = vld [vmem:[%s3377_s1 + $0x20] sm:$0xff]  ;;  %v441_v11 = vld [vmem:[%s3377_s1 + $0x30] sm:$0xff] }
  0x1a   : > { %390 = vst [vmem:[#allocation2 + $0x28] sm:$0x3f] %v2408_v7  ;;  %391 = vst [vmem:[#allocation2 + $0x30] sm:$0x3f] %v2408_v7  ;;  %v444_v12 = vld [vmem:[%s3377_s1 + $0x48] sm:$0xff]  ;;  %2159 = vmatprep.subr.bf16.mxu0 %v2529_v3  ;;  %v446_v13 = vld [vmem:[%s3377_s1 + $0x58] sm:$0xff]  ;;  %2207 = vmatprep.subr.bf16.mxu1 %v2529_v3  ;;  %v2164_v14 = vpack.c.bf16 %v441_v11, %v439_v10 }
  0x1b   : > { %392 = vst [vmem:[#allocation2 + $0x38] sm:$0x3f] %v2408_v7  ;;  %393 = vst [vmem:[#allocation2 + $0x40] sm:$0x3f] %v2408_v7  ;;  %2161 = vmatpush1.bf16.msra.mxu0 %v2160_v8  ;;  %2209 = vmatpush1.bf16.msra.mxu1 %v2160_v8  ;;  %v2166_v15 = vpack.c.bf16 %v446_v13, %v444_v12  ;;  %v443_v16 = vld [vmem:[%s3377_s1 + $0x40] sm:$0xff]  ;;  %v445_v17 = vld [vmem:[%s3377_s1 + $0x50] sm:$0xff] }
  0x1c   : > { %394 = vst [vmem:[#allocation2 + $0x48] sm:$0x3f] %v2408_v7  ;;  %399 = vst [vmem:[#allocation2 + $0x70] sm:$0x3f] %v2408_v7  ;;  %2163 = vmatprep.subr.bf16.mxu0 %v2162_v9  ;;  %2211 = vmatprep.subr.bf16.mxu1 %v2162_v9  ;;  %v448_v18 = vld [vmem:[%s3377_s1 + $0x68] sm:$0xff]  ;;  %v450_v19 = vld [vmem:[%s3377_s1 + $0x78] sm:$0xff]  ;;  %v2168_v20 = vpack.c.bf16 %v445_v17, %v443_v16 }
  0x1d   : > { %400 = vst [vmem:[#allocation2 + $0x78] sm:$0x3f] %v2408_v7  ;;  %401 = vst [vmem:[#allocation2 + $0x80] sm:$0x3f] %v2408_v7  ;;  %s381_s24 = scalar_select %p380_p10, %s2493_s21, 1  ;;  %v2170_v21 = vpack.c.bf16 %v450_v19, %v448_v18  ;;  %v447_v22 = vld [vmem:[%s3377_s1 + $0x60] sm:$0xff] }
  0x1e   : > { %402 = vst [vmem:[#allocation2 + $0x88] sm:$0x3f] %v2408_v7  ;;  %403 = vst [vmem:[#allocation2 + $0x90] sm:$0x3f] %v2408_v7  ;;  %v449_v23 = vld [vmem:[%s3377_s1 + $0x70] sm:$0xff]  ;;  %v1613_v33 = vld [vmem:[%s3381_s5 + $0x80] sm:$0xff] }
  0x1f   : > { %404 = vst [vmem:[#allocation2 + $0x98] sm:$0x3f] %v2408_v7  ;;  %405 = vst [vmem:[#allocation2 + $0xa0] sm:$0x3f] %v2408_v7  ;;  %2165 = vmatpush1.bf16.msra.mxu0 %v2164_v14  ;;  %2213 = vmatpush1.bf16.msra.mxu1 %v2164_v14  ;;  %s2083_s13 = sshll.u32 %s381_s24, 6  ;;  %v2172_v24 = vpack.c.bf16 %v449_v23, %v447_v22  ;;  %v1614_v34 = vld [vmem:[%s3381_s5 + $0x88] sm:$0xff] }
  0x20   : > { %406 = vst [vmem:[#allocation2 + $0xa8] sm:$0x3f] %v2408_v7  ;;  %409 = vst [vmem:[#allocation2 + $0xc0] sm:$0x3f] %v2408_v7  ;;  %2167 = vmatprep.subr.bf16.mxu0 %v2166_v15  ;;  %2215 = vmatprep.subr.bf16.mxu1 %v2166_v15  ;;  %s2617_s16 = scalar_lea.vmem %s3400_s0, %s2083_s13  ;;  %v1597_v35 = vld [vmem:[%s3381_s5] sm:$0xff]  ;;  %v2222_v36 = vpack.c.bf16 %v1614_v34, %v1613_v33  ;;  %v1598_v37 = vld [vmem:[%s3381_s5 + $0x8] sm:$0xff] }
  0x21   : > { %410 = vst [vmem:[#allocation2 + $0xc8] sm:$0x3f] %v2408_v7  ;;  %411 = vst [vmem:[#allocation2 + $0xd0] sm:$0x3f] %v2408_v7  ;;  %v433_v25 = vld [vmem:[%s2617_s16] sm:$0xff]  ;;  %v896_v26 = vld [vmem:[%s2617_s16 + $0x30] sm:$0xff]  ;;  %v2224_v40 = vpack.c.bf16 %v1598_v37, %v1597_v35 }
  0x22   : > { %412 = vst [vmem:[#allocation2 + $0xd8] sm:$0x3f] %v2408_v7  ;;  %413 = vst [vmem:[#allocation2 + $0xe0] sm:$0x3f] %v2408_v7  ;;  %v434_v27 = vld [vmem:[%s2617_s16 + $0x8] sm:$0xff]  ;;  %v897_v28 = vld [vmem:[%s2617_s16 + $0x38] sm:$0xff] }
  0x23   : > { %414 = vst [vmem:[#allocation2 + $0xe8] sm:$0x3f] %v2408_v7  ;;  %415 = vst [vmem:[#allocation2 + $0xf0] sm:$0x3f] %v2408_v7  ;;  %2169 = vmatpush1.bf16.msra.mxu0 %v2168_v20  ;;  %2217 = vmatpush1.bf16.msra.mxu1 %v2168_v20  ;;  %v588_v29 = vld [vmem:[%s2617_s16 + $0x10] sm:$0xff]  ;;  %v589_v30 = vld [vmem:[%s2617_s16 + $0x18] sm:$0xff] }
  0x24   : > { %416 = vst [vmem:[#allocation2 + $0xf8] sm:$0x3f] %v2408_v7  ;;  %417 = vst [vmem:[#allocation2 + $0x100] sm:$0x3f] %v2408_v7  ;;  %2171 = vmatprep.subr.bf16.mxu0 %v2170_v21  ;;  %2219 = vmatprep.subr.bf16.mxu1 %v2170_v21  ;;  %v742_v31 = vld [vmem:[%s2617_s16 + $0x20] sm:$0xff]  ;;  %v743_v32 = vld [vmem:[%s2617_s16 + $0x28] sm:$0xff] }
  0x25   : > { %418 = vst [vmem:[#allocation2 + $0x108] sm:$0x3f] %v2408_v7  ;;  %421 = vst [vmem:[#allocation2 + $0x120] sm:$0x3f] %v2408_v7  ;;  %v1615_v38 = vld [vmem:[%s3381_s5 + $0x90] sm:$0xff]  ;;  %v1616_v39 = vld [vmem:[%s3381_s5 + $0x98] sm:$0xff] }
  0x26   : > { %422 = vst [vmem:[#allocation2 + $0x128] sm:$0x3f] %v2408_v7  ;;  %423 = vst [vmem:[#allocation2 + $0x130] sm:$0x3f] %v2408_v7  ;;  %v2226_v41 = vpack.c.bf16 %v1616_v39, %v1615_v38  ;;  %v1599_v42 = vld [vmem:[%s3381_s5 + $0x10] sm:$0xff]  ;;  %v1600_v43 = vld [vmem:[%s3381_s5 + $0x18] sm:$0xff] }
  0x27   : > { %424 = vst [vmem:[#allocation2 + $0x138] sm:$0x3f] %v2408_v7  ;;  %425 = vst [vmem:[#allocation2 + $0x140] sm:$0x3f] %v2408_v7  ;;  %2173 = vmatpush1.bf16.msra.mxu0 %v2172_v24  ;;  %2221 = vmatpush1.bf16.msra.mxu1 %v2172_v24  ;;  %v1617_v44 = vld [vmem:[%s3381_s5 + $0xa0] sm:$0xff]  ;;  %v1618_v45 = vld [vmem:[%s3381_s5 + $0xa8] sm:$0xff]  ;;  %v2228_v46 = vpack.c.bf16 %v1600_v43, %v1599_v42 }
  0x28   : > { %426 = vst [vmem:[#allocation2 + $0x148] sm:$0x3f] %v2408_v7  ;;  %427 = vst [vmem:[#allocation2 + $0x150] sm:$0x3f] %v2408_v7  ;;  %2175 = vmatprep.subr.bf16.mxu0 %v2529_v3  ;;  %v2230_v47 = vpack.c.bf16 %v1618_v45, %v1617_v44  ;;  %v1601_v48 = vld [vmem:[%s3381_s5 + $0x20] sm:$0xff]  ;;  %v1602_v49 = vld [vmem:[%s3381_s5 + $0x28] sm:$0xff] }
  0x29   : > { %428 = vst [vmem:[#allocation2 + $0x158] sm:$0x3f] %v2408_v7  ;;  %429 = vst [vmem:[#allocation2 + $0x160] sm:$0x3f] %v2408_v7  ;;  %v1619_v50 = vld [vmem:[%s3381_s5 + $0xb0] sm:$0xff]  ;;  %v1620_v51 = vld [vmem:[%s3381_s5 + $0xb8] sm:$0xff]  ;;  %v2232_v52 = vpack.c.bf16 %v1602_v49, %v1601_v48 }
  0x2a   : > { %430 = vst [vmem:[#allocation2 + $0x168] sm:$0x3f] %v2408_v7  ;;  %2040 = vmatmul.mubr.msk.f32.vlgmr.msra.gmra.mrb[0].mxu0 %vm463_vm0, %v433_v25  ;;  %2058 = vmatmul.mubr.msk.f32.vlgmr.msra.gmra.mrb[0].mxu1 %vm463_vm0, %v896_v26  ;;  %v2234_v53 = vpack.c.bf16 %v1620_v51, %v1619_v50  ;;  %v1603_v54 = vld [vmem:[%s3381_s5 + $0x30] sm:$0xff]  ;;  %v1604_v55 = vld [vmem:[%s3381_s5 + $0x38] sm:$0xff]  ;;  %v1621_v56 = vld [vmem:[%s3381_s5 + $0xc0] sm:$0xff]  ;;  %s377_s12 = sand.u32 1, %s2398_s18  }
  0x2b   : > { %2177 = vmatpush1.bf16.msra.mxu0 %v2160_v8  ;;  %540 = vmatprep.mubr.f32.mxu0 %v2408_v7  ;;  %v1622_v57 = vld [vmem:[%s3381_s5 + $0xc8] sm:$0xff]  ;;  %v2236_v58 = vpack.c.bf16 %v1604_v55, %v1603_v54  ;;  %v1605_v60 = vld [vmem:[%s3381_s5 + $0x40] sm:$0xff]  ;;  %v1623_v62 = vld [vmem:[%s3381_s5 + $0xd0] sm:$0xff]  ;;  %s2037_s13 = sshll.u32 %s377_s12, 4  ;;  %s2084_s22 = sshll.u32 %s2493_s21, 8 }
  0x2c   : > { %2179 = vmatprep.subr.bf16.mxu0 %v2162_v9  ;;  %1002 = vmatprep.mubr.f32.mxu1 %v2408_v7  ;;  %v2238_v59 = vpack.c.bf16 %v1622_v57, %v1621_v56  ;;  %v1606_v61 = vld [vmem:[%s3381_s5 + $0x48] sm:$0xff]  ;;  %v1624_v63 = vld [vmem:[%s3381_s5 + $0xd8] sm:$0xff]  ;;  %v1607_v2 = vld [vmem:[%s3381_s5 + $0x50] sm:$0xff]  ;;  %s379_s0 = scalar_lea.vmem [#allocation3], %s2037_s13  ;;  %s3333_s29 = scalar_lea.hbm %s3387_s11, %s2084_s22 }
  0x2d   : > { %v2240_v0 = vpack.c.bf16 %v1606_v61, %v1605_v60  ;;  %v2242_v1 = vpack.c.bf16 %v1624_v63, %v1623_v62  ;;  %v1625_v4 = vld [vmem:[%s3381_s5 + $0xe0] sm:$0xff]  ;;  %v1626_v5 = vld [vmem:[%s3381_s5 + $0xe8] sm:$0xff]  ;;  %v1627_v10 = vld [vmem:[%s3381_s5 + $0xf0] sm:$0xff]  ;;  %s1971_s16 = sshll.u32 %s379_s0, 4  ;;  %s3335_s30 = scalar_lea.sflag [#allocation4], %s377_s12  ;;  %s3328_s16 = int_to_ptr.vmem [resolvable:$true] %s1971_s16 }
  0x2e   : > { %2041 = vmatmul.mubr.msk.f32.gmra.mrb[2].mxu0 %vm463_vm0, %v434_v27  ;;  %2059 = vmatmul.mubr.msk.f32.gmra.mrb[2].mxu1 %vm463_vm0, %v897_v28  ;;  %v1628_v11 = vld [vmem:[%s3381_s5 + $0xf8] sm:$0xff]  ;;  %v1702_v17 = vld [vmem:[%s3383_s7 + $0x8] sm:$0xff]  ;;  %v1701_v19 = vld [vmem:[%s3383_s7] sm:$0xff]  ;;  %s2344_s13 = scalar_lea.vmem %s3328_s16, 256  ;;  %s2409_s21 = smov [#allocation3]  }
  0x2f   : > { %2181 = vmatpush1.bf16.msra.mxu0 %v2164_v14  ;;  %688 = vmatprep.mubr.f32.mxu0 %v2408_v7  ;;  %v2250_v13 = vpack.c.bf16 %v1628_v11, %v1627_v10  ;;  %v1704_v18 = vld [vmem:[%s3383_s7 + $0x18] sm:$0xff]  ;;  %v1706_v22 = vld [vmem:[%s3383_s7 + $0x28] sm:$0xff]  ;;  %v1705_v26 = vld [vmem:[%s3383_s7 + $0x20] sm:$0xff]  ;;  %p2345_p11 = scmp.ne.s32.totalorder %s3328_s16, %s2344_s13  ;;  %s2348_s14 = sshll.u32 %s2409_s21, 4  ;;  %s2349_s14 = int_to_ptr.vmem [resolvable:$false] %s2348_s14 }
  0x30   : > { %2183 = vmatprep.subr.bf16.mxu0 %v2166_v15  ;;  %1796 = vmatprep.mubr.f32.mxu1 %v2408_v7  ;;  %v1708_v23 = vld [vmem:[%s3383_s7 + $0x38] sm:$0xff]  ;;  %v1707_v27 = vld [vmem:[%s3383_s7 + $0x30] sm:$0xff]  ;;  %v1059_v35 = vld [vmem:[%s3379_s3] ss:$8 sm:$0x3]  ;;  %s2350_s15 = scalar_lea.vmem %s2349_s14, 512  ;;  %p2351_p0 = scmp.lt.s32.totalorder %s3328_s16, %s2349_s14 }
  0x31   : > { %v2258_v25 = vpack.c.bf16 %v1708_v23, %v1706_v22  ;;  %v2260_v28 = vpack.c.bf16 %v1707_v27, %v1705_v26  ;;  %v2065_v38 = vld [vmem:[%s3379_s3 + $0x2] ss:$8 sm:$0x3]  ;;  %v451_v39 = vld [vmem:[%s3378_s2] sm:$0x3]  ;;  %p2346_p12 = pnand %p2345_p11, %p2510_p5  ;;  %p2352_p1 = scmp.lt.s32.totalorder %s2350_s15, %s2344_s13 }
  0x32   : > { %v606_v44 = vld [vmem:[%s3378_s2] sm:$0x3]  ;;  %v1052_v45 = vld [vmem:[#allocation2 + $0x128] sm:$0xf] }
  0x33   : > { %2185 = vmatpush1.bf16.msra.mxu0 %v2168_v20  ;;  %v1150_v50 = vld [vmem:[#allocation2 + $0x128] sm:$0x1e]  ;;  %v1051_v55 = vld [vmem:[#allocation2 + $0x120] sm:$0xf]  ;;  %p2347_p13 = pneg %p2346_p12  ;;  %p2353_p2 = por %p2352_p1, %p2351_p0 }
  0x34   : > { %2187 = vmatprep.subr.bf16.mxu0 %v2170_v21  ;;  %v2067_v51 = vld [vmem:[%s3379_s3 + $0x4] ss:$8 sm:$0x3] }
  0x35   : > { %p2354_p3 = pnand %p2353_p2, %p2347_p13 }
  0x37   : > { %2189 = vmatpush1.bf16.msra.mxu0 %v2172_v24 }
  0x38   : > { %2191 = vmatprep.subr.bf16.mxu0 %v2529_v3  ;;  %v1608_v3 = vld [vmem:[%s3381_s5 + $0x58] sm:$0xff] }
  0x39   : > { %v2244_v6 = vpack.c.bf16 %v1608_v3, %v1607_v2 }
  0x3a   : > { %2046 = vmatmul.mubr.msk.f32.vlgmr.msra.gmra.mrb[4].mxu0 %vm463_vm0, %v588_v29  ;;  %v453_v29 = vlaneseq }
  0x3b   : > { %2193 = vmatpush1.bf16.msra.mxu0 %v2160_v8  ;;  %694 = vmatprep.mubr.f32.mxu0 %v2408_v7  ;;  %v1609_v8 = vld [vmem:[%s3381_s5 + $0x60] sm:$0xff] }
  0x3c   : > { %2195 = vmatprep.subr.bf16.mxu0 %v2162_v9  ;;  %v1610_v9 = vld [vmem:[%s3381_s5 + $0x68] sm:$0xff] }
  0x3d   : > { %v2248_v12 = vpack.c.bf16 %v1610_v9, %v1609_v8 }
  0x3e   : > { %2047 = vmatmul.mubr.msk.f32.gmra.mrb[6].mxu0 %vm463_vm0, %v589_v30  ;;  %v454_v30 = vshrl.u32 %v453_v29, 7 }
  0x3f   : > { %2197 = vmatpush1.bf16.msra.mxu0 %v2164_v14  ;;  %842 = vmatprep.mubr.f32.mxu0 %v2408_v7  ;;  %v1611_v14 = vld [vmem:[%s3381_s5 + $0x70] sm:$0xff] }
  0x40   : > { %2199 = vmatprep.subr.bf16.mxu0 %v2166_v15  ;;  %v1612_v15 = vld [vmem:[%s3381_s5 + $0x78] sm:$0xff]  ;;  %v2769_v33 = vsub.s32 0, %v454_v30 }
  0x41   : > { %v2252_v16 = vpack.c.bf16 %v1612_v15, %v1611_v14  ;;  %v1149_v14 = vld [vmem:[#allocation2 + $0x120] sm:$0x1e] }
  0x42   : > { %3402 = vst [vmem:[#allocation7_spill] sm:$0xff] %v2769_v33  ;;  %v2802_v49 = vrot.slane %v1059_v35, %v2769_v33  ;;  %v2813_v56 = vrot.slane %v606_v44, %v2769_v33  ;;  %v2823_v63 = vrot.slane %v2065_v38, %v2769_v33  ;;  %v2832_v2 = vrot.slane %v2067_v51, %v2769_v33 }
  0x43   : > { %2201 = vmatpush1.bf16.msra.mxu0 %v2168_v20  ;;  %v2254_v20 = vpack.c.bf16 %v1704_v18, %v1702_v17 }
  0x44   : > { %2203 = vmatprep.subr.bf16.mxu0 %v2170_v21  ;;  %v1703_v21 = vld [vmem:[%s3383_s7 + $0x10] sm:$0xff]  ;;  %v1071_v8 = vmul.f32 %v2802_v49, %v1051_v55 }
  0x45   : > { %2255 = vmatprep.subr.bf16.mxu1 %v2254_v20 }
  0x47   : > { %2205 = vmatpush1.bf16.msra.mxu0 %v2172_v24  ;;  %v2256_v24 = vpack.c.bf16 %v1703_v21, %v1701_v19 }
  0x48   : > { %2223 = vmatprep.subr.bf16.mxu0 %v2222_v36  ;;  %v1089_v36 = vld [vmem:[#allocation2 + $0xc8] sm:$0x1e] }
  0x49   : > { %2257 = vmatpush1.bf16.msra.mxu1 %v2256_v24 }
  0x4a   : > { %2052 = vmatmul.mubr.msk.f32.vlgmr.msra.gmra.mrb[8].mxu0 %vm463_vm0, %v742_v31  ;;  %2259 = vmatprep.subr.bf16.mxu1 %v2258_v25  ;;  %v2064_v31 = vld [vmem:[%s3379_s3 + $0x1] ss:$8 sm:$0x3] }
  0x4b   : > { %848 = vmatprep.mubr.f32.mxu0 %v2408_v7  ;;  %2225 = vmatpush3.bf16.msra.mxu0 %v2224_v40  ;;  %v2246_v7 = vpack.c.bf16 %v1626_v5, %v1625_v4  ;;  %v2778_v37 = vrot.slane %v2064_v31, %v2769_v33  ;;  %v914_v40 = vld [vmem:[%s3378_s2] sm:$0x3] }
  0x4c   : > { %2227 = vmatprep.subr.bf16.mxu0 %v2226_v41  ;;  %v1088_v41 = vld [vmem:[#allocation2 + $0xc0] sm:$0x1e]  ;;  %v919_v48 = vrot.slane %v914_v40, %v2769_v33 }
  0x4d   : > { %2261 = vmatpush1.bf16.msra.mxu1 %v2260_v28 }
  0x4e   : > { %2053 = vmatmul.mubr.msk.f32.gmra.mrb[10].mxu0 %vm463_vm0, %v743_v32  ;;  %v2767_v32 = vsub.s32 1, %v454_v30  ;;  %v1170_v30 = vmul.f32 %v2823_v63, %v1149_v14 }
  0x4f   : > { %2229 = vmatpush3.bf16.msra.mxu0 %v2228_v46 }
  0x50   : > { %2231 = vmatprep.subr.bf16.mxu0 %v2230_v47  ;;  %3401 = vst [vmem:[#allocation6_spill] sm:$0xff] %v2767_v32  ;;  %v2772_v34 = vrot.slane %v2064_v31, %v2767_v32  ;;  %v2790_v42 = vrot.slane %v1059_v35, %v2767_v32  ;;  %v2797_v46 = vrot.slane %v2065_v38, %v2767_v32 }
  0x51   : > { %v456_v47 = vrot.slane %v451_v39, %v2769_v33  ;;  %v2810_v54 = vrot.slane %v914_v40, %v2767_v32  ;;  %v2816_v57 = vrot.slane %v606_v44, %v2767_v32  ;;  %v2835_v3 = vrot.slane %v2067_v51, %v2767_v32 }
  0x52   : > { %v1110_v43 = vmul.f32 %v2772_v34, %v1089_v36 }
  0x53   : > { %2233 = vmatpush3.bf16.msra.mxu0 %v2232_v52  ;;  %v1109_v52 = vmul.f32 %v2778_v37, %v1088_v41 }
  0x54   : > { %2235 = vmatprep.subr.bf16.mxu0 %v2234_v53  ;;  %v460_v53 = vrot.slane %v451_v39, %v2767_v32  ;;  %v1126_v60 = vrot.slane %v1110_v43, 1 }
  0x55   : > { %v1125_v9 = vrot.slane %v1109_v52, 1 }
  0x57   : > { %2237 = vmatpush3.bf16.msra.mxu0 %v2236_v58  ;;  %v760_v58 = vld [vmem:[%s3378_s2] sm:$0x3]  ;;  %v1141_v29 = vadd.f32 %v1125_v9, %v1071_v8  ;;  %v2069_v9 = vld [vmem:[%s3379_s3 + $0x6] ss:$8 sm:$0x3] }
  0x58   : > { %2239 = vmatprep.subr.bf16.mxu0 %v2238_v59  ;;  %v1072_v59 = vmul.f32 %v2790_v42, %v1052_v45 }
  0x5a   : > { %v2845_v17 = vadd.f32 %v1126_v60, %v1072_v59 }
  0x5b   : > { %2241 = vmatpush3.bf16.msra.mxu0 %v2240_v0  ;;  %v2826_v0 = vmul.f32 %v2797_v46, %v1150_v50 }
  0x5c   : > { %2243 = vmatprep.subr.bf16.mxu0 %v2242_v1  ;;  %v2066_v1 = vld [vmem:[%s3379_s3 + $0x3] ss:$8 sm:$0x3] }
  0x5d   : > { %v2848_v18 = vrot.slane %v2066_v1, %v2769_v33  ;;  %v1187_v23 = vrot.slane %v2826_v0, 1  ;;  %v2852_v24 = vrot.slane %v2066_v1, %v2767_v32 }
  0x5f   : > { %2245 = vmatpush3.bf16.msra.mxu0 %v2244_v6 }
  0x60   : > { %2247 = vmatprep.subr.bf16.mxu0 %v2246_v7 }
  0x63   : > { %2249 = vmatpush3.bf16.msra.mxu0 %v2248_v12  ;;  %v2840_v12 = vrot.slane %v760_v58, %v2769_v33 }
  0x64   : > { %2251 = vmatprep.subr.bf16.mxu0 %v2250_v13  ;;  %v2843_v13 = vrot.slane %v760_v58, %v2767_v32  ;;  %v2068_v58 = vld [vmem:[%s3379_s3 + $0x5] ss:$8 sm:$0x3] }
  0x65   : > { %v2860_v8 = vrot.slane %v2068_v58, %v2769_v33 }
  0x67   : > { %2253 = vmatpush3.bf16.msra.mxu0 %v2252_v16 }
  0xfd   : > { %v536_v61 = vpop.f32.mrb[0].mxu0  ;;  %v998_v62 = vpop.f32.mrb[0].mxu1 }
  0xfe   : > { %v537_v4 = vadd.f32 %v536_v61, %v456_v47  ;;  %v538_v5 = vpop.f32.mrb[1].mxu0  ;;  %v999_v6 = vadd.f32 %v998_v62, %v919_v48  ;;  %v1000_v7 = vpop.f32.mrb[1].mxu1  ;;  %v1186_v61 = vrot.slane %v1170_v30, 1 }
  0xff   : > { %v539_v10 = vadd.f32 %v538_v5, %v460_v53  ;;  %v1001_v11 = vadd.f32 %v1000_v7, %v2810_v54 }
 0x100   : > { %v547_v15 = vmax.f32 %v537_v4, 0.0  ;;  %v1009_v16 = vmax.f32 %v999_v6, 0.0  ;;  %v2883_v30 = vadd.f32 %v1186_v61, %v1141_v29 }
 0x101   : > { %v548_v19 = vmax.f32 %v539_v10, 0.0  ;;  %v542_v20 = vpop.f32.mrb[2].mxu0  ;;  %v1010_v21 = vmax.f32 %v1001_v11, 0.0  ;;  %v1004_v22 = vpop.f32.mrb[2].mxu1 }
 0x102   : > { %v543_v25 = vadd.f32 %v542_v20, %v456_v47  ;;  %v544_v26 = vpop.f32.mrb[3].mxu0  ;;  %v1005_v27 = vadd.f32 %v1004_v22, %v919_v48  ;;  %v1006_v28 = vpop.f32.mrb[3].mxu1  ;;  %v2869_v22 = vadd.f32 %v1187_v23, %v2845_v17 }
 0x103   : > { %v555_v31 = vcombine.low %v547_v15, %v548_v19  ;;  %v556_v35 = vcombine.high %v547_v15, %v548_v19  ;;  %v2042_v36 = vcombine.low %v548_v19, %v548_v19  ;;  %v2043_v38 = vcombine.high %v548_v19, %v548_v19 }
 0x104   : > { %v549_v39 = vmax.f32 %v543_v25, 0.0  ;;  %v545_v40 = vadd.f32 %v544_v26, %v460_v53  ;;  %v1017_v41 = vcombine.low %v1009_v16, %v1010_v21  ;;  %v1018_v43 = vcombine.high %v1009_v16, %v1010_v21 }
 0x105   : > { %v563_v44 = vrot.slane %v555_v31, 7  ;;  %v564_v45 = vrot.slane %v2042_v36, 7  ;;  %v565_v50 = vrot.slane %v556_v35, 7  ;;  %v566_v51 = vrot.slane %v2043_v38, 7 }
 0x106   : > { %v550_v52 = vmax.f32 %v545_v40, 0.0  ;;  %v2060_v47 = vcombine.low %v1010_v21, %v1010_v21  ;;  %v2061_v55 = vcombine.high %v1010_v21, %v1010_v21  ;;  %v1025_v48 = vrot.slane %v1017_v41, 7  ;;  %v2070_v21 = vld [vmem:[%s3379_s3 + $0x7] ss:$8 sm:$0x3] }
 0x107   : > { %580 = vst [vmem:[#allocation2 + $0x10] sm:$0x1e] %v563_v44  ;;  %581 = vst [vmem:[#allocation2 + $0x18] sm:$0x1e] %v564_v45  ;;  %v1027_v59 = vrot.slane %v1018_v43, 7  ;;  %v1011_v53 = vmax.f32 %v1005_v27, 0.0  ;;  %v1007_v60 = vadd.f32 %v1006_v28, %v2810_v54  ;;  %v2872_v25 = vrot.slane %v2068_v58, %v2767_v32 }
 0x108   : > { %582 = vst [vmem:[#allocation2 + $0x20] sm:$0x1e] %v565_v50  ;;  %583 = vst [vmem:[#allocation2 + $0x28] sm:$0x1e] %v566_v51  ;;  %v557_v62 = vcombine.low %v549_v39, %v550_v52  ;;  %v558_v0 = vcombine.high %v549_v39, %v550_v52  ;;  %v2044_v1 = vcombine.low %v550_v52, %v550_v52  ;;  %v1026_v5 = vrot.slane %v2060_v47, 7 }
 0x109   : > { %v2045_v4 = vcombine.high %v550_v52, %v550_v52  ;;  %1042 = vst [vmem:[#allocation2 + $0x130] sm:$0x1e] %v1025_v48  ;;  %v1028_v6 = vrot.slane %v2061_v55, 7  ;;  %1044 = vst [vmem:[#allocation2 + $0x140] sm:$0x1e] %v1027_v59  ;;  %v1012_v7 = vmax.f32 %v1007_v60, 0.0  ;;  %v2875_v26 = vrot.slane %v2069_v9, %v2769_v33 }
 0x10a   : > { %v567_v10 = vrot.slane %v557_v62, 7  ;;  %v568_v11 = vrot.slane %v2044_v1, 7  ;;  %v569_v54 = vrot.slane %v558_v0, 7  ;;  %1043 = vst [vmem:[#allocation2 + $0x138] sm:$0x1e] %v1026_v5  ;;  %v2887_v43 = vrot.slane %v2069_v9, %v2767_v32 }
 0x10b   : > { %v570_v14 = vrot.slane %v2045_v4, 7  ;;  %1045 = vst [vmem:[#allocation2 + $0x148] sm:$0x1e] %v1028_v6  ;;  %v1019_v15 = vcombine.low %v1011_v53, %v1012_v7  ;;  %v1020_v16 = vcombine.high %v1011_v53, %v1012_v7  ;;  %v2062_v19 = vcombine.low %v1012_v7, %v1012_v7  ;;  %v2071_v27 = vld [vmem:[%s3379_s3 + $0x10] ss:$8 sm:$0x3] }
 0x10c   : > { %v2063_v20 = vcombine.high %v1012_v7, %v1012_v7  ;;  %584 = vst [vmem:[#allocation2 + $0x30] sm:$0x1e] %v567_v10  ;;  %585 = vst [vmem:[#allocation2 + $0x38] sm:$0x1e] %v568_v11  ;;  %v1528_v28 = vld [vmem:[%s3380_s4] sm:$0x3]  ;;  %v2890_v44 = vrot.slane %v2070_v21, %v2769_v33  ;;  %v2893_v45 = vrot.slane %v2070_v21, %v2767_v32 }
 0x10d   : > { %586 = vst [vmem:[#allocation2 + $0x40] sm:$0x1e] %v569_v54  ;;  %587 = vst [vmem:[#allocation2 + $0x48] sm:$0x1e] %v570_v14  ;;  %v690_v31 = vpop.f32.mrb[4].mxu0  ;;  %v1029_v35 = vrot.slane %v1019_v15, 7  ;;  %v2903_v52 = vrot.slane %v2071_v27, %v2769_v33  ;;  %v2906_v59 = vrot.slane %v2071_v27, %v2767_v32  ;;  %v2909_v53 = vrot.slane %v1528_v28, %v2769_v33 }
 0x10e   : > { %v1030_v17 = vrot.slane %v2062_v19, 7  ;;  %v1031_v23 = vrot.slane %v1020_v16, 7  ;;  %v1032_v36 = vrot.slane %v2063_v20, 7  ;;  %v691_v38 = vadd.f32 %v690_v31, %v2813_v56  ;;  %v692_v39 = vpop.f32.mrb[5].mxu0  ;;  %v1248_v40 = vld [vmem:[#allocation2 + $0x18] sm:$0x1e] }
 0x10f   : > { %v1250_v41 = vld [vmem:[#allocation2 + $0x28] sm:$0x1e]  ;;  %v693_v29 = vadd.f32 %v692_v39, %v2816_v57  ;;  %1046 = vst [vmem:[#allocation2 + $0x150] sm:$0x1e] %v1029_v35  ;;  %v2897_v50 = vmul.f32 %v2835_v3, %v1248_v40  ;;  %v1247_v48 = vld [vmem:[#allocation2 + $0x10] sm:$0x1e]  ;;  %v2915_v1 = vrot.slane %v1528_v28, %v2767_v32 }
 0x110   : > { %1047 = vst [vmem:[#allocation2 + $0x158] sm:$0x1e] %v1030_v17  ;;  %1048 = vst [vmem:[#allocation2 + $0x160] sm:$0x1e] %v1031_v23  ;;  %v2900_v51 = vmul.f32 %v2835_v3, %v1250_v41  ;;  %v1053_v47 = vld [vmem:[#allocation2 + $0x130] sm:$0xf]  ;;  %v2921_v6 = vmul.f32 %v2832_v2, %v1247_v48 }
 0x111   : > { %1049 = vst [vmem:[#allocation2 + $0x168] sm:$0x1e] %v1032_v36  ;;  %v1151_v55 = vld [vmem:[#allocation2 + $0x130] sm:$0x1e]  ;;  %v701_v58 = vmax.f32 %v691_v38, 0.0  ;;  %3403 = vst [vmem:[#allocation8_spill] sm:$0xff] %v2909_v53  ;;  %v2918_v4 = vmul.f32 %v2802_v49, %v1053_v47 }
 0x112   : > { %v1055_v60 = vld [vmem:[#allocation2 + $0x140] sm:$0xf]  ;;  %v2912_v61 = vmul.f32 %v2823_v63, %v1151_v55  ;;  %v702_v62 = vmax.f32 %v693_v29, 0.0  ;;  %v696_v0 = vpop.f32.mrb[6].mxu0  ;;  %3404 = vst [vmem:[#allocation9_spill] sm:$0xff] %v2915_v1 }
 0x113   : > { %v1153_v5 = vld [vmem:[#allocation2 + $0x140] sm:$0x1e]  ;;  %v697_v7 = vadd.f32 %v696_v0, %v2813_v56  ;;  %v698_v9 = vpop.f32.mrb[7].mxu0  ;;  %v2927_v54 = vmul.f32 %v2802_v49, %v1055_v60  ;;  %v1054_v21 = vld [vmem:[#allocation2 + $0x138] sm:$0xf] }
 0x114   : > { %v1249_v14 = vld [vmem:[#allocation2 + $0x20] sm:$0x1e]  ;;  %v709_v15 = vcombine.low %v701_v58, %v702_v62  ;;  %v710_v16 = vcombine.high %v701_v58, %v702_v62  ;;  %v2048_v19 = vcombine.low %v702_v62, %v702_v62  ;;  %v2049_v20 = vcombine.high %v702_v62, %v702_v62  ;;  %v1152_v27 = vld [vmem:[#allocation2 + $0x138] sm:$0x1e]  ;;  %v1154_v28 = vld [vmem:[#allocation2 + $0x148] sm:$0x1e] }
 0x115   : > { %v703_v31 = vmax.f32 %v697_v7, 0.0  ;;  %v699_v35 = vadd.f32 %v698_v9, %v2816_v57  ;;  %v1252_v56 = vld [vmem:[#allocation2 + $0x38] sm:$0x1e]  ;;  %v1254_v17 = vld [vmem:[#allocation2 + $0x48] sm:$0x1e]  ;;  %v2931_v23 = vmul.f32 %v2823_v63, %v1153_v5  ;;  %v2935_v48 = vmul.f32 %v2797_v46, %v1152_v27 }
 0x116   : > { %v717_v38 = vrot.slane %v709_v15, 7  ;;  %v718_v39 = vrot.slane %v2048_v19, 7  ;;  %v719_v40 = vrot.slane %v710_v16, 7  ;;  %v720_v41 = vrot.slane %v2049_v20, 7  ;;  %v1056_v29 = vld [vmem:[#allocation2 + $0x148] sm:$0xf] }
 0x117   : > { %v704_v47 = vmax.f32 %v699_v35, 0.0  ;;  %v1156_v55 = vld [vmem:[#allocation2 + $0x158] sm:$0x1e]  ;;  %v2938_v58 = vmul.f32 %v2797_v46, %v1154_v28  ;;  %v2941_v60 = vmul.f32 %v2832_v2, %v1249_v14  ;;  %v2944_v0 = vmul.f32 %v2790_v42, %v1054_v21  ;;  %v1372_v15 = vld [vmem:[#allocation2 + $0x148] sm:$0xf] }
 0x118   : > { %v1370_v57 = vld [vmem:[#allocation2 + $0x138] sm:$0xf]  ;;  %734 = vst [vmem:[#allocation2 + $0x70] sm:$0x1e] %v717_v38  ;;  %735 = vst [vmem:[#allocation2 + $0x78] sm:$0x1e] %v718_v39  ;;  %v2947_v5 = vmul.f32 %v2797_v46, %v1156_v55  ;;  %v2950_v7 = vmul.f32 %v2835_v3, %v1252_v56  ;;  %v2953_v9 = vmul.f32 %v2835_v3, %v1254_v17 }
 0x119   : > { %736 = vst [vmem:[#allocation2 + $0x80] sm:$0x1e] %v719_v40  ;;  %737 = vst [vmem:[#allocation2 + $0x88] sm:$0x1e] %v720_v41  ;;  %v1058_v62 = vld [vmem:[#allocation2 + $0x158] sm:$0xf]  ;;  %v711_v16 = vcombine.low %v703_v31, %v704_v47  ;;  %v712_v19 = vcombine.high %v703_v31, %v704_v47  ;;  %v2050_v20 = vcombine.low %v704_v47, %v704_v47 }
 0x11a   : > { %v1374_v14 = vld [vmem:[#allocation2 + $0x158] sm:$0xf]  ;;  %v2051_v27 = vcombine.high %v704_v47, %v704_v47  ;;  %v1376_v28 = vld [vmem:[#allocation2 + $0x168] sm:$0xf]  ;;  %v2956_v39 = vmul.f32 %v2790_v42, %v1056_v29  ;;  %v1057_v11 = vld [vmem:[#allocation2 + $0x150] sm:$0xf]  ;;  %v2962_v47 = vmul.f32 %v2790_v42, %v1058_v62  ;;  %v2967_v10 = vmul.f32 %v2887_v43, %v1370_v57 }
 0x11b   : > { %v1468_v35 = vld [vmem:[#allocation2 + $0x138] sm:$0x1e]  ;;  %v1470_v38 = vld [vmem:[#allocation2 + $0x148] sm:$0x1e]  ;;  %v721_v40 = vrot.slane %v711_v16, 7  ;;  %v722_v41 = vrot.slane %v2050_v20, 7  ;;  %v2970_v16 = vmul.f32 %v2887_v43, %v1372_v15 }
 0x11c   : > { %v1472_v21 = vld [vmem:[#allocation2 + $0x158] sm:$0x1e]  ;;  %v1474_v17 = vld [vmem:[#allocation2 + $0x168] sm:$0x1e]  ;;  %v723_v55 = vrot.slane %v712_v19, 7  ;;  %v724_v31 = vrot.slane %v2051_v27, 7  ;;  %v2973_v19 = vmul.f32 %v2887_v43, %v1374_v14  ;;  %v2976_v42 = vmul.f32 %v2906_v59, %v1468_v35 }
 0x11d   : > { %v1155_v46 = vld [vmem:[#allocation2 + $0x150] sm:$0x1e]  ;;  %738 = vst [vmem:[#allocation2 + $0x90] sm:$0x1e] %v721_v40  ;;  %739 = vst [vmem:[#allocation2 + $0x98] sm:$0x1e] %v722_v41  ;;  %v2979_v62 = vmul.f32 %v2906_v59, %v1470_v38  ;;  %v2982_v27 = vmul.f32 %v2887_v43, %v1376_v28  ;;  %v2985_v40 = vmul.f32 %v2906_v59, %v1472_v21 }
 0x11e   : > { %v1251_v56 = vld [vmem:[#allocation2 + $0x30] sm:$0x1e]  ;;  %740 = vst [vmem:[#allocation2 + $0xa0] sm:$0x1e] %v723_v55  ;;  %741 = vst [vmem:[#allocation2 + $0xa8] sm:$0x1e] %v724_v31  ;;  %v2988_v15 = vmul.f32 %v2906_v59, %v1474_v17  ;;  %v2991_v14 = vmul.f32 %v2802_v49, %v1057_v11  ;;  %v2995_v31 = vmul.f32 %v2823_v63, %v1155_v46 }
 0x11f   : > { %3405 = vst [vmem:[#allocation10_spill] sm:$0xff] %v2979_v62  ;;  %v1253_v57 = vld [vmem:[#allocation2 + $0x40] sm:$0x1e]  ;;  %v844_v20 = vpop.f32.mrb[8].mxu0  ;;  %3406 = vst [vmem:[#allocation11_spill] sm:$0xff] %v2982_v27  ;;  %v2999_v28 = vmul.f32 %v2832_v2, %v1251_v56 }
 0x120   : > { %3407 = vst [vmem:[#allocation12_spill] sm:$0xff] %v2985_v40  ;;  %3408 = vst [vmem:[#allocation13_spill] sm:$0xff] %v2988_v15  ;;  %v1369_v41 = vld [vmem:[#allocation2 + $0x130] sm:$0xf]  ;;  %v845_v35 = vadd.f32 %v844_v20, %v2840_v12  ;;  %v846_v55 = vpop.f32.mrb[9].mxu0  ;;  %v3005_v20 = vmul.f32 %v2832_v2, %v1253_v57 }
 0x121   : > { %v1211_v38 = vld [vmem:[#allocation2 + $0x78] sm:$0xf]  ;;  %v847_v21 = vadd.f32 %v846_v55, %v2843_v13  ;;  %v1311_v49 = vld [vmem:[#allocation2 + $0x88] sm:$0x1e]  ;;  %v1210_v3 = vld [vmem:[#allocation2 + $0x70] sm:$0xf]  ;;  %v3010_v56 = vmul.f32 %v2875_v26, %v1369_v41 }
 0x122   : > { %v1232_v59 = vmul.f32 %v2852_v24, %v1211_v38  ;;  %v1309_v17 = vld [vmem:[#allocation2 + $0x78] sm:$0x1e]  ;;  %v855_v29 = vmax.f32 %v845_v35, 0.0  ;;  %v850_v55 = vpop.f32.mrb[10].mxu0  ;;  %v1213_v43 = vld [vmem:[#allocation2 + $0x88] sm:$0xf]  ;;  %v3014_v32 = vmul.f32 %v2872_v25, %v1311_v49  ;;  %v1231_v41 = vmul.f32 %v2848_v18, %v1210_v3 }
 0x123   : > { %v1330_v63 = vmul.f32 %v2872_v25, %v1309_v17  ;;  %v856_v36 = vmax.f32 %v847_v21, 0.0  ;;  %v851_v57 = vadd.f32 %v850_v55, %v2840_v12  ;;  %v852_v35 = vpop.f32.mrb[11].mxu0  ;;  %v3023_v2 = vmul.f32 %v2852_v24, %v1213_v43 }
 0x124   : > { %v1240_v38 = vadd.f32 %v1232_v59, %v2869_v22  ;;  %v1215_v1 = vld [vmem:[#allocation2 + $0x98] sm:$0xf]  ;;  %v853_v49 = vadd.f32 %v852_v35, %v2843_v13  ;;  %v1212_v13 = vld [vmem:[#allocation2 + $0x80] sm:$0xf]  ;;  %v1214_v35 = vld [vmem:[#allocation2 + $0x90] sm:$0xf] }
 0x125   : > { %v863_v11 = vcombine.low %v855_v29, %v856_v36  ;;  %v864_v21 = vcombine.high %v855_v29, %v856_v36  ;;  %v2054_v33 = vcombine.low %v856_v36, %v856_v36  ;;  %v2055_v53 = vcombine.high %v856_v36, %v856_v36  ;;  %v1217_v22 = vld [vmem:[#allocation2 + $0xa8] sm:$0xf]  ;;  %v1313_v12 = vld [vmem:[#allocation2 + $0x98] sm:$0x1e] }
 0x126   : > { %v857_v59 = vmax.f32 %v851_v57, 0.0  ;;  %v1315_v55 = vld [vmem:[#allocation2 + $0xa8] sm:$0x1e]  ;;  %v1346_v27 = vrot.slane %v1330_v63, 1  ;;  %v858_v3 = vmax.f32 %v853_v49, 0.0  ;;  %v3026_v29 = vmul.f32 %v2852_v24, %v1215_v1 }
 0x127   : > { %v871_v17 = vrot.slane %v863_v11, 7  ;;  %v872_v15 = vrot.slane %v2054_v33, 7  ;;  %v873_v46 = vrot.slane %v864_v21, 7  ;;  %v874_v40 = vrot.slane %v2055_v53, 7  ;;  %v1216_v21 = vld [vmem:[#allocation2 + $0xa0] sm:$0xf] }
 0x128   : > { %v3409_v36 = vrot.slane %v2897_v50, 1  ;;  %v3032_v43 = vmul.f32 %v2852_v24, %v1217_v22  ;;  %v3035_v33 = vmul.f32 %v2872_v25, %v1313_v12  ;;  %v3038_v53 = vmul.f32 %v2872_v25, %v1315_v55  ;;  %v1310_v22 = vld [vmem:[#allocation2 + $0x80] sm:$0x1e]  ;;  %v1312_v25 = vld [vmem:[#allocation2 + $0x90] sm:$0x1e] }
 0x129   : > { %888 = vst [vmem:[#allocation2 + $0xd0] sm:$0x1e] %v871_v17  ;;  %889 = vst [vmem:[#allocation2 + $0xd8] sm:$0x1e] %v872_v15  ;;  %v1239_v50 = vadd.f32 %v1231_v41, %v2883_v30  ;;  %v865_v1 = vcombine.low %v857_v59, %v858_v3  ;;  %v866_v11 = vcombine.high %v857_v59, %v858_v3  ;;  %v1308_v17 = vld [vmem:[#allocation2 + $0x70] sm:$0x1e] }
 0x12a   : > { %v1301_v62 = vadd.f32 %v3409_v36, %v1240_v38  ;;  %890 = vst [vmem:[#allocation2 + $0xe0] sm:$0x1e] %v873_v46  ;;  %891 = vst [vmem:[#allocation2 + $0xe8] sm:$0x1e] %v874_v40  ;;  %v2056_v63 = vcombine.low %v858_v3, %v858_v3  ;;  %v2057_v38 = vcombine.high %v858_v3, %v858_v3  ;;  %v1284_v46 = vrot.slane %v2921_v6, 1 }
 0x12b   : > { %3410 = vst [vmem:[#allocation14_spill] sm:$0xff] %v3038_v53  ;;  %v3042_v40 = vmul.f32 %v2848_v18, %v1212_v13  ;;  %v3045_v24 = vmul.f32 %v2848_v18, %v1214_v35  ;;  %v1371_v49 = vld [vmem:[#allocation2 + $0x140] sm:$0xf]  ;;  %v1373_v12 = vld [vmem:[#allocation2 + $0x150] sm:$0xf]  ;;  %v875_v30 = vrot.slane %v865_v1, 7  ;;  %v3052_v13 = vmul.f32 %v2848_v18, %v1216_v21 }
 0x12c   : > { %v1362_v15 = vadd.f32 %v1346_v27, %v1301_v62  ;;  %v876_v41 = vrot.slane %v2056_v63, 7  ;;  %v877_v59 = vrot.slane %v866_v11, 7  ;;  %v878_v55 = vrot.slane %v2057_v38, 7  ;;  %v1314_v3 = vld [vmem:[#allocation2 + $0xa0] sm:$0x1e] }
 0x12d   : > { %v1375_v35 = vld [vmem:[#allocation2 + $0x160] sm:$0xf]  ;;  %v1467_v6 = vld [vmem:[#allocation2 + $0x130] sm:$0x1e]  ;;  %892 = vst [vmem:[#allocation2 + $0xf0] sm:$0x1e] %v875_v30  ;;  %v1300_v38 = vadd.f32 %v1284_v46, %v1239_v50  ;;  %v1329_v62 = vmul.f32 %v2860_v8, %v1308_v17  ;;  %v3062_v18 = vmul.f32 %v2860_v8, %v1312_v25  ;;  %v3065_v21 = vmul.f32 %v2860_v8, %v1314_v3 }
 0x12e   : > { %v1399_v27 = vadd.f32 %v2967_v10, %v1362_v15  ;;  %893 = vst [vmem:[#allocation2 + $0xf8] sm:$0x1e] %v876_v41  ;;  %894 = vst [vmem:[#allocation2 + $0x100] sm:$0x1e] %v877_v59  ;;  %v1469_v36 = vld [vmem:[#allocation2 + $0x140] sm:$0x1e]  ;;  %v3059_v10 = vmul.f32 %v2860_v8, %v1310_v22  ;;  %v3071_v50 = vmul.f32 %v2875_v26, %v1373_v12 }
 0x12f   : > { %895 = vst [vmem:[#allocation2 + $0x108] sm:$0x1e] %v878_v55  ;;  %v1471_v15 = vld [vmem:[#allocation2 + $0x150] sm:$0x1e]  ;;  %v3068_v55 = vmul.f32 %v2875_v26, %v1371_v49  ;;  %v3074_v17 = vmul.f32 %v2875_v26, %v1375_v35  ;;  %v3077_v46 = vmul.f32 %v2903_v52, %v1467_v6  ;;  %v3083_v49 = vmul.f32 %v2903_v52, %v1469_v36  ;;  %v1473_v6 = vld [vmem:[#allocation2 + $0x160] sm:$0x1e] }
 0x130   : > { %v1091_v30 = vld [vmem:[#allocation2 + $0xd8] sm:$0x1e]  ;;  %3412 = vst [vmem:[#allocation16_spill] sm:$0xff] %v3071_v50  ;;  %v1090_v63 = vld [vmem:[#allocation2 + $0xd0] sm:$0x1e] }
 0x131   : > { %v1093_v41 = vld [vmem:[#allocation2 + $0xe8] sm:$0x1e]  ;;  %v1407_v59 = vld [vmem:[#allocation2 + $0xd8] sm:$0x1e]  ;;  %3411 = vst [vmem:[#allocation15_spill] sm:$0xff] %v3068_v55  ;;  %3413 = vst [vmem:[#allocation17_spill] sm:$0xff] %v3074_v17  ;;  %v1112_v22 = vmul.f32 %v2772_v34, %v1091_v30  ;;  %v1111_v26 = vmul.f32 %v2778_v37, %v1090_v63  ;;  %v3091_v30 = vmul.f32 %v2903_v52, %v1471_v15 }
 0x132   : > { %3414 = vst [vmem:[#allocation18_spill] sm:$0xff] %v3077_v46  ;;  %v1114_v8 = vmul.f32 %v2772_v34, %v1093_v41  ;;  %v1409_v25 = vld [vmem:[#allocation2 + $0xe8] sm:$0x1e]  ;;  %v1428_v3 = vmul.f32 %v2893_v45, %v1407_v59  ;;  %v1092_v11 = vld [vmem:[#allocation2 + $0xe0] sm:$0x1e]  ;;  %3415 = vst [vmem:[#allocation19_spill] sm:$0xff] %v3083_v49  ;;  %v3098_v15 = vmul.f32 %v2903_v52, %v1473_v6 }
 0x133   : > { %v3086_v12 = vmul.f32 %v2893_v45, %v1409_v25  ;;  %v1113_v35 = vmul.f32 %v2778_v37, %v1092_v11  ;;  %v1128_v41 = vrot.slane %v1112_v22, 1  ;;  %v1345_v59 = vrot.slane %v1329_v62, 1 }
 0x134   : > { %v1130_v1 = vrot.slane %v1114_v8, 1  ;;  %v1444_v57 = vrot.slane %v1428_v3, 1  ;;  %v1127_v17 = vrot.slane %v1111_v26, 1  ;;  %v1347_v49 = vrot.slane %v3059_v10, 1  ;;  %v1094_v3 = vld [vmem:[#allocation2 + $0xf0] sm:$0x1e] }
 0x135   : > { %v1446_v46 = vrot.slane %v3086_v12, 1  ;;  %v1129_v36 = vrot.slane %v1113_v35, 1  ;;  %v1095_v25 = vld [vmem:[#allocation2 + $0xf8] sm:$0x1e]  ;;  %v1144_v50 = vadd.f32 %v1128_v41, %v2944_v0  ;;  %v3416_v0 = vrot.slane %v2935_v48, 1 }
 0x136   : > { %v1146_v63 = vadd.f32 %v1130_v1, %v2956_v39  ;;  %v1411_v11 = vld [vmem:[#allocation2 + $0xf8] sm:$0x1e]  ;;  %v1413_v55 = vld [vmem:[#allocation2 + $0x108] sm:$0x1e]  ;;  %v1460_v53 = vadd.f32 %v1444_v57, %v1399_v27  ;;  %v1116_v22 = vmul.f32 %v2772_v34, %v1095_v25  ;;  %v1143_v10 = vadd.f32 %v1127_v17, %v2918_v4 }
 0x137   : > { %v1432_v62 = vmul.f32 %v2893_v45, %v1411_v11  ;;  %v3103_v8 = vmul.f32 %v2893_v45, %v1413_v55  ;;  %v1205_v12 = vadd.f32 %v3416_v0, %v1144_v50  ;;  %v3417_v39 = vrot.slane %v2938_v58, 1  ;;  %v1410_v11 = vld [vmem:[#allocation2 + $0xf0] sm:$0x1e] }
 0x138   : > { %v1115_v57 = vmul.f32 %v2778_v37, %v1094_v3  ;;  %v1349_v52 = vrot.slane %v3062_v18, 1  ;;  %v1132_v27 = vrot.slane %v1116_v22, 1  ;;  %v3418_v34 = vrot.slane %v2976_v42, 1 }
 0x139   : > { %v1207_v1 = vadd.f32 %v3417_v39, %v1146_v63  ;;  %v1145_v45 = vadd.f32 %v1129_v36, %v2927_v54  ;;  %v1361_v55 = vadd.f32 %v1345_v59, %v1300_v38  ;;  %v1242_v35 = vadd.f32 %v3023_v2, %v1205_v12 }
 0x13a   : > { %v1521_v26 = vadd.f32 %v3418_v34, %v1460_v53  ;;  %v1448_v48 = vrot.slane %v1432_v62, 1  ;;  %v1131_v50 = vrot.slane %v1115_v57, 1  ;;  %v1148_v58 = vadd.f32 %v1132_v27, %v2962_v47  ;;  %v1406_v53 = vld [vmem:[#allocation2 + $0xd0] sm:$0x1e]  ;;  %v1408_v47 = vld [vmem:[#allocation2 + $0xe0] sm:$0x1e] }
 0x13b   : > { %v1244_v4 = vadd.f32 %v3026_v29, %v1207_v1  ;;  %v1450_v17 = vrot.slane %v3103_v8, 1  ;;  %v3419_v37 = vrot.slane %v2912_v61, 1  ;;  %v3420_v6 = vrot.slane %v2931_v23, 1  ;;  %v1412_v8 = vld [vmem:[#allocation2 + $0x100] sm:$0x1e] }
 0x13c   : > { %v3421_v54 = vrot.slane %v2900_v51, 1  ;;  %v3422_v2 = vrot.slane %v2950_v7, 1  ;;  %v1147_v29 = vadd.f32 %v1131_v50, %v2991_v14  ;;  %v1351_v59 = vrot.slane %v3065_v21, 1  ;;  %v3434_v50 = vld [vmem:[#allocation16_spill] sm:$0xff] }
 0x13d   : > { %v1204_v18 = vadd.f32 %v3419_v37, %v1143_v10  ;;  %v1206_v42 = vadd.f32 %v3420_v6, %v1145_v45  ;;  %v3423_v36 = vrot.slane %v2947_v5, 1  ;;  %v1398_v63 = vadd.f32 %v3010_v56, %v1361_v55 }
 0x13e   : > { %v1303_v38 = vadd.f32 %v3421_v54, %v1242_v35  ;;  %v1305_v41 = vadd.f32 %v3422_v2, %v1244_v4  ;;  %v3424_v51 = vrot.slane %v3014_v32, 1  ;;  %v3425_v7 = vrot.slane %v3035_v33, 1  ;;  %v3433_v4 = vld [vmem:[#allocation15_spill] sm:$0xff] }
 0x13f   : > { %v1209_v25 = vadd.f32 %v3423_v36, %v1148_v58  ;;  %v1241_v61 = vadd.f32 %v3042_v40, %v1204_v18  ;;  %v1243_v23 = vadd.f32 %v3045_v24, %v1206_v42  ;;  %v3426_v14 = vrot.slane %v2995_v31, 1  ;;  %v3439_v42 = vld [vmem:[#allocation11_spill] sm:$0xff] }
 0x140   : > { %v1364_v22 = vadd.f32 %v3424_v51, %v1303_v38  ;;  %v1366_v62 = vadd.f32 %v3425_v7, %v1305_v41  ;;  %v1427_v5 = vmul.f32 %v2890_v44, %v1406_v53  ;;  %v3427_v40 = vrot.slane %v2941_v60, 1  ;;  %v3440_v53 = vld [vmem:[#allocation9_spill] sm:$0xff]  ;;  %v3443_v51 = vld [vmem:[#allocation19_spill] sm:$0xff] }
 0x141   : > { %v1208_v21 = vadd.f32 %v3426_v14, %v1147_v29  ;;  %v1246_v3 = vadd.f32 %v3032_v43, %v1209_v25  ;;  %v3428_v56 = vrot.slane %v2999_v28, 1  ;;  %v1429_v32 = vmul.f32 %v2890_v44, %v1408_v47  ;;  %v3441_v29 = vld [vmem:[#allocation17_spill] sm:$0xff] }
 0x142   : > { %v1302_v24 = vadd.f32 %v3427_v40, %v1241_v61  ;;  %v1401_v0 = vadd.f32 %v2970_v16, %v1364_v22  ;;  %v1403_v33 = vadd.f32 %v2973_v19, %v1366_v62  ;;  %v1431_v12 = vmul.f32 %v2890_v44, %v1410_v11  ;;  %v3431_v16 = vld [vmem:[#allocation14_spill] sm:$0xff] }
 0x143   : > { %v1304_v10 = vadd.f32 %v3428_v56, %v1243_v23  ;;  %v1245_v31 = vadd.f32 %v3052_v13, %v1208_v21  ;;  %v3429_v39 = vrot.slane %v2953_v9, 1  ;;  %v1433_v60 = vmul.f32 %v2890_v44, %v1412_v8  ;;  %v3435_v9 = vld [vmem:[#allocation10_spill] sm:$0xff] }
 0x144   : > { %v1363_v43 = vadd.f32 %v1347_v49, %v1302_v24  ;;  %v1462_v27 = vadd.f32 %v1446_v46, %v1401_v0  ;;  %v1464_v28 = vadd.f32 %v1448_v48, %v1403_v33  ;;  %v3430_v34 = vrot.slane %v3005_v20, 1  ;;  %v3442_v23 = vld [vmem:[#allocation18_spill] sm:$0xff] }
 0x145   : > { %v1307_v1 = vadd.f32 %v3429_v39, %v1246_v3  ;;  %v1365_v57 = vadd.f32 %v1349_v52, %v1304_v10  ;;  %v1443_v55 = vrot.slane %v1427_v5, 1  ;;  %v3432_v35 = vrot.slane %v3431_v16, 1  ;;  %v3437_v52 = vld [vmem:[#allocation12_spill] sm:$0xff] }
 0x146   : > { %v1306_v45 = vadd.f32 %v3430_v34, %v1245_v31  ;;  %v1400_v13 = vadd.f32 %v3433_v4, %v1363_v43  ;;  %v1445_v37 = vrot.slane %v1429_v32, 1  ;;  %v3436_v18 = vrot.slane %v3435_v9, 1  ;;  %v3446_v10 = vld [vmem:[#allocation8_spill] sm:$0xff] }
 0x147   : > { %v1368_v19 = vadd.f32 %v3432_v35, %v1307_v1  ;;  %v1402_v58 = vadd.f32 %v3434_v50, %v1365_v57  ;;  %v3438_v6 = vrot.slane %v3437_v52, 1  ;;  %v1447_v48 = vrot.slane %v1431_v12, 1 }
 0x148   : > { %v1523_v49 = vadd.f32 %v3436_v18, %v1462_v27  ;;  %v1367_v46 = vadd.f32 %v1351_v59, %v1306_v45  ;;  %v1541_v54 = vadd.f32 %v3440_v53, %v1521_v26  ;;  %v1459_v38 = vadd.f32 %v1443_v55, %v1398_v63  ;;  %v3444_v63 = vld [vmem:[#allocation13_spill] sm:$0xff] }
 0x149   : > { %v1525_v44 = vadd.f32 %v3438_v6, %v1464_v28  ;;  %v1405_v20 = vadd.f32 %v3439_v42, %v1368_v19  ;;  %v1461_v2 = vadd.f32 %v1445_v37, %v1400_v13  ;;  %v1449_v36 = vrot.slane %v1433_v60, 1 }
 0x14a   : > { %v1543_v41 = vadd.f32 %v3440_v53, %v1523_v49  ;;  %v1404_v47 = vadd.f32 %v3441_v29, %v1367_v46  ;;  %v1463_v25 = vadd.f32 %v1447_v48, %v1402_v58  ;;  %v1504_v11 = vrot.slane %v3442_v23, 1  ;;  %v1845_v23 = vld [vmem:[%s3385_s9 + $0x80] sm:$0xff] }
 0x14b   : > { %v1466_v61 = vadd.f32 %v1450_v17, %v1405_v20  ;;  %v1506_v22 = vrot.slane %v3443_v51, 1  ;;  %v1508_v59 = vrot.slane %v3091_v30, 1  ;;  %v1545_v7 = vadd.f32 %v3440_v53, %v1525_v44  ;;  %v1710_v20 = vld [vmem:[%s3383_s7 + $0x48] sm:$0xff] }
 0x14c   : > { %v1465_v62 = vadd.f32 %v1449_v36, %v1404_v47  ;;  %v1510_v26 = vrot.slane %v3098_v15, 1  ;;  %v3445_v14 = vrot.slane %v3444_v63, 1  ;;  %v1520_v8 = vadd.f32 %v1504_v11, %v1459_v38  ;;  %v1709_v38 = vld [vmem:[%s3383_s7 + $0x40] sm:$0xff]  ;;  %v1716_v47 = vld [vmem:[%s3383_s7 + $0x78] sm:$0xff]  ;;  %v1846_v11 = vld [vmem:[%s3385_s9 + $0x88] sm:$0xff] }
 0x14d   : > { %v1522_v5 = vadd.f32 %v1506_v22, %v1461_v2  ;;  %v1524_v3 = vadd.f32 %v1508_v59, %v1463_v25  ;;  %v1549_v40 = vmax.f32 %v1541_v54, 0.0  ;;  %v1551_v24 = vmax.f32 %v1543_v41, 0.0  ;;  %v1711_v2 = vld [vmem:[%s3383_s7 + $0x50] sm:$0xff]  ;;  %v1714_v41 = vld [vmem:[%s3383_s7 + $0x68] sm:$0xff]  ;;  %v1713_v36 = vld [vmem:[%s3383_s7 + $0x60] sm:$0xff] }
 0x14e   : > { %v1527_v21 = vadd.f32 %v3445_v14, %v1466_v61  ;;  %v1526_v17 = vadd.f32 %v1510_v26, %v1465_v62  ;;  %v1540_v32 = vadd.f32 %v3446_v10, %v1520_v8  ;;  %v1553_v33 = vmax.f32 %v1545_v7, 0.0  ;;  %v1715_v25 = vld [vmem:[%s3383_s7 + $0x70] sm:$0xff]  ;;  %v1629_v7 = vld [vmem:[%s3382_s6] sm:$0x1]  ;;  %v1830_v14 = vld [vmem:[%s3385_s9 + $0x8] sm:$0xff] }
 0x14f   : > { %v1542_v30 = vadd.f32 %v3446_v10, %v1522_v5  ;;  %v1544_v0 = vadd.f32 %v3446_v10, %v1524_v3  ;;  %v2073_v57 = vcombine.low %v1549_v40, %v1551_v24  ;;  %v2264_v29 = vpack.c.bf16 %v1711_v2, %v1709_v38  ;;  %v1829_v63 = vld [vmem:[%s3385_s9] sm:$0xff]  ;;  %v1848_v8 = vld [vmem:[%s3385_s9 + $0x98] sm:$0xff]  ;;  %v1843_v38 = vld [vmem:[%s3385_s9 + $0x70] sm:$0xff] }
 0x150   : > { %v1547_v56 = vadd.f32 %v3440_v53, %v1527_v21  ;;  %v1546_v15 = vadd.f32 %v3446_v10, %v1526_v17  ;;  %v1548_v12 = vmax.f32 %v1540_v32, 0.0  ;;  %v1712_v53 = vld [vmem:[%s3383_s7 + $0x58] sm:$0xff]  ;;  %v2266_v61 = vpack.c.bf16 %v1716_v47, %v1714_v41  ;;  %v1847_v21 = vld [vmem:[%s3385_s9 + $0x90] sm:$0xff]  ;;  %v1849_v10 = vld [vmem:[%s3385_s9 + $0xa0] sm:$0xff] }
 0x151   : > { %v1550_v39 = vmax.f32 %v1542_v30, 0.0  ;;  %v1552_v1 = vmax.f32 %v1544_v0, 0.0  ;;  %v2262_v54 = vpack.c.bf16 %v1712_v53, %v1710_v20  ;;  %v2268_v51 = vpack.c.bf16 %v1715_v25, %v1713_v36  ;;  %v1831_v17 = vld [vmem:[%s3385_s9 + $0x10] sm:$0xff]  ;;  %v1850_v32 = vld [vmem:[%s3385_s9 + $0xa8] sm:$0xff]  ;;  %v1860_v20 = vld [vmem:[%s3385_s9 + $0xf8] sm:$0xff] }
 0x152   : > { %v1555_v31 = vmax.f32 %v1547_v56, 0.0  ;;  %v1554_v43 = vmax.f32 %v1546_v15, 0.0  ;;  %v3180_v27 = vcombine.low %v1548_v12, %v1549_v40  ;;  %v2270_v22 = vpack.c.bf16 %v1846_v11, %v1845_v23  ;;  %v1832_v56 = vld [vmem:[%s3385_s9 + $0x18] sm:$0xff]  ;;  %v1834_v15 = vld [vmem:[%s3385_s9 + $0x28] sm:$0xff]  ;;  %v3448_v25 = vld [vmem:[#allocation6_spill] sm:$0xff] }
 0x153   : > { %v3182_v28 = vcombine.low %v1550_v39, %v1551_v24  ;;  %v2072_v34 = vcombine.low %v1548_v12, %v1550_v39  ;;  %v3184_v55 = vcombine.low %v1552_v1, %v1553_v33  ;;  %2263 = vmatprep.subr.bf16.mxu1 %v2262_v54  ;;  %v2272_v3 = vpack.c.bf16 %v1830_v14, %v1829_v63  ;;  %v1851_v12 = vld [vmem:[%s3385_s9 + $0xb0] sm:$0xff]  ;;  %v1852_v39 = vld [vmem:[%s3385_s9 + $0xb8] sm:$0xff]  ;;  %v3447_v47 = vld [vmem:[#allocation7_spill] sm:$0xff] }
 0x154   : > { %v2075_v60 = vcombine.low %v1553_v33, %v1555_v31  ;;  %v2074_v45 = vcombine.low %v1552_v1, %v1554_v43  ;;  %v3186_v16 = vcombine.low %v1554_v43, %v1555_v31  ;;  %2265 = vmatpush1.bf16.msra.mxu1 %v2264_v29  ;;  %v2274_v24 = vpack.c.bf16 %v1848_v8, %v1847_v21  ;;  %v1833_v33 = vld [vmem:[%s3385_s9 + $0x20] sm:$0xff]  ;;  %v1835_v1 = vld [vmem:[%s3385_s9 + $0x30] sm:$0xff]  ;;  %v1844_v2 = vld [vmem:[%s3385_s9 + $0x78] sm:$0xff] }
 0x155   : > { %2267 = vmatprep.subr.bf16.mxu1 %v2266_v61  ;;  %v2276_v30 = vpack.c.bf16 %v1832_v56, %v1831_v17  ;;  %v2278_v0 = vpack.c.bf16 %v1850_v32, %v1849_v10  ;;  %v2280_v31 = vpack.c.bf16 %v1834_v15, %v1833_v33  ;;  %v2282_v43 = vpack.c.bf16 %v1852_v39, %v1851_v12  ;;  %v1717_v29 = vld [vmem:[%s3384_s8] sm:$0x3] }
 0x156   : > { %v1587_v35 = vadd.f32 %v2075_v60, %v2073_v57  ;;  %v1580_v19 = vadd.f32 %v2074_v45, %v2072_v34  ;;  %v1836_v57 = vld [vmem:[%s3385_s9 + $0x38] sm:$0xff]  ;;  %v1853_v60 = vld [vmem:[%s3385_s9 + $0xc0] sm:$0xff]  ;;  %v1854_v34 = vld [vmem:[%s3385_s9 + $0xc8] sm:$0xff]  ;;  %v2300_v41 = vpack.c.bf16 %v1844_v2, %v1843_v38  ;;  %v1722_v36 = vrot.slane %v1717_v29, %v3447_v47 }
 0x157   : > { %v2284_v45 = vpack.c.bf16 %v1836_v57, %v1835_v1  ;;  %v1726_v61 = vrot.slane %v1717_v29, %v3448_v25 }
 0x158   : > { %v1588_v4 = vrot.slane %v1587_v35, 4  ;;  %v1581_v13 = vrot.slane %v1580_v19, 4  ;;  %2269 = vmatpush1.bf16.msra.mxu1 %v2268_v51 }
 0x159   : > { %2271 = vmatprep.subr.bf16.mxu1 %v2270_v22 }
 0x15a   : > { %v1589_v50 = vadd.f32 %v1588_v4, %v1587_v35  ;;  %v1582_v58 = vadd.f32 %v1581_v13, %v1580_v19  ;;  %v2286_v35 = vpack.c.bf16 %v1854_v34, %v1853_v60  ;;  %v1837_v19 = vld [vmem:[%s3385_s9 + $0x40] sm:$0xff]  ;;  %v1838_v4 = vld [vmem:[%s3385_s9 + $0x48] sm:$0xff]  ;;  %v1855_v13 = vld [vmem:[%s3385_s9 + $0xd0] sm:$0xff] }
 0x15c   : > { %v1590_v37 = vrot.slane %v1589_v50, 2  ;;  %v1583_v9 = vrot.slane %v1582_v58, 2 }
 0x15e   : > { %v1591_v18 = vadd.f32 %v1590_v37, %v1589_v50  ;;  %v1584_v49 = vadd.f32 %v1583_v9, %v1582_v58  ;;  %v1856_v50 = vld [vmem:[%s3385_s9 + $0xd8] sm:$0xff]  ;;  %v2288_v58 = vpack.c.bf16 %v1838_v4, %v1837_v19  ;;  %v1839_v9 = vld [vmem:[%s3385_s9 + $0x50] sm:$0xff] }
 0x15f   : > { %v2290_v37 = vpack.c.bf16 %v1856_v50, %v1855_v13 }
 0x160   : > { %v1592_v52 = vrot.slane %v1591_v18, 1  ;;  %v1585_v6 = vrot.slane %v1584_v49, 1 }
 0x162   : > { %v1593_v44 = vadd.f32 %v1592_v52, %v1591_v18  ;;  %v1586_v46 = vadd.f32 %v1585_v6, %v1584_v49  ;;  %v1840_v18 = vld [vmem:[%s3385_s9 + $0x58] sm:$0xff]  ;;  %v1857_v49 = vld [vmem:[%s3385_s9 + $0xe0] sm:$0xff]  ;;  %v1858_v52 = vld [vmem:[%s3385_s9 + $0xe8] sm:$0xff] }
 0x163   : > { %v2292_v6 = vpack.c.bf16 %v1840_v18, %v1839_v9 }
 0x164   : > { %v1596_v48 = vmul.f32 0.0625, %v1593_v44  ;;  %v1595_v42 = vmul.f32 0.0625, %v1586_v46  ;;  %v2294_v44 = vpack.c.bf16 %v1858_v52, %v1857_v49  ;;  %v1841_v46 = vld [vmem:[%s3385_s9 + $0x60] sm:$0xff] }
 0x166   : > { %1694 = vmatprep.mubr.f32.mxu0 %v1596_v48  ;;  %v1842_v48 = vld [vmem:[%s3385_s9 + $0x68] sm:$0xff] }
 0x167   : > { %1695 = vmatmul.mubr.f32.vlgmr.msra.gmra.mrb[12].mxu0 %v1595_v42  ;;  %v1859_v42 = vld [vmem:[%s3385_s9 + $0xf0] sm:$0xff]  ;;  %v2296_v53 = vpack.c.bf16 %v1842_v48, %v1841_v46 }
 0x168   : > { %v2298_v54 = vpack.c.bf16 %v1860_v20, %v1859_v42 }
 0x23a   : > { %v2117_v59 = vpop.f32.mrb[12].mxu0 }
 0x23b   : > { %v2118_v62 = vpop.f32.mrb[13].mxu0 }
 0x23c   : > { %v2119_v26 = vadd.f32 %v2118_v62, %v2117_v59 }
 0x23e   : > { %v1697_v5 = vadd.f32 %v2119_v26, %v1629_v7 }
 0x240   : > { %v1700_v40 = vmax.f32 %v1697_v5, 0.0 }
 0x242   : > { %2076 = vmatmul.mubr.msk.f32.vlgmr.msra.gmra.mrb[4].mxu1 %vm463_vm0, %v1700_v40 }
 0x243   : > { %2273 = vmatpush3.bf16.msra.mxu1 %v2272_v3 }
 0x244   : > { %2275 = vmatprep.subr.bf16.mxu1 %v2274_v24 }
 0x247   : > { %2277 = vmatpush3.bf16.msra.mxu1 %v2276_v30 }
 0x248   : > { %2279 = vmatprep.subr.bf16.mxu1 %v2278_v0 }
 0x24b   : > { %2281 = vmatpush3.bf16.msra.mxu1 %v2280_v31 }
 0x24c   : > { %2283 = vmatprep.subr.bf16.mxu1 %v2282_v43 }
 0x24f   : > { %2285 = vmatpush3.bf16.msra.mxu1 %v2284_v45 }
 0x250   : > { %2287 = vmatprep.subr.bf16.mxu1 %v2286_v35 }
 0x253   : > { %2289 = vmatpush3.bf16.msra.mxu1 %v2288_v58 }
 0x254   : > { %2291 = vmatprep.subr.bf16.mxu1 %v2290_v37 }
 0x257   : > { %2293 = vmatpush3.bf16.msra.mxu1 %v2292_v6 }
 0x258   : > { %2295 = vmatprep.subr.bf16.mxu1 %v2294_v44 }
 0x25b   : > { %2297 = vmatpush3.bf16.msra.mxu1 %v2296_v53 }
 0x25c   : > { %2299 = vmatprep.subr.bf16.mxu1 %v2298_v54 }
 0x25f   : > { %2301 = vmatpush3.bf16.msra.mxu1 %v2300_v41 }
 0x315   : > { %v1798_v23 = vpop.f32.mrb[4].mxu1 }
 0x316   : > { %v1799_v11 = vadd.f32 %v1798_v23, %v1722_v36  ;;  %v1800_v51 = vpop.f32.mrb[5].mxu1 }
 0x317   : > { %v1801_v22 = vadd.f32 %v1800_v51, %v1726_v61 }
 0x318   : > { %v1803_v59 = vadd.f32 3.0, %v1799_v11 }
 0x319   : > { %v1804_v7 = vadd.f32 3.0, %v1801_v22 }
 0x31a   : > { %v1805_v62 = vmax.f32 %v1803_v59, 0.0 }
 0x31b   : > { %v1806_v26 = vmax.f32 %v1804_v7, 0.0 }
 0x31c   : > { %v1807_v63 = vmin.f32 %v1805_v62, 6.0 }
 0x31d   : > { %v1808_v14 = vmin.f32 %v1806_v26, 6.0 }
 0x31e   : > { %v1809_v21 = vmul.f32 0.16666667, %v1807_v63 }
 0x31f   : > { %v1810_v8 = vmul.f32 0.16666667, %v1808_v14 }
 0x320   : > { %v1814_v5 = vrot.slane %v1809_v21, %v3447_v47 }
 0x321   : > { %v1818_v3 = vrot.slane %v1810_v8, %v3447_v47 }
 0x323   : > { %v1821_v40 = vcombine.low %v1814_v5, %v1818_v3  ;;  %v1822_v24 = vcombine.high %v1814_v5, %v1818_v3 }
 0x325   : > { %v1825_v17 = vmul.f32 %v1821_v40, %v3180_v27  ;;  %v1826_v56 = vmul.f32 %v1822_v24, %v3182_v28  ;;  %v1827_v10 = vmul.f32 %v1821_v40, %v3184_v55  ;;  %v1828_v32 = vmul.f32 %v1822_v24, %v3186_v16  ;;  %v2077_v27 = vld [vmem:[%s3386_s10] ss:$0 sm:$0xff] }
 0x327   : > { %v1873_v30 = vcombine.high %v1825_v17, %v1826_v56  ;;  %v1872_v0 = vcombine.low %v1825_v17, %v1826_v56  ;;  %v1875_v33 = vcombine.high %v1827_v10, %v1828_v32  ;;  %v1874_v15 = vcombine.low %v1827_v10, %v1828_v32 }
 0x329   : > { %1944 = vmatprep.mubr.f32.mxu1 %v1873_v30 }
 0x32a   : > { %1945 = vmatmul.mubr.f32.vlgmr.msra.gmra.mrb[6].mxu1 %v1872_v0 }
 0x32b   : > { %1949 = vmatprep.mubr.f32.mxu1 %v1875_v33 }
 0x32e   : > { %1950 = vmatmul.mubr.f32.gmra.mrb[8].mxu1 %v1874_v15 }
 0x3fd   : > { %v2152_v31 = vpop.f32.mrb[6].mxu1 }
 0x3fe   : > { %v2153_v28 = vpop.f32.mrb[7].mxu1 }
 0x3ff   : > { %v2154_v55 = vadd.f32 %v2153_v28, %v2152_v31 }
 0x401   : > { %v1947_v16 = vadd.f32 %v2154_v55, %v2077_v27  ;;  %v2155_v12 = vpop.f32.mrb[8].mxu1 }
 0x402   : > { %v2156_v39 = vpop.f32.mrb[9].mxu1 }
 0x403   : > { %1955 = vst [vmem:[%s379_s0] sm:$0xff] %v1947_v16  ;;  %v2157_v1 = vadd.f32 %v2156_v39, %v2155_v12 }
 0x405   : > { %v1952_v43 = vadd.f32 %v2157_v1, %v2077_v27 }
 0x407   : > { %1956 = vst [vmem:[%s379_s0 + $0x8] sm:$0xff] %v1952_v43 }
 0x408   : > { %2357 = shalt.err (!%p2354_p3)
}
 0x409   : > { %s2358_s12 = scalar_lea.hbm %s3333_s29, 256  ;;  %s2362_s24 = scalar_lea.hbm %s3387_s11, 512 }
 0x40a   : > { %p2359_p4 = scmp.ne.s32.totalorder %s3333_s29, %s2358_s12  ;;  %p2363_p9 = scmp.lt.u32.totalorder %s3333_s29, %s3387_s11 }
 0x40b   : > { %p2364_p10 = scmp.lt.u32.totalorder %s2362_s24, %s2358_s12  ;;  %p2366_p12 = scmp.lt.u32.totalorder %s2358_s12, %s3333_s29 }
 0x40c   : > { %p2360_p7 = pnand %p2359_p4, %p2510_p5 }
 0x40d   : > { %p2365_p11 = por %p2364_p10, %p2363_p9 }
 0x40e   : > { %p2361_p8 = pneg %p2360_p7 }
 0x40f   : > { %p2367_p13 = por %p2366_p12, %p2365_p11 }
 0x411   : > { %p2368_p0 = pnand %p2367_p13, %p2361_p8 }
 0x413   : > { %2371 = shalt.err (!%p2368_p0)
}
 0x414   : > { %s2410_s13 = smov 128   ;;  %s2411_s14 = smov 8  }
 0x415   : > { %2302 = dma.vmem_to_hbm [thread:$0]  (%p2510_p5), %s3328_s16, 256, %s3333_s29, %s3335_s30, %s2410_s13, %s2410_s13, %s2411_s14  }
 0x416 PF: > { %p2308_p1 = scmp.ge.s32.totalorder %s2406_s20, 2  ;;  %s1986_s15 = sand.u32 1, %s2394_s17  }
 0x417   : > { %s1987_s12 = scalar_lea.sflag [#allocation4], %s1986_s15 }
 0x418   : > { %p2305_p2 = pnand %p2308_p1, %p2514_p6 }
 0x41a   : > { %2389 = dma.done.wait (!%p2305_p2), %s1987_s12, 256  }
 0x41b   : > { %2391 = vsyncadd (!%p2305_p2), %s1987_s12, 4294967040  ;;  %p21_p3 = scmp.ge.s32.totalorder %s2497_s23, 4   ;;  %s3449_s17 = smov %s2398_s18 }
 0x41c   : > { %s3450_s18 = smov %s2402_s19  ;;  %s3451_s19 = smov %s2508_s26 }
 0x41d   : > { %s3452_s20 = smov %s2497_s23  ;;  %23 = sbr.rel (!%p21_p3) target bundleno = 5 (0x5), region = 113 }
 0x424   :  { %1992 = vsyncpa [#allocation4], 1 }
 0x425   :  { %1994 = vsyncpa [#allocation4 + $0x1], 1 }

// kernel: blocks_forward.2
= control target key start
LH: loop header
LB: loop body
LE: loop exit
PB: predicated region body
PF: predicated region fallthrough
CT: control target
= control target key end

     0   :  { %s3737_s25 = smov 0   ;;  %s5255_s0 = inlined_call_operand.vmem [shape: f32[2,256,32], index: 0, kind: input, shape index: {}]   ;;  %s5256_s1 = inlined_call_operand.vmem [shape: f32[32,64], index: 1, kind: input, shape index: {}]   ;;  %s5257_s2 = inlined_call_operand.vmem [shape: f32[1,64], index: 2, kind: input, shape index: {}]   ;;  %s5258_s3 = inlined_call_operand.vmem [shape: f32[64,128], index: 3, kind: input, shape index: {}]   ;;  %s5259_s4 = inlined_call_operand.vmem [shape: f32[1,128], index: 4, kind: input, shape index: {}]   ;;  %s5260_s5 = inlined_call_operand.vmem [shape: f32[25,128], index: 5, kind: input, shape index: {}]   ;;  %s5261_s6 = inlined_call_operand.vmem [shape: f32[1,128], index: 6, kind: input, shape index: {}]   ;;  %s5262_s7 = inlined_call_operand.vmem [shape: f32[128,32], index: 7, kind: input, shape index: {}]   ;;  %s5263_s8 = inlined_call_operand.vmem [shape: f32[1,32], index: 8, kind: input, shape index: {}]   ;;  %s5264_s9 = inlined_call_operand.vmem [shape: f32[32,128], index: 9, kind: input, shape index: {}]   ;;  %s5265_s10 = inlined_call_operand.vmem [shape: f32[1,128], index: 10, kind: input, shape index: {}]   ;;  %s5266_s11 = inlined_call_operand.vmem [shape: f32[128,64], index: 11, kind: input, shape index: {}]   ;;  %s5267_s12 = inlined_call_operand.vmem [shape: f32[1,64], index: 12, kind: input, shape index: {}]   ;;  %s5268_s13 = inlined_call_operand.vmem [shape: f32[2,64,64], index: 13, kind: output, shape index: {}]  }
   0x1 LB: > { %s2932_s26 = sadd.s32 4294967295, %s3662_s25   ;;  %p2936_p0 = scmp.ge.s32.totalorder %s3662_s25, 1  ;;  %s3662_s25 = sphi %s3737_s25, %s23_s25  }
   0x2   : > { %p387_p1 = scmp.lt.s32.totalorder %s3662_s25, 3 }
   0x4   : > { %p388_p2 = pnand %p2936_p0, %p387_p1 }
   0x6   : > { %391 = sbr.rel (%p388_p2) target bundleno = 1492 (0x5d4), region = 72 }
   0xd   : > { %v529_v0 = vld [vmem:[%s5256_s1] sm:$0xff]  ;;  %v530_v1 = vld [vmem:[%s5256_s1 + $0x8] sm:$0xff]  ;;  %v531_v2 = vld [vmem:[%s5256_s1 + $0x10] sm:$0xff]  ;;  %p431_p3 = scmp.lt.s32.totalorder %s2932_s26, 1  ;;  %vm540_vm0 = vcmask 261120   ;;  %v3664_v26 = vmov 0.0  }
   0xe   : > { %v3754_v3 = vpack.c.bf16 %v530_v1, %v529_v0  ;;  %v532_v4 = vld [vmem:[%s5256_s1 + $0x18] sm:$0xff]  ;;  %v678_v5 = vld [vmem:[%s5258_s3] sm:$0xff]  ;;  %v679_v6 = vld [vmem:[%s5258_s3 + $0x8] sm:$0xff]  ;;  %445 = vst [vmem:[#allocation2 + $0x20] sm:$0xff] %v3664_v26  ;;  %vm693_vm1 = vcmask 523264   ;;  %vm3666_vm2 = vmmov 0  }
   0xf   : > { %v3765_v7 = vpack.c.bf16 %v532_v4, %v531_v2  ;;  %s5456_s26 = smov (!%p431_p3, %s2932_s26), 1  ;;  %v3769_v8 = vpack.c.bf16 %v679_v6, %v678_v5  ;;  %v680_v9 = vld [vmem:[%s5258_s3 + $0x10] sm:$0xff]  ;;  %v681_v10 = vld [vmem:[%s5258_s3 + $0x18] sm:$0xff]  ;;  %v682_v12 = vld [vmem:[%s5258_s3 + $0x20] sm:$0xff]  ;;  %446 = vst [vmem:[#allocation2 + $0x28] sm:$0x3] %v3664_v26 }
  0x10   : > { %3486 = vmatprep.subr.bf16.mxu0 %v3754_v3  ;;  %s3043_s28 = sshll.u32 %s5456_s26, 8  ;;  %v3780_v11 = vpack.c.bf16 %v681_v10, %v680_v9  ;;  %v683_v13 = vld [vmem:[%s5258_s3 + $0x28] sm:$0xff]  ;;  %v684_v23 = vld [vmem:[%s5258_s3 + $0x30] sm:$0xff]  ;;  %v685_v24 = vld [vmem:[%s5258_s3 + $0x38] sm:$0xff]  ;;  %499 = vst [vmem:[#allocation2 + $0x1d0] sm:$0xff] %v3664_v26  ;;  %s3044_s24 = sshll.u32 %s5456_s26, 6 }
  0x11   : > { %3488 = vmatpush3.bf16.msra.mxu0 %v3754_v3  ;;  %3518 = vmatprep.subr.bf16.mxu1 %v3769_v8  ;;  %s3787_s14 = scalar_lea.vmem %s5255_s0, %s3043_s28  ;;  %v3801_v16 = vpack.c.bf16 %v683_v13, %v682_v12  ;;  %v3831_v25 = vpack.c.bf16 %v685_v24, %v684_v23  ;;  %441 = vst [vmem:[#allocation2] sm:$0xff] %v3664_v26  ;;  %442 = vst [vmem:[#allocation2 + $0x8] sm:$0x3] %v3664_v26  ;;  %v3903_v27 = vld [vmem:[%s5257_s2] ss:$0 sm:$0xff] }
  0x12   : > { %3490 = vmatprep.subr.bf16.mxu0 %v3765_v7  ;;  %3520 = vmatpush3.bf16.msra.mxu1 %v3769_v8  ;;  %v521_v14 = vld [vmem:[%s3787_s14] sm:$0xff]  ;;  %v522_v15 = vld [vmem:[%s3787_s14 + $0x8] sm:$0xff]  ;;  %v523_v17 = vld [vmem:[%s3787_s14 + $0x10] sm:$0xff]  ;;  %443 = vst [vmem:[#allocation2 + $0x10] sm:$0xff] %v3664_v26 }
  0x13   : > { %3522 = vmatprep.subr.bf16.mxu1 %v3780_v11  ;;  %3211 = vmatprep.mubr.msk.f32.mxu0 %vm540_vm0, %v521_v14  ;;  %v524_v18 = vld [vmem:[%s3787_s14 + $0x18] sm:$0xff]  ;;  %v525_v19 = vld [vmem:[%s3787_s14 + $0x20] sm:$0xff]  ;;  %v526_v20 = vld [vmem:[%s3787_s14 + $0x28] sm:$0xff]  ;;  %444 = vst [vmem:[#allocation2 + $0x18] sm:$0x3] %v3664_v26 }
  0x14   : > { %v527_v21 = vld [vmem:[%s3787_s14 + $0x30] sm:$0xff]  ;;  %v528_v22 = vld [vmem:[%s3787_s14 + $0x38] sm:$0xff]  ;;  %447 = vst [vmem:[#allocation2 + $0x30] sm:$0xff] %v3664_v26  ;;  %448 = vst [vmem:[#allocation2 + $0x38] sm:$0x3] %v3664_v26 }
  0x15   : > { %3492 = vmatpush3.bf16.msra.mxu0 %v3765_v7  ;;  %449 = vst [vmem:[#allocation2 + $0x40] sm:$0xff] %v3664_v26  ;;  %450 = vst [vmem:[#allocation2 + $0x48] sm:$0x3] %v3664_v26  ;;  %v840_v52 = vld [vmem:[%s3787_s14 + $0x40] sm:$0xff]  ;;  %v841_v53 = vld [vmem:[%s3787_s14 + $0x48] sm:$0xff] }
  0x16   : > { %3494 = vmatprep.subr.bf16.mxu0 %v3769_v8  ;;  %3524 = vmatpush3.bf16.msra.mxu1 %v3780_v11  ;;  %451 = vst [vmem:[#allocation2 + $0x50] sm:$0xff] %v3664_v26  ;;  %452 = vst [vmem:[#allocation2 + $0x58] sm:$0x3] %v3664_v26  ;;  %v842_v54 = vld [vmem:[%s3787_s14 + $0x50] sm:$0xff]  ;;  %v843_v55 = vld [vmem:[%s3787_s14 + $0x58] sm:$0xff] }
  0x17   : > { %3526 = vmatprep.subr.bf16.mxu1 %v3801_v16  ;;  %453 = vst [vmem:[#allocation2 + $0x60] sm:$0xff] %v3664_v26  ;;  %454 = vst [vmem:[#allocation2 + $0x68] sm:$0x3] %v3664_v26  ;;  %v844_v56 = vld [vmem:[%s3787_s14 + $0x60] sm:$0xff]  ;;  %v845_v57 = vld [vmem:[%s3787_s14 + $0x68] sm:$0xff] }
  0x18   : > { %3212 = vmatmul.mubr.msk.f32.vlgmr.msra.gmra.mrb[0].mxu0 %vm540_vm0, %v522_v15  ;;  %455 = vst [vmem:[#allocation2 + $0x70] sm:$0xff] %v3664_v26  ;;  %456 = vst [vmem:[#allocation2 + $0x78] sm:$0x3] %v3664_v26  ;;  %v846_v58 = vld [vmem:[%s3787_s14 + $0x70] sm:$0xff]  ;;  %v847_v59 = vld [vmem:[%s3787_s14 + $0x78] sm:$0xff] }
  0x19   : > { %3214 = vmatprep.mubr.msk.f32.mxu0 %vm540_vm0, %v523_v17  ;;  %3496 = vmatpush3.bf16.msra.mxu0 %v3769_v8  ;;  %457 = vst [vmem:[#allocation2 + $0x80] sm:$0xff] %v3664_v26  ;;  %458 = vst [vmem:[#allocation2 + $0x88] sm:$0x3] %v3664_v26  ;;  %v1157_v60 = vld [vmem:[%s3787_s14 + $0x80] sm:$0xff]  ;;  %v1158_v61 = vld [vmem:[%s3787_s14 + $0x88] sm:$0xff] }
  0x1a   : > { %3498 = vmatprep.subr.bf16.mxu0 %v3780_v11  ;;  %3528 = vmatpush3.bf16.msra.mxu1 %v3801_v16  ;;  %459 = vst [vmem:[#allocation2 + $0x90] sm:$0xff] %v3664_v26  ;;  %460 = vst [vmem:[#allocation2 + $0x98] sm:$0x3] %v3664_v26  ;;  %v1159_v62 = vld [vmem:[%s3787_s14 + $0x90] sm:$0xff]  ;;  %v1160_v63 = vld [vmem:[%s3787_s14 + $0x98] sm:$0xff] }
  0x1b   : > { %3530 = vmatprep.subr.bf16.mxu1 %v3831_v25  ;;  %461 = vst [vmem:[#allocation2 + $0xa0] sm:$0xff] %v3664_v26  ;;  %462 = vst [vmem:[#allocation2 + $0xa8] sm:$0x3] %v3664_v26  ;;  %v1161_v0 = vld [vmem:[%s3787_s14 + $0xa0] sm:$0xff]  ;;  %v1162_v1 = vld [vmem:[%s3787_s14 + $0xa8] sm:$0xff] }
  0x1c   : > { %3215 = vmatmul.mubr.msk.f32.gmra.mrb[2].mxu0 %vm540_vm0, %v524_v18  ;;  %463 = vst [vmem:[#allocation2 + $0xb0] sm:$0xff] %v3664_v26  ;;  %465 = vst [vmem:[#allocation2 + $0xc0] sm:$0xff] %v3664_v26  ;;  %v1163_v2 = vld [vmem:[%s3787_s14 + $0xb0] sm:$0xff]  ;;  %v1474_v4 = vld [vmem:[%s3787_s14 + $0xc0] sm:$0xff] }
  0x1d   : > { %3217 = vmatprep.mubr.msk.f32.mxu0 %vm540_vm0, %v525_v19  ;;  %3500 = vmatpush3.bf16.msra.mxu0 %v3780_v11  ;;  %467 = vst [vmem:[#allocation2 + $0xd0] sm:$0xff] %v3664_v26  ;;  %469 = vst [vmem:[#allocation2 + $0xe0] sm:$0xff] %v3664_v26  ;;  %v1475_v5 = vld [vmem:[%s3787_s14 + $0xc8] sm:$0xff]  ;;  %v1476_v6 = vld [vmem:[%s3787_s14 + $0xd0] sm:$0xff] }
  0x1e   : > { %3502 = vmatprep.subr.bf16.mxu0 %v3801_v16  ;;  %3532 = vmatpush3.bf16.msra.mxu1 %v3831_v25  ;;  %471 = vst [vmem:[#allocation2 + $0xf0] sm:$0xff] %v3664_v26  ;;  %473 = vst [vmem:[#allocation2 + $0x100] sm:$0xff] %v3664_v26  ;;  %v1478_v9 = vld [vmem:[%s3787_s14 + $0xe0] sm:$0xff]  ;;  %v1479_v10 = vld [vmem:[%s3787_s14 + $0xe8] sm:$0xff] }
  0x1f   : > { %3542 = vmatprep.subr.bf16.mxu1 %v3769_v8  ;;  %475 = vst [vmem:[#allocation2 + $0x110] sm:$0xff] %v3664_v26  ;;  %477 = vst [vmem:[#allocation2 + $0x120] sm:$0xff] %v3664_v26  ;;  %v1480_v12 = vld [vmem:[%s3787_s14 + $0xf0] sm:$0xff]  ;;  %v1481_v13 = vld [vmem:[%s3787_s14 + $0xf8] sm:$0xff] }
  0x20   : > { %3218 = vmatmul.mubr.msk.f32.gmra.mrb[4].mxu0 %vm540_vm0, %v526_v20  ;;  %479 = vst [vmem:[#allocation2 + $0x130] sm:$0xff] %v3664_v26  ;;  %480 = vst [vmem:[#allocation2 + $0x138] sm:$0x3] %v3664_v26  ;;  %v3983_v14 = vld [vmem:[%s5259_s4] ss:$0 sm:$0xff] }
  0x21   : > { %3220 = vmatprep.mubr.msk.f32.mxu0 %vm540_vm0, %v527_v21  ;;  %3504 = vmatpush3.bf16.msra.mxu0 %v3801_v16  ;;  %481 = vst [vmem:[#allocation2 + $0x140] sm:$0xff] %v3664_v26  ;;  %482 = vst [vmem:[#allocation2 + $0x148] sm:$0x3] %v3664_v26 }
  0x22   : > { %3506 = vmatprep.subr.bf16.mxu0 %v3831_v25  ;;  %483 = vst [vmem:[#allocation2 + $0x150] sm:$0xff] %v3664_v26  ;;  %484 = vst [vmem:[#allocation2 + $0x158] sm:$0x3] %v3664_v26 }
  0x23   : > { %485 = vst [vmem:[#allocation2 + $0x160] sm:$0xff] %v3664_v26  ;;  %486 = vst [vmem:[#allocation2 + $0x168] sm:$0x3] %v3664_v26 }
  0x24   : > { %3221 = vmatmul.mubr.msk.f32.gmra.mrb[6].mxu0 %vm540_vm0, %v528_v22  ;;  %487 = vst [vmem:[#allocation2 + $0x170] sm:$0xff] %v3664_v26  ;;  %488 = vst [vmem:[#allocation2 + $0x178] sm:$0x3] %v3664_v26 }
  0x25   : > { %3508 = vmatpush3.bf16.msra.mxu0 %v3831_v25  ;;  %489 = vst [vmem:[#allocation2 + $0x180] sm:$0xff] %v3664_v26  ;;  %490 = vst [vmem:[#allocation2 + $0x188] sm:$0x3] %v3664_v26 }
  0x26   : > { %3510 = vmatprep.subr.bf16.mxu0 %v3754_v3  ;;  %491 = vst [vmem:[#allocation2 + $0x190] sm:$0xff] %v3664_v26  ;;  %492 = vst [vmem:[#allocation2 + $0x198] sm:$0x3] %v3664_v26 }
  0x27   : > { %493 = vst [vmem:[#allocation2 + $0x1a0] sm:$0xff] %v3664_v26  ;;  %494 = vst [vmem:[#allocation2 + $0x1a8] sm:$0x3] %v3664_v26 }
  0x28   : > { %495 = vst [vmem:[#allocation2 + $0x1b0] sm:$0xff] %v3664_v26  ;;  %496 = vst [vmem:[#allocation2 + $0x1b8] sm:$0x3] %v3664_v26 }
  0x29   : > { %497 = vst [vmem:[#allocation2 + $0x1c0] sm:$0xff] %v3664_v26  ;;  %498 = vst [vmem:[#allocation2 + $0x1c8] sm:$0x3] %v3664_v26 }
  0x2a   : > { %501 = vst [vmem:[#allocation2 + $0x1e0] sm:$0xff] %v3664_v26  ;;  %502 = vst [vmem:[#allocation2 + $0x1e8] sm:$0x3] %v3664_v26 }
  0x2b   : > { %503 = vst [vmem:[#allocation2 + $0x1f0] sm:$0xff] %v3664_v26  ;;  %505 = vst [vmem:[#allocation2 + $0x200] sm:$0xff] %v3664_v26 }
  0x2c   : > { %507 = vst [vmem:[#allocation2 + $0x210] sm:$0xff] %v3664_v26  ;;  %509 = vst [vmem:[#allocation2 + $0x220] sm:$0xff] %v3664_v26 }
  0x2d   : > { %511 = vst [vmem:[#allocation2 + $0x230] sm:$0xff] %v3664_v26  ;;  %513 = vst [vmem:[#allocation2 + $0x240] sm:$0xff] %v3664_v26 }
  0x2e   : > { %515 = vst [vmem:[#allocation2 + $0x250] sm:$0xff] %v3664_v26  ;;  %517 = vst [vmem:[#allocation2 + $0x260] sm:$0xff] %v3664_v26 }
  0xeb   : > { %v3213_v28 = vpop.f32.mrb[0].mxu0 }
  0xec   : > { %v637_v29 = vadd.f32 %v3213_v28, %v3903_v27  ;;  %v631_v30 = vpop.f32.mrb[1].mxu0 }
  0xed   : > { %v632_v31 = vadd.f32 %v3903_v27, %v631_v30 }
  0xee   : > { %v671_v34 = vmax.f32 %v637_v29, 0.0 }
  0xef   : > { %v670_v32 = vmax.f32 %v632_v31, 0.0  ;;  %v3216_v33 = vpop.f32.mrb[2].mxu0 }
  0xf0   : > { %v647_v35 = vadd.f32 %v3216_v33, %v3903_v27  ;;  %v641_v36 = vpop.f32.mrb[3].mxu0 }
  0xf1   : > { %v642_v37 = vadd.f32 %v3903_v27, %v641_v36  ;;  %3239 = vmatprep.mubr.msk.f32.mxu0 %vm693_vm1, %v670_v32 }
  0xf2   : > { %3240 = vmatmul.mubr.msk.f32.vlgmr.msra.gmra.mrb[8].mxu0 %vm693_vm1, %v671_v34  ;;  %v673_v40 = vmax.f32 %v647_v35, 0.0 }
  0xf3   : > { %v672_v38 = vmax.f32 %v642_v37, 0.0  ;;  %3512 = vmatpush3.bf16.msra.mxu0 %v3754_v3  ;;  %v3219_v39 = vpop.f32.mrb[4].mxu0 }
  0xf4   : > { %v657_v41 = vadd.f32 %v3219_v39, %v3903_v27  ;;  %v651_v42 = vpop.f32.mrb[5].mxu0  ;;  %3514 = vmatprep.subr.bf16.mxu0 %v3765_v7 }
  0xf5   : > { %v652_v43 = vadd.f32 %v3903_v27, %v651_v42  ;;  %3242 = vmatprep.mubr.msk.f32.mxu0 %vm693_vm1, %v672_v38 }
  0xf6   : > { %3243 = vmatmul.mubr.msk.f32.gmra.mrb[10].mxu0 %vm693_vm1, %v673_v40  ;;  %v675_v46 = vmax.f32 %v657_v41, 0.0 }
  0xf7   : > { %v674_v44 = vmax.f32 %v652_v43, 0.0  ;;  %v3222_v45 = vpop.f32.mrb[6].mxu0  ;;  %3516 = vmatpush3.bf16.msra.mxu0 %v3765_v7 }
  0xf8   : > { %v667_v47 = vadd.f32 %v3222_v45, %v3903_v27  ;;  %v661_v48 = vpop.f32.mrb[7].mxu0  ;;  %3534 = vmatprep.subr.bf16.mxu0 %v3754_v3 }
  0xf9   : > { %v662_v49 = vadd.f32 %v3903_v27, %v661_v48  ;;  %3245 = vmatprep.mubr.msk.f32.mxu0 %vm693_vm1, %v674_v44 }
  0xfa   : > { %3246 = vmatmul.mubr.msk.f32.gmra.mrb[12].mxu0 %vm693_vm1, %v675_v46  ;;  %v677_v51 = vmax.f32 %v667_v47, 0.0 }
  0xfb   : > { %v676_v50 = vmax.f32 %v662_v49, 0.0 }
  0xfd   : > { %3248 = vmatprep.mubr.msk.f32.mxu0 %vm693_vm1, %v676_v50 }
  0xfe   : > { %3249 = vmatmul.mubr.msk.f32.gmra.mrb[14].mxu0 %vm693_vm1, %v677_v51 }
  0xff   : > { %3259 = vmatprep.mubr.msk.f32.mxu0 %vm540_vm0, %v840_v52 }
 0x102   : > { %3260 = vmatmul.mubr.msk.f32.vlgmr.msra.gmra.mrb[16].mxu0 %vm540_vm0, %v841_v53 }
 0x103   : > { %3536 = vmatpush3.bf16.msra.mxu0 %v3754_v3  ;;  %3262 = vmatprep.mubr.msk.f32.mxu0 %vm540_vm0, %v842_v54 }
 0x104   : > { %3538 = vmatprep.subr.bf16.mxu0 %v3765_v7 }
 0x106   : > { %3263 = vmatmul.mubr.msk.f32.gmra.mrb[18].mxu0 %vm540_vm0, %v843_v55 }
 0x107   : > { %3265 = vmatprep.mubr.msk.f32.mxu0 %vm540_vm0, %v844_v56  ;;  %3540 = vmatpush3.bf16.msra.mxu0 %v3765_v7 }
 0x108   : > { %3558 = vmatprep.subr.bf16.mxu0 %v3754_v3 }
 0x10a   : > { %3266 = vmatmul.mubr.msk.f32.gmra.mrb[20].mxu0 %vm540_vm0, %v845_v57 }
 0x10b   : > { %3268 = vmatprep.mubr.msk.f32.mxu0 %vm540_vm0, %v846_v58 }
 0x10e   : > { %3269 = vmatmul.mubr.msk.f32.gmra.mrb[22].mxu0 %vm540_vm0, %v847_v59 }
 0x10f   : > { %3307 = vmatprep.mubr.msk.f32.mxu0 %vm540_vm0, %v1157_v60 }
 0x112   : > { %3308 = vmatmul.mubr.msk.f32.vlgmr.msra.gmra.mrb[24].mxu0 %vm540_vm0, %v1158_v61 }
 0x113   : > { %3560 = vmatpush3.bf16.msra.mxu0 %v3754_v3  ;;  %3310 = vmatprep.mubr.msk.f32.mxu0 %vm540_vm0, %v1159_v62  ;;  %v1164_v3 = vld [vmem:[%s3787_s14 + $0xb8] sm:$0xff] }
 0x114   : > { %3562 = vmatprep.subr.bf16.mxu0 %v3765_v7 }
 0x116   : > { %3311 = vmatmul.mubr.msk.f32.gmra.mrb[26].mxu0 %vm540_vm0, %v1160_v63 }
 0x117   : > { %3313 = vmatprep.mubr.msk.f32.mxu0 %vm540_vm0, %v1161_v0  ;;  %3564 = vmatpush3.bf16.msra.mxu0 %v3765_v7  ;;  %v1477_v7 = vld [vmem:[%s3787_s14 + $0xd8] sm:$0xff]  ;;  %s440_s14 = scalar_lea.vmem %s5268_s13, %s3044_s24 }
 0x11a   : > { %3314 = vmatmul.mubr.msk.f32.gmra.mrb[28].mxu0 %vm540_vm0, %v1162_v1 }
 0x11b   : > { %3316 = vmatprep.mubr.msk.f32.mxu0 %vm540_vm0, %v1163_v2 }
 0x11e   : > { %3317 = vmatmul.mubr.msk.f32.gmra.mrb[30].mxu0 %vm540_vm0, %v1164_v3 }
 0x11f   : > { %3355 = vmatprep.mubr.msk.f32.mxu0 %vm540_vm0, %v1474_v4 }
 0x122   : > { %3356 = vmatmul.mubr.msk.f32.vlgmr.msra.gmra.mrb[32].mxu0 %vm540_vm0, %v1475_v5 }
 0x123   : > { %3358 = vmatprep.mubr.msk.f32.mxu0 %vm540_vm0, %v1476_v6 }
 0x126   : > { %3359 = vmatmul.mubr.msk.f32.gmra.mrb[34].mxu0 %vm540_vm0, %v1477_v7 }
 0x127   : > { %3361 = vmatprep.mubr.msk.f32.mxu0 %vm540_vm0, %v1478_v9 }
 0x12a   : > { %3362 = vmatmul.mubr.msk.f32.gmra.mrb[36].mxu0 %vm540_vm0, %v1479_v10 }
 0x12b   : > { %3364 = vmatprep.mubr.msk.f32.mxu0 %vm540_vm0, %v1480_v12 }
 0x12e   : > { %3365 = vmatmul.mubr.msk.f32.gmra.mrb[38].mxu0 %vm540_vm0, %v1481_v13 }
 0x12f   : > { %3427 = vmatprep.mubr.msk.f32.mxu0 %vm3666_vm2, %v3664_v26 }
 0x1c5   : > { %v3241_v15 = vpop.f32.mrb[8].mxu0 }
 0x1c6   : > { %v790_v17 = vadd.f32 %v3241_v15, %v3983_v14  ;;  %v784_v18 = vpop.f32.mrb[9].mxu0 }
 0x1c7   : > { %v785_v19 = vadd.f32 %v3983_v14, %v784_v18 }
 0x1c8   : > { %v3987_v20 = vmax.f32 %v790_v17, 0.0 }
 0x1c9   : > { %v3989_v21 = vmax.f32 %v785_v19, 0.0  ;;  %v3244_v22 = vpop.f32.mrb[10].mxu0 }
 0x1ca   : > { %833 = vst [vmem:[#allocation2 + $0x21] sm:$0xff] %v3987_v20  ;;  %v800_v23 = vadd.f32 %v3244_v22, %v3983_v14  ;;  %v794_v24 = vpop.f32.mrb[11].mxu0 }
 0x1cb   : > { %832 = vst [vmem:[#allocation2 + $0x11] sm:$0xff] %v3989_v21  ;;  %v795_v28 = vadd.f32 %v3983_v14, %v794_v24 }
 0x1cc   : > { %v3995_v29 = vmax.f32 %v800_v23, 0.0 }
 0x1cd   : > { %v3997_v30 = vmax.f32 %v795_v28, 0.0  ;;  %v3247_v31 = vpop.f32.mrb[12].mxu0 }
 0x1ce   : > { %835 = vst [vmem:[#allocation2 + $0x41] sm:$0xff] %v3995_v29  ;;  %v810_v32 = vadd.f32 %v3247_v31, %v3983_v14  ;;  %v804_v33 = vpop.f32.mrb[13].mxu0 }
 0x1cf   : > { %834 = vst [vmem:[#allocation2 + $0x31] sm:$0xff] %v3997_v30  ;;  %v805_v34 = vadd.f32 %v3983_v14, %v804_v33 }
 0x1d0   : > { %v4003_v35 = vmax.f32 %v810_v32, 0.0 }
 0x1d1   : > { %v4005_v36 = vmax.f32 %v805_v34, 0.0  ;;  %v3250_v37 = vpop.f32.mrb[14].mxu0 }
 0x1d2   : > { %837 = vst [vmem:[#allocation2 + $0x61] sm:$0xff] %v4003_v35  ;;  %v814_v38 = vpop.f32.mrb[15].mxu0  ;;  %v4010_v39 = vadd.f32 %v3250_v37, %v3983_v14 }
 0x1d3   : > { %836 = vst [vmem:[#allocation2 + $0x51] sm:$0xff] %v4005_v36  ;;  %v815_v40 = vadd.f32 %v3983_v14, %v814_v38 }
 0x1d4   : > { %v5269_v43 = vmax.f32 %v4010_v39, 0.0 }
 0x1d5   : > { %v3261_v41 = vpop.f32.mrb[16].mxu0  ;;  %v4014_v44 = vmax.f32 %v815_v40, 0.0 }
 0x1d6   : > { %v949_v42 = vpop.f32.mrb[17].mxu0  ;;  %839 = vst [vmem:[#allocation2 + $0x81] sm:$0xff] %v5269_v43  ;;  %v955_v47 = vadd.f32 %v3261_v41, %v3903_v27 }
 0x1d7   : > { %v950_v45 = vadd.f32 %v3903_v27, %v949_v42  ;;  %838 = vst [vmem:[#allocation2 + $0x71] sm:$0xff] %v4014_v44 }
 0x1d8   : > { %v989_v51 = vmax.f32 %v955_v47, 0.0 }
 0x1d9   : > { %v3264_v46 = vpop.f32.mrb[18].mxu0  ;;  %v988_v49 = vmax.f32 %v950_v45, 0.0 }
 0x1da   : > { %v959_v48 = vpop.f32.mrb[19].mxu0  ;;  %v965_v52 = vadd.f32 %v3264_v46, %v3903_v27 }
 0x1db   : > { %v960_v53 = vadd.f32 %v3903_v27, %v959_v48  ;;  %3287 = vmatprep.mubr.msk.f32.mxu1 %vm693_vm1, %v988_v49 }
 0x1dc   : > { %3288 = vmatmul.mubr.msk.f32.vlgmr.msra.gmra.mrb[0].mxu1 %vm693_vm1, %v989_v51  ;;  %v991_v59 = vmax.f32 %v965_v52, 0.0 }
 0x1dd   : > { %v3267_v50 = vpop.f32.mrb[20].mxu0  ;;  %v990_v56 = vmax.f32 %v960_v53, 0.0  ;;  %3544 = vmatpush3.bf16.msra.mxu1 %v3769_v8 }
 0x1de   : > { %v969_v54 = vpop.f32.mrb[21].mxu0  ;;  %v975_v60 = vadd.f32 %v3267_v50, %v3903_v27  ;;  %3546 = vmatprep.subr.bf16.mxu1 %v3780_v11 }
 0x1df   : > { %v970_v55 = vadd.f32 %v3903_v27, %v969_v54  ;;  %3290 = vmatprep.mubr.msk.f32.mxu1 %vm693_vm1, %v990_v56 }
 0x1e0   : > { %3291 = vmatmul.mubr.msk.f32.gmra.mrb[2].mxu1 %vm693_vm1, %v991_v59  ;;  %v993_v1 = vmax.f32 %v975_v60, 0.0 }
 0x1e1   : > { %v992_v57 = vmax.f32 %v970_v55, 0.0  ;;  %v3270_v58 = vpop.f32.mrb[22].mxu0  ;;  %3548 = vmatpush3.bf16.msra.mxu1 %v3780_v11 }
 0x1e2   : > { %v979_v61 = vpop.f32.mrb[23].mxu0  ;;  %v985_v2 = vadd.f32 %v3270_v58, %v3903_v27  ;;  %3550 = vmatprep.subr.bf16.mxu1 %v3801_v16 }
 0x1e3   : > { %v980_v62 = vadd.f32 %v3903_v27, %v979_v61  ;;  %3293 = vmatprep.mubr.msk.f32.mxu1 %vm693_vm1, %v992_v57 }
 0x1e4   : > { %3294 = vmatmul.mubr.msk.f32.gmra.mrb[4].mxu1 %vm693_vm1, %v993_v1  ;;  %v995_v7 = vmax.f32 %v985_v2, 0.0  ;;  %v2559_v2 = vld [vmem:[%s5262_s7] sm:$0xff] }
 0x1e5   : > { %v994_v63 = vmax.f32 %v980_v62, 0.0  ;;  %v3309_v0 = vpop.f32.mrb[24].mxu0  ;;  %3552 = vmatpush3.bf16.msra.mxu1 %v3801_v16 }
 0x1e6   : > { %v1266_v3 = vpop.f32.mrb[25].mxu0  ;;  %v1272_v9 = vadd.f32 %v3309_v0, %v3903_v27  ;;  %3554 = vmatprep.subr.bf16.mxu1 %v3831_v25  ;;  %v4090_v0 = vld [vmem:[%s5260_s5 + $0x1] ss:$0 sm:$0xff] }
 0x1e7   : > { %v1267_v4 = vadd.f32 %v3903_v27, %v1266_v3  ;;  %3296 = vmatprep.mubr.msk.f32.mxu1 %vm693_vm1, %v994_v63  ;;  %v4085_v63 = vld [vmem:[%s5260_s5] ss:$0 sm:$0xff]  ;;  %v2560_v3 = vld [vmem:[%s5262_s7 + $0x8] sm:$0xff] }
 0x1e8   : > { %3297 = vmatmul.mubr.msk.f32.gmra.mrb[6].mxu1 %vm693_vm1, %v995_v7  ;;  %v1306_v17 = vmax.f32 %v1272_v9, 0.0  ;;  %v1804_v1 = vmul.f32 0.0, %v4085_v63  ;;  %v5270_v7 = vmov 0.0|0.0   ;;  %v3582_v9 = vpack.c.bf16 %v2560_v3, %v2559_v2  ;;  %v4198_v2 = vld [vmem:[%s5260_s5 + $0x9] ss:$0 sm:$0xff] }
 0x1e9   : > { %v1305_v5 = vmax.f32 %v1267_v4, 0.0  ;;  %v3312_v6 = vpop.f32.mrb[26].mxu0  ;;  %3556 = vmatpush3.bf16.msra.mxu1 %v3831_v25  ;;  %v2561_v4 = vld [vmem:[%s5262_s7 + $0x10] sm:$0xff]  ;;  %3581 = vmatprep.subr.bf16.mxu0 %v5270_v7 }
 0x1ea   : > { %v1276_v10 = vpop.f32.mrb[27].mxu0  ;;  %v1282_v18 = vadd.f32 %v3312_v6, %v3903_v27  ;;  %3566 = vmatprep.subr.bf16.mxu1 %v3769_v8  ;;  %v1850_v6 = vld [vmem:[#allocation2 + $0x1] sm:$0xff]  ;;  %3583 = vmatpush3.bf16.msra.mxu0 %v3582_v9  ;;  %v4209_v9 = vld [vmem:[%s5260_s5 + $0x16] ss:$0 sm:$0xff] }
 0x1eb   : > { %v1277_v12 = vadd.f32 %v3903_v27, %v1276_v10  ;;  %3335 = vmatprep.mubr.msk.f32.mxu1 %vm693_vm1, %v1305_v5  ;;  %v4106_v5 = vld [vmem:[%s5260_s5 + $0x2] ss:$0 sm:$0xff]  ;;  %v2562_v10 = vld [vmem:[%s5262_s7 + $0x18] sm:$0xff]  ;;  %3584 = vmatprep.subr.bf16.mxu0 %v5270_v7 }
 0x1ec   : > { %3336 = vmatmul.mubr.msk.f32.vlgmr.msra.gmra.mrb[8].mxu1 %vm693_vm1, %v1306_v17  ;;  %v1308_v28 = vmax.f32 %v1282_v18, 0.0  ;;  %v2563_v17 = vld [vmem:[%s5262_s7 + $0x20] sm:$0xff]  ;;  %v2564_v18 = vld [vmem:[%s5262_s7 + $0x28] sm:$0xff] }
 0x1ed   : > { %v1307_v13 = vmax.f32 %v1277_v12, 0.0  ;;  %v3315_v15 = vpop.f32.mrb[28].mxu0  ;;  %3568 = vmatpush3.bf16.msra.mxu1 %v3769_v8  ;;  %v3585_v12 = vpack.c.bf16 %v2562_v10, %v2561_v4  ;;  %v4214_v10 = vld [vmem:[%s5260_s5 + $0xa] ss:$0 sm:$0xff] }
 0x1ee   : > { %v1286_v19 = vpop.f32.mrb[29].mxu0  ;;  %v1292_v31 = vadd.f32 %v3315_v15, %v3903_v27  ;;  %3570 = vmatprep.subr.bf16.mxu1 %v3780_v11  ;;  %v1863_v15 = vmul.f32 %v4106_v5, %v1850_v6  ;;  %v4204_v6 = vld [vmem:[%s5260_s5 + $0xc] ss:$0 sm:$0xff] }
 0x1ef   : > { %v1287_v22 = vadd.f32 %v3903_v27, %v1286_v19  ;;  %3338 = vmatprep.mubr.msk.f32.mxu1 %vm693_vm1, %v1307_v13  ;;  %v1879_v19 = vld [vmem:[#allocation2 + $0xa1] sm:$0xff]  ;;  %3586 = vmatpush3.bf16.msra.mxu0 %v3585_v12  ;;  %v1792_v12 = vld [vmem:[#allocation2 + $0x10] sm:$0xff] }
 0x1f0   : > { %3339 = vmatmul.mubr.msk.f32.gmra.mrb[10].mxu1 %vm693_vm1, %v1308_v28  ;;  %v1310_v37 = vmax.f32 %v1292_v31, 0.0  ;;  %3587 = vmatprep.subr.bf16.mxu0 %v5270_v7  ;;  %v2565_v28 = vld [vmem:[%s5262_s7 + $0x30] sm:$0xff]  ;;  %v2566_v31 = vld [vmem:[%s5262_s7 + $0x38] sm:$0xff] }
 0x1f1   : > { %v1309_v23 = vmax.f32 %v1287_v22, 0.0  ;;  %v3318_v24 = vpop.f32.mrb[30].mxu0  ;;  %3572 = vmatpush3.bf16.msra.mxu1 %v3780_v11  ;;  %v3588_v22 = vpack.c.bf16 %v2564_v18, %v2563_v17  ;;  %v4220_v17 = vld [vmem:[#allocation2 + $0x22] sm:$0xff]  ;;  %v4224_v18 = vmul.f32 %v4204_v6, %v3987_v20 }
 0x1f2   : > { %v1296_v32 = vpop.f32.mrb[31].mxu0  ;;  %v1302_v38 = vadd.f32 %v3318_v24, %v3903_v27  ;;  %3574 = vmatprep.subr.bf16.mxu1 %v3801_v16 }
 0x1f3   : > { %v1297_v33 = vadd.f32 %v3903_v27, %v1296_v32  ;;  %3341 = vmatprep.mubr.msk.f32.mxu1 %vm693_vm1, %v1309_v23  ;;  %v4139_v32 = vld [vmem:[%s5260_s5 + $0x4] ss:$0 sm:$0xff]  ;;  %3589 = vmatpush3.bf16.msra.mxu0 %v3588_v22  ;;  %5283 = vst [vmem:[#allocation3_spill] sm:$0xff] %v4224_v18  ;;  %v4229_v22 = vld [vmem:[%s5260_s5 + $0xe] ss:$0 sm:$0xff] }
 0x1f4   : > { %3342 = vmatmul.mubr.msk.f32.gmra.mrb[12].mxu1 %vm693_vm1, %v1310_v37  ;;  %v1312_v45 = vmax.f32 %v1302_v38, 0.0  ;;  %3590 = vmatprep.subr.bf16.mxu0 %v5270_v7  ;;  %v2567_v38 = vld [vmem:[%s5262_s7 + $0x40] sm:$0xff] }
 0x1f5   : > { %v1311_v34 = vmax.f32 %v1297_v33, 0.0  ;;  %v3357_v8 = vpop.f32.mrb[32].mxu0  ;;  %3576 = vmatpush3.bf16.msra.mxu1 %v3801_v16  ;;  %v1908_v33 = vld [vmem:[#allocation2 + $0x2] sm:$0xff] }
 0x1f6   : > { %v1583_v40 = vpop.f32.mrb[33].mxu0  ;;  %v1589_v46 = vadd.f32 %v3357_v8, %v3903_v27  ;;  %3578 = vmatprep.subr.bf16.mxu1 %v3831_v25  ;;  %v1921_v37 = vmul.f32 %v4139_v32, %v1908_v33  ;;  %v4250_v33 = vmul.f32 %v4106_v5, %v3995_v29 }
 0x1f7   : > { %v1584_v41 = vadd.f32 %v3903_v27, %v1583_v40  ;;  %3344 = vmatprep.mubr.msk.f32.mxu1 %vm693_vm1, %v1311_v34  ;;  %v3591_v34 = vpack.c.bf16 %v2566_v31, %v2565_v28  ;;  %v2568_v40 = vld [vmem:[%s5262_s7 + $0x48] sm:$0xff]  ;;  %v4242_v28 = vmul.f32 %v4106_v5, %v3989_v21  ;;  %v4246_v31 = vmul.f32 %v4204_v6, %v3989_v21 }
 0x1f8   : > { %3345 = vmatmul.mubr.msk.f32.gmra.mrb[14].mxu1 %vm693_vm1, %v1312_v45  ;;  %v1623_v50 = vmax.f32 %v1589_v46, 0.0  ;;  %v2569_v46 = vld [vmem:[%s5262_s7 + $0x50] sm:$0xff] }
 0x1f9   : > { %v1622_v42 = vmax.f32 %v1584_v41, 0.0  ;;  %v3360_v11 = vpop.f32.mrb[34].mxu0  ;;  %3580 = vmatpush3.bf16.msra.mxu1 %v3831_v25  ;;  %v4152_v41 = vld [vmem:[%s5260_s5 + $0x5] ss:$0 sm:$0xff]  ;;  %3592 = vmatpush3.bf16.msra.mxu0 %v3591_v34  ;;  %v1909_v34 = vld [vmem:[#allocation2 + $0x12] sm:$0xff] }
 0x1fa   : > { %v1593_v47 = vpop.f32.mrb[35].mxu0  ;;  %v1599_v51 = vadd.f32 %v3360_v11, %v3903_v27  ;;  %3605 = vmatprep.subr.bf16.mxu1 %v5270_v7  ;;  %v1951_v45 = vmul.f32 0.0, %v4152_v41  ;;  %3593 = vmatprep.subr.bf16.mxu0 %v5270_v7 }
 0x1fb   : > { %v1594_v48 = vadd.f32 %v3903_v27, %v1593_v47  ;;  %3383 = vmatprep.mubr.msk.f32.mxu1 %vm693_vm1, %v1622_v42  ;;  %v3594_v42 = vpack.c.bf16 %v2568_v40, %v2567_v38  ;;  %v2570_v47 = vld [vmem:[%s5262_s7 + $0x58] sm:$0xff]  ;;  %v4263_v38 = vmul.f32 %v4106_v5, %v3997_v30  ;;  %v4270_v40 = vmul.f32 %v4139_v32, %v4220_v17 }
 0x1fc   : > { %3384 = vmatmul.mubr.msk.f32.vlgmr.msra.gmra.mrb[16].mxu1 %vm693_vm1, %v1623_v50  ;;  %v1625_v56 = vmax.f32 %v1599_v51, 0.0  ;;  %v2571_v51 = vld [vmem:[%s5262_s7 + $0x60] sm:$0xff] }
 0x1fd   : > { %v1624_v49 = vmax.f32 %v1594_v48, 0.0  ;;  %v3363_v16 = vpop.f32.mrb[36].mxu0  ;;  %v4165_v48 = vld [vmem:[%s5260_s5 + $0x6] ss:$0 sm:$0xff]  ;;  %3595 = vmatpush3.bf16.msra.mxu0 %v3594_v42 }
 0x1fe   : > { %v1603_v52 = vpop.f32.mrb[37].mxu0  ;;  %v1609_v57 = vadd.f32 %v3363_v16, %v3903_v27  ;;  %v1981_v50 = vmul.f32 0.0, %v4165_v48  ;;  %3596 = vmatprep.subr.bf16.mxu0 %v5270_v7  ;;  %v1795_v42 = vld [vmem:[#allocation2 + $0x40] sm:$0xff] }
 0x1ff   : > { %v1604_v53 = vadd.f32 %v3903_v27, %v1603_v52  ;;  %3386 = vmatprep.mubr.msk.f32.mxu1 %vm693_vm1, %v1624_v49  ;;  %v3597_v49 = vpack.c.bf16 %v2570_v47, %v2569_v46  ;;  %v2572_v52 = vld [vmem:[%s5262_s7 + $0x68] sm:$0xff]  ;;  %v4285_v46 = vmul.f32 %v4229_v22, %v4220_v17 }
 0x200   : > { %3387 = vmatmul.mubr.msk.f32.gmra.mrb[18].mxu1 %vm693_vm1, %v1625_v56  ;;  %v1627_v60 = vmax.f32 %v1609_v57, 0.0 }
 0x201   : > { %v1626_v54 = vmax.f32 %v1604_v53, 0.0  ;;  %v3366_v55 = vpop.f32.mrb[38].mxu0  ;;  %v1997_v53 = vld [vmem:[#allocation2 + $0x141] sm:$0xff]  ;;  %3598 = vmatpush3.bf16.msra.mxu0 %v3597_v49  ;;  %5289 = vst [vmem:[#allocation9_spill] sm:$0xff] %v4285_v46  ;;  %v4291_v49 = vmul.f32 %v4085_v63, %v1792_v12  ;;  %v4376_v46 = vmul.f32 %v4209_v9, %v4005_v36 }
 0x202   : > { %v1613_v25 = vpop.f32.mrb[39].mxu0  ;;  %v1619_v61 = vadd.f32 %v3366_v55, %v3903_v27  ;;  %v3600_v55 = vpack.c.bf16 %v2572_v52, %v2571_v51  ;;  %3599 = vmatprep.subr.bf16.mxu0 %v5270_v7  ;;  %v1794_v51 = vld [vmem:[#allocation2 + $0x30] sm:$0xff]  ;;  %v4301_v52 = vmul.f32 %v4106_v5, %v4003_v35 }
 0x203   : > { %v1614_v58 = vadd.f32 %v3903_v27, %v1613_v25  ;;  %3389 = vmatprep.mubr.msk.f32.mxu1 %vm693_vm1, %v1626_v54  ;;  %v1834_v27 = vmul.f32 0.0, %v4090_v0  ;;  %v4178_v54 = vld [vmem:[%s5260_s5 + $0x7] ss:$0 sm:$0xff]  ;;  %v2573_v25 = vld [vmem:[%s5262_s7 + $0x70] sm:$0xff]  ;;  %5298 = vst [vmem:[#allocation18_spill] sm:$0xff] %v4376_v46 }
 0x204   : > { %3390 = vmatmul.mubr.msk.f32.gmra.mrb[20].mxu1 %vm693_vm1, %v1627_v60  ;;  %v1629_v62 = vmax.f32 %v1619_v61, 0.0  ;;  %v2010_v57 = vmul.f32 %v4178_v54, %v1997_v53  ;;  %v4191_v60 = vld [vmem:[%s5260_s5 + $0x8] ss:$0 sm:$0xff]  ;;  %v4305_v53 = vmul.f32 %v4204_v6, %v4003_v35  ;;  %v4325_v35 = vld [vmem:[%s5260_s5 + $0x18] ss:$0 sm:$0xff] }
 0x205   : > { %v1628_v59 = vmax.f32 %v1614_v58, 0.0  ;;  %v1842_v13 = vadd.f32 %v1834_v27, %v1804_v1  ;;  %v2574_v58 = vld [vmem:[%s5262_s7 + $0x78] sm:$0xff]  ;;  %3601 = vmatpush3.bf16.msra.mxu0 %v3600_v55  ;;  %v2055_v27 = vld [vmem:[#allocation2 + $0x142] sm:$0xff]  ;;  %5293 = vst [vmem:[#allocation13_spill] sm:$0xff] %v4325_v35 }
 0x206   : > { %v3603_v61 = vpack.c.bf16 %v2574_v58, %v2573_v25  ;;  %3602 = vmatprep.subr.bf16.mxu0 %v5270_v7  ;;  %v2068_v4 = vmul.f32 %v4198_v2, %v2055_v27  ;;  %5291 = vst [vmem:[#allocation11_spill] sm:$0xff] %v4305_v53  ;;  %v4316_v25 = vmul.f32 %v4106_v5, %v4005_v36  ;;  %v2650_v7 = vld [vmem:[%s5264_s9 + $0x18] sm:$0xff] }
 0x207   : > { %3392 = vmatprep.mubr.msk.f32.mxu1 %vm693_vm1, %v1628_v59  ;;  %v1871_v23 = vadd.f32 %v1863_v15, %v1842_v13  ;;  %v2026_v59 = vld [vmem:[#allocation2 + $0x1e1] sm:$0xff]  ;;  %v4218_v15 = vmul.f32 %v4106_v5, %v3987_v20  ;;  %v4320_v58 = vmul.f32 %v4204_v6, %v4005_v36 }
 0x208   : > { %3393 = vmatmul.mubr.msk.f32.gmra.mrb[22].mxu1 %vm693_vm1, %v1629_v62  ;;  %v2039_v1 = vmul.f32 %v4191_v60, %v2026_v59  ;;  %v1793_v13 = vld [vmem:[#allocation2 + $0x20] sm:$0xff] }
 0x209   : > { %3438 = vmatprep.mubr.msk.f32.mxu1 %vm3666_vm2, %v3664_v26  ;;  %v4126_v26 = vld [vmem:[%s5260_s5 + $0x3] ss:$0 sm:$0xff]  ;;  %3604 = vmatpush3.bf16.msra.mxu0 %v3603_v61  ;;  %v4266_v21 = vmul.f32 %v4085_v63, %v1793_v13  ;;  %5292 = vst [vmem:[#allocation12_spill] sm:$0xff] %v4320_v58 }
 0x20a   : > { %v1892_v24 = vmul.f32 %v4126_v26, %v1879_v19 }
 0x20c   : > { %v1900_v8 = vadd.f32 %v1892_v24, %v1871_v23  ;;  %v4234_v23 = vld [vmem:[%s5260_s5 + $0x14] ss:$0 sm:$0xff]  ;;  %v4238_v24 = vmul.f32 %v4209_v9, %v3987_v20  ;;  %v4259_v20 = vmul.f32 %v4209_v9, %v3995_v29 }
 0x20d   : > { %v4288_v47 = vmul.f32 %v4234_v23, %v1793_v13 }
 0x20e   : > { %v1929_v11 = vadd.f32 %v1921_v37, %v1900_v8  ;;  %5284 = vst [vmem:[#allocation4_spill] sm:$0xff] %v4238_v24  ;;  %v2097_v8 = vmul.f32 %v4214_v10, %v1792_v12  ;;  %v4255_v37 = vmul.f32 %v4204_v6, %v3995_v29  ;;  %5286 = vst [vmem:[#allocation6_spill] sm:$0xff] %v4259_v20  ;;  %v2648_v12 = vld [vmem:[%s5264_s9 + $0x8] sm:$0xff] }
 0x20f   : > { %v4278_v29 = vmul.f32 %v4209_v9, %v3997_v30  ;;  %5290 = vst [vmem:[#allocation10_spill] sm:$0xff] %v4288_v47  ;;  %v4361_v20 = vmul.f32 %v4214_v10, %v1794_v51  ;;  %v2207_v47 = vld [vmem:[#allocation2 + $0x82] sm:$0xff] }
 0x210   : > { %v1959_v16 = vadd.f32 %v1951_v45, %v1929_v11  ;;  %5285 = vst [vmem:[#allocation5_spill] sm:$0xff] %v4255_v37  ;;  %v4274_v11 = vmul.f32 %v4204_v6, %v3997_v30  ;;  %v4281_v45 = vmul.f32 %v4214_v10, %v1793_v13  ;;  %v4297_v30 = vmul.f32 %v4229_v22, %v1909_v34  ;;  %v2649_v13 = vld [vmem:[%s5264_s9 + $0x10] sm:$0xff] }
 0x211   : > { %5287 = vst [vmem:[#allocation7_spill] sm:$0xff] %v4278_v29  ;;  %v3609_v24 = vpack.c.bf16 %v2650_v7, %v2649_v13  ;;  %v5300_v37 = vmov 0.0|0.0  }
 0x212   : > { %v1989_v56 = vadd.f32 %v1981_v50, %v1959_v16  ;;  %5288 = vst [vmem:[#allocation8_spill] sm:$0xff] %v4281_v45  ;;  %v1912_v16 = vld [vmem:[#allocation2 + $0x42] sm:$0xff]  ;;  %v4294_v50 = vmul.f32 %v4139_v32, %v1909_v34  ;;  %v4350_v34 = vmul.f32 %v4085_v63, %v1794_v51  ;;  %v1798_v45 = vld [vmem:[#allocation2 + $0x70] sm:$0xff] }
 0x213   : > { %v4328_v61 = vmul.f32 %v4139_v32, %v1912_v16 }
 0x214   : > { %v2018_v62 = vadd.f32 %v2010_v57, %v1989_v56  ;;  %v4310_v56 = vmul.f32 %v4085_v63, %v1795_v42  ;;  %v4312_v57 = vld [vmem:[#allocation2 + $0x32] sm:$0xff] }
 0x215   : > { %v4358_v29 = vmul.f32 %v4139_v32, %v4312_v57 }
 0x216   : > { %v2047_v3 = vadd.f32 %v2039_v1, %v2018_v62  ;;  %v4331_v62 = vmul.f32 %v4214_v10, %v1795_v42  ;;  %v4334_v1 = vmul.f32 %v4229_v22, %v1912_v16  ;;  %v1914_v16 = vld [vmem:[#allocation2 + $0x62] sm:$0xff] }
 0x218   : > { %v2076_v19 = vadd.f32 %v2068_v4, %v2047_v3  ;;  %5294 = vst [vmem:[#allocation14_spill] sm:$0xff] %v4331_v62  ;;  %5295 = vst [vmem:[#allocation15_spill] sm:$0xff] %v4334_v1  ;;  %v2647_v4 = vld [vmem:[%s5264_s9] sm:$0xff] }
 0x219   : > { %v3606_v43 = vpack.c.bf16 %v2648_v12, %v2647_v4  ;;  %v1796_v4 = vld [vmem:[#allocation2 + $0x50] sm:$0xff] }
 0x21a   : > { %v4307_v55 = vadd.f32 %v2097_v8, %v2076_v19  ;;  %v4347_v19 = vmul.f32 %v4234_v23, %v1795_v42  ;;  %v1797_v8 = vld [vmem:[#allocation2 + $0x60] sm:$0xff]  ;;  %v4365_v42 = vmul.f32 %v4229_v22, %v4312_v57  ;;  %v1913_v12 = vld [vmem:[#allocation2 + $0x52] sm:$0xff]  ;;  %v4403_v46 = vmul.f32 %v4085_v63, %v1796_v4 }
 0x21b   : > { %3607 = vmatpush3.bf16.msra.mxu1 %v3606_v43  ;;  %v4379_v58 = vmul.f32 %v4085_v63, %v1797_v8  ;;  %v4392_v36 = vmul.f32 %v4214_v10, %v1797_v8  ;;  %v4395_v43 = vmul.f32 %v4229_v22, %v1914_v16  ;;  %v4398_v7 = vmul.f32 %v4234_v23, %v1797_v8 }
 0x21c   : > { %5296 = vst [vmem:[#allocation16_spill] sm:$0xff] %v4347_v19  ;;  %3608 = vmatprep.subr.bf16.mxu1 %v5300_v37  ;;  %v4409_v37 = vmul.f32 %v4214_v10, %v1796_v4  ;;  %v4414_v8 = vmul.f32 %v4229_v22, %v1913_v12 }
 0x21d   : > { %5301 = vst [vmem:[#allocation20_spill] sm:$0xff] %v4392_v36  ;;  %5302 = vst [vmem:[#allocation21_spill] sm:$0xff] %v4395_v43  ;;  %v2495_v43 = vld [vmem:[#allocation2 + $0x52] sm:$0xff]  ;;  %v5307_v36 = vmax.f32 %v4010_v39, 0.0 }
 0x21e   : > { %5303 = vst [vmem:[#allocation22_spill] sm:$0xff] %v4398_v7  ;;  %5304 = vst [vmem:[#allocation23_spill] sm:$0xff] %v4409_v37  ;;  %v4417_v7 = vmul.f32 %v4234_v23, %v1796_v4  ;;  %v4432_v4 = vmul.f32 %v4204_v6, %v4014_v44 }
 0x21f   : > { %5305 = vst [vmem:[#allocation24_spill] sm:$0xff] %v4414_v8  ;;  %v4422_v18 = vmul.f32 %v4204_v6, %v5307_v36  ;;  %3610 = vmatpush3.bf16.msra.mxu1 %v3609_v24  ;;  %v1915_v8 = vld [vmem:[#allocation2 + $0x72] sm:$0xff]  ;;  %v4449_v6 = vmul.f32 %v4325_v35, %v2495_v43  ;;  %v4468_v43 = vmul.f32 %v4085_v63, %v1798_v45 }
 0x220   : > { %5306 = vst [vmem:[#allocation25_spill] sm:$0xff] %v4417_v7  ;;  %5309 = vst [vmem:[#allocation27_spill] sm:$0xff] %v4432_v4  ;;  %v2381_v7 = vld [vmem:[#allocation2 + $0x80] sm:$0xff] }
 0x221   : > { %5308 = vst [vmem:[#allocation26_spill] sm:$0xff] %v4422_v18  ;;  %5313 = vst [vmem:[#allocation31_spill] sm:$0xff] %v4449_v6  ;;  %v4481_v18 = vmul.f32 %v4229_v22, %v1915_v8 }
 0x223   : > { %5318 = vst [vmem:[#allocation36_spill] sm:$0xff] %v4481_v18 }
 0x2af   : > { %v3289_v59 = vpop.f32.mrb[0].mxu1 }
 0x2b0   : > { %v1107_v27 = vadd.f32 %v3289_v59, %v3983_v14  ;;  %v1101_v3 = vpop.f32.mrb[1].mxu1 }
 0x2b1   : > { %v1102_v59 = vadd.f32 %v3983_v14, %v1101_v3  ;;  %v4370_v3 = vmul.f32 %v4234_v23, %v1794_v51 }
 0x2b2   : > { %v4367_v1 = vmax.f32 %v1107_v27, 0.0  ;;  %v4382_v27 = vmul.f32 %v4139_v32, %v1914_v16  ;;  %v2494_v16 = vld [vmem:[#allocation2 + $0x42] sm:$0xff] }
 0x2b3   : > { %5297 = vst [vmem:[#allocation17_spill] sm:$0xff] %v4370_v3  ;;  %v4372_v53 = vmax.f32 %v1102_v59, 0.0  ;;  %v3292_v19 = vpop.f32.mrb[2].mxu1  ;;  %v4388_v59 = vmul.f32 %v4325_v35, %v4220_v17  ;;  %v4406_v17 = vmul.f32 %v4139_v32, %v1913_v12  ;;  %v4428_v12 = vmul.f32 %v4106_v5, %v4014_v44 }
 0x2b4   : > { %1150 = vst [vmem:[#allocation2 + $0xc1] sm:$0xff] %v4367_v1  ;;  %v1117_v51 = vadd.f32 %v3292_v19, %v3983_v14  ;;  %v1111_v3 = vpop.f32.mrb[3].mxu1  ;;  %v2438_v19 = vld [vmem:[#allocation2 + $0x61] sm:$0xff]  ;;  %v4443_v5 = vmul.f32 %v4325_v35, %v4312_v57  ;;  %v4446_v44 = vmul.f32 %v4325_v35, %v2494_v16  ;;  %v2439_v57 = vld [vmem:[#allocation2 + $0x71] sm:$0xff] }
 0x2b5   : > { %5299 = vst [vmem:[#allocation19_spill] sm:$0xff] %v4388_v59  ;;  %1149 = vst [vmem:[#allocation2 + $0xb1] sm:$0xff] %v4372_v53  ;;  %v1112_v13 = vadd.f32 %v3983_v14, %v1111_v3  ;;  %v2091_v3 = vld [vmem:[#allocation2 + $0x80] sm:$0xff] }
 0x2b6   : > { %v4411_v59 = vmax.f32 %v1117_v51, 0.0  ;;  %v2496_v51 = vld [vmem:[#allocation2 + $0x62] sm:$0xff]  ;;  %5311 = vst [vmem:[#allocation29_spill] sm:$0xff] %v4443_v5  ;;  %5312 = vst [vmem:[#allocation30_spill] sm:$0xff] %v4446_v44 }
 0x2b7   : > { %v4424_v62 = vmax.f32 %v1112_v13, 0.0  ;;  %v3295_v37 = vpop.f32.mrb[4].mxu1  ;;  %v4437_v13 = vmul.f32 %v4209_v9, %v2438_v19  ;;  %v4455_v19 = vmul.f32 %v4229_v22, %v2207_v47  ;;  %v2440_v5 = vld [vmem:[#allocation2 + $0x81] sm:$0xff]  ;;  %v4465_v16 = vmul.f32 %v4325_v35, %v2496_v51 }
 0x2b8   : > { %1152 = vst [vmem:[#allocation2 + $0xe1] sm:$0xff] %v4411_v59  ;;  %v1127_v39 = vadd.f32 %v3295_v37, %v3983_v14  ;;  %v1121_v36 = vpop.f32.mrb[5].mxu1  ;;  %v4452_v37 = vmul.f32 %v4214_v10, %v2091_v3  ;;  %v4471_v3 = vmul.f32 %v4139_v32, %v1915_v8  ;;  %v4474_v47 = vmul.f32 %v4214_v10, %v1798_v45 }
 0x2b9   : > { %5310 = vst [vmem:[#allocation28_spill] sm:$0xff] %v4437_v13  ;;  %1151 = vst [vmem:[#allocation2 + $0xd1] sm:$0xff] %v4424_v62  ;;  %v1122_v24 = vadd.f32 %v3983_v14, %v1121_v36  ;;  %v4460_v36 = vld [vmem:[%s5260_s5 + $0xb] ss:$0 sm:$0xff]  ;;  %v4490_v10 = vmul.f32 %v4234_v23, %v2381_v7  ;;  %v4496_v22 = vmul.f32 %v4209_v9, %v2439_v57  ;;  %v4510_v7 = vld [vmem:[%s5260_s5 + $0x15] ss:$0 sm:$0xff] }
 0x2ba   : > { %5314 = vst [vmem:[#allocation32_spill] sm:$0xff] %v4452_v37  ;;  %5315 = vst [vmem:[#allocation33_spill] sm:$0xff] %v4455_v19  ;;  %v4462_v13 = vmax.f32 %v1127_v39, 0.0  ;;  %v2497_v19 = vld [vmem:[#allocation2 + $0x72] sm:$0xff]  ;;  %v4499_v8 = vmul.f32 %v4209_v9, %v2440_v5 }
 0x2bb   : > { %5316 = vst [vmem:[#allocation34_spill] sm:$0xff] %v4465_v16  ;;  %5317 = vst [vmem:[#allocation35_spill] sm:$0xff] %v4474_v47  ;;  %v4476_v6 = vld [vmem:[#allocation2 + $0xc0] sm:$0xff]  ;;  %v4478_v44 = vmax.f32 %v1122_v24, 0.0  ;;  %v3298_v39 = vpop.f32.mrb[6].mxu1  ;;  %v4487_v16 = vmul.f32 %v4234_v23, %v1798_v45  ;;  %v4517_v5 = vmul.f32 %v4325_v35, %v2497_v19  ;;  %v1893_v19 = vmul.f32 %v4126_v26, %v4372_v53 }
 0x2bc   : > { %v1836_v51 = vmul.f32 %v4090_v0, %v4476_v6  ;;  %v1822_v63 = vld [vmem:[#allocation2 + $0xb0] sm:$0xff]  ;;  %1154 = vst [vmem:[#allocation2 + $0x101] sm:$0xff] %v4462_v13  ;;  %v1131_v32 = vpop.f32.mrb[7].mxu1  ;;  %5320 = vst [vmem:[#allocation38_spill] sm:$0xff] %v4490_v10  ;;  %v4505_v45 = vld [vmem:[%s5260_s5 + $0xd] ss:$0 sm:$0xff] }
 0x2bd   : > { %5319 = vst [vmem:[#allocation37_spill] sm:$0xff] %v4487_v16  ;;  %v1835_v24 = vmul.f32 %v4090_v0, %v1822_v63  ;;  %v2126_v37 = vmul.f32 %v4460_v36, %v1822_v63  ;;  %1153 = vst [vmem:[#allocation2 + $0xf1] sm:$0xff] %v4478_v44  ;;  %v1137_v63 = vadd.f32 %v3298_v39, %v3983_v14  ;;  %v3654_v16 = vld [vmem:[#allocation2 + $0x1d0] sm:$0xff] }
 0x2be   : > { %5321 = vst [vmem:[#allocation39_spill] sm:$0xff] %v4496_v22  ;;  %5322 = vst [vmem:[#allocation40_spill] sm:$0xff] %v4499_v8  ;;  %v1844_v18 = vadd.f32 %v1836_v51, %v4266_v21  ;;  %v4514_v57 = vmul.f32 %v3654_v16, %v4234_v23  ;;  %v1132_v8 = vadd.f32 %v3983_v14, %v1131_v32  ;;  %v2441_v39 = vld [vmem:[#allocation2 + $0x91] sm:$0xff] }
 0x2bf   : > { %5323 = vst [vmem:[#allocation41_spill] sm:$0xff] %v4510_v7  ;;  %5325 = vst [vmem:[#allocation43_spill] sm:$0xff] %v4517_v5  ;;  %v1843_v21 = vadd.f32 %v1835_v24, %v4291_v49  ;;  %v2134_v51 = vadd.f32 %v2126_v37, %v4307_v55  ;;  %v4521_v22 = vld [vmem:[#allocation2 + $0xe0] sm:$0xff]  ;;  %v3337_v10 = vpop.f32.mrb[8].mxu1  ;;  %v4525_v4 = vmul.f32 %v3654_v16, %v4510_v7  ;;  %v4547_v24 = vld [vmem:[%s5260_s5 + $0x17] ss:$0 sm:$0xff] }
 0x2c0   : > { %5324 = vst [vmem:[#allocation42_spill] sm:$0xff] %v4514_v57  ;;  %v1873_v47 = vadd.f32 %v4218_v15, %v1844_v18  ;;  %v1894_v23 = vmul.f32 %v4126_v26, %v4367_v1  ;;  %v1838_v49 = vmul.f32 %v4090_v0, %v4521_v22  ;;  %v4534_v55 = vld [vmem:[#allocation2 + $0xd0] sm:$0xff]  ;;  %v1418_v37 = vpop.f32.mrb[9].mxu1  ;;  %v2184_v32 = vmul.f32 %v4505_v45, %v4372_v53 }
 0x2c1   : > { %5326 = vst [vmem:[#allocation44_spill] sm:$0xff] %v4525_v4  ;;  %v1872_v14 = vadd.f32 %v4242_v28, %v1843_v21  ;;  %v2163_v16 = vadd.f32 %v4246_v31, %v2134_v51  ;;  %v1837_v15 = vmul.f32 %v4090_v0, %v4534_v55  ;;  %5327 = vst [vmem:[#allocation45_spill] sm:$0xff] %v4547_v24  ;;  %v4550_v4 = vmax.f32 %v1137_v63, 0.0 }
 0x2c2   : > { %v4542_v18 = vadd.f32 %v1894_v23, %v1873_v47  ;;  %v1846_v5 = vadd.f32 %v1838_v49, %v4310_v56  ;;  %v4553_v28 = vmul.f32 %v4209_v9, %v2441_v39  ;;  %v4562_v51 = vmax.f32 %v1132_v8, 0.0 }
 0x2c3   : > { %5328 = vst [vmem:[#allocation46_spill] sm:$0xff] %v4550_v4  ;;  %v4555_v31 = vadd.f32 %v1893_v19, %v1872_v14  ;;  %v4557_v53 = vadd.f32 %v2184_v32, %v2163_v16  ;;  %v1845_v21 = vadd.f32 %v1837_v15, %v4350_v34  ;;  %v4560_v47 = vld [vmem:[#allocation2 + $0x100] sm:$0xff]  ;;  %v3340_v23 = vpop.f32.mrb[10].mxu1  ;;  %v4566_v35 = vmul.f32 %v4505_v45, %v4367_v1 }
 0x2c4   : > { %5329 = vst [vmem:[#allocation47_spill] sm:$0xff] %v4553_v28  ;;  %5330 = vst [vmem:[#allocation48_spill] sm:$0xff] %v4562_v51  ;;  %v1875_v56 = vadd.f32 %v4250_v33, %v1846_v5  ;;  %v1896_v9 = vmul.f32 %v4126_v26, %v4411_v59  ;;  %v1840_v63 = vmul.f32 %v4090_v0, %v4560_v47  ;;  %v1826_v39 = vld [vmem:[#allocation2 + $0xf0] sm:$0xff]  ;;  %v4577_v34 = vld [vmem:[%s5259_s4] ss:$0 sm:$0xff]  ;;  %v1428_v8 = vpop.f32.mrb[11].mxu1 }
 0x2c5   : > { %5331 = vst [vmem:[#allocation49_spill] sm:$0xff] %v4566_v35  ;;  %1156 = vst [vmem:[#allocation2 + $0x121] sm:$0xff] %v4550_v4  ;;  %v4581_v19 = vmul.f32 %v4547_v24, %v4367_v1  ;;  %v1874_v33 = vadd.f32 %v4263_v38, %v1845_v21  ;;  %v1895_v5 = vmul.f32 %v4126_v26, %v4424_v62 }
 0x2c6   : > { %v1839_v49 = vmul.f32 %v4090_v0, %v1826_v39  ;;  %1155 = vst [vmem:[#allocation2 + $0x111] sm:$0xff] %v4562_v51  ;;  %v4588_v14 = vadd.f32 %v1896_v9, %v1875_v56  ;;  %v4592_v16 = vmul.f32 %v4505_v45, %v4411_v59  ;;  %v1848_v32 = vadd.f32 %v1840_v63, %v4379_v58 }
 0x2c7   : > { %5332 = vst [vmem:[#allocation50_spill] sm:$0xff] %v4581_v19  ;;  %v4597_v1 = vmul.f32 %v4547_v24, %v4411_v59  ;;  %v4599_v38 = vadd.f32 %v1895_v5, %v1874_v33  ;;  %v4603_v15 = vmul.f32 %v4505_v45, %v4424_v62  ;;  %v1424_v56 = vadd.f32 %v3337_v10, %v4577_v34  ;;  %v3343_v9 = vpop.f32.mrb[12].mxu1 }
 0x2c8   : > { %5333 = vst [vmem:[#allocation51_spill] sm:$0xff] %v4592_v16  ;;  %v1847_v21 = vadd.f32 %v1839_v49, %v4403_v46  ;;  %v4609_v28 = vmul.f32 %v4547_v24, %v4424_v62  ;;  %v1877_v58 = vadd.f32 %v4301_v52, %v1848_v32  ;;  %v1898_v59 = vmul.f32 %v4126_v26, %v4462_v13  ;;  %v1438_v33 = vpop.f32.mrb[13].mxu1 }
 0x2c9   : > { %5334 = vst [vmem:[#allocation52_spill] sm:$0xff] %v4597_v1  ;;  %v1419_v63 = vadd.f32 %v4577_v34, %v1418_v37  ;;  %v1897_v46 = vmul.f32 %v4126_v26, %v4478_v44  ;;  %v1458_v49 = vmax.f32 %v1424_v56, 0.0  ;;  %v1434_v10 = vadd.f32 %v3340_v23, %v4577_v34 }
 0x2ca   : > { %5335 = vst [vmem:[#allocation53_spill] sm:$0xff] %v4609_v28  ;;  %v1876_v5 = vadd.f32 %v4316_v25, %v1847_v21  ;;  %v4621_v62 = vmul.f32 %v4460_v36, %v4476_v6  ;;  %v4623_v57 = vadd.f32 %v1898_v59, %v1877_v58  ;;  %v1429_v32 = vadd.f32 %v4577_v34, %v1428_v8 }
 0x2cb   : > { %v4625_v52 = vmax.f32 %v1419_v63, 0.0  ;;  %v4630_v37 = vmul.f32 %v4510_v7, %v4476_v6  ;;  %v4634_v25 = vmul.f32 %v4505_v45, %v4462_v13  ;;  %1467 = vst [vmem:[#allocation2 + $0x161] sm:$0xff] %v1458_v49  ;;  %v4638_v23 = vmax.f32 %v1434_v10, 0.0  ;;  %v3346_v56 = vpop.f32.mrb[14].mxu1 }
 0x2cc   : > { %v4636_v21 = vadd.f32 %v1897_v46, %v1876_v5  ;;  %v4642_v58 = vmul.f32 %v4505_v45, %v4478_v44  ;;  %v1459_v6 = vmax.f32 %v1429_v32, 0.0  ;;  %v1448_v8 = vpop.f32.mrb[15].mxu1  ;;  %v4649_v63 = vmul.f32 %v4547_v24, %v4478_v44 }
 0x2cd   : > { %5336 = vst [vmem:[#allocation54_spill] sm:$0xff] %v4630_v37  ;;  %5337 = vst [vmem:[#allocation55_spill] sm:$0xff] %v4634_v25  ;;  %v4644_v59 = vld [vmem:[#allocation2 + $0x110] sm:$0xff]  ;;  %v4653_v5 = vmul.f32 %v4547_v24, %v4462_v13  ;;  %v4657_v46 = vmul.f32 %v4460_v36, %v4521_v22  ;;  %v4661_v10 = vmul.f32 %v4510_v7, %v4521_v22 }
 0x2ce   : > { %5338 = vst [vmem:[#allocation56_spill] sm:$0xff] %v4642_v58  ;;  %5339 = vst [vmem:[#allocation57_spill] sm:$0xff] %v4644_v59  ;;  %v4665_v32 = vmul.f32 %v4460_v36, %v4534_v55  ;;  %v1841_v44 = vmul.f32 %v4090_v0, %v4644_v59  ;;  %v4672_v13 = vmul.f32 %v4510_v7, %v4534_v55 }
 0x2cf   : > { %1466 = vst [vmem:[#allocation2 + $0x151] sm:$0xff] %v4625_v52  ;;  %5340 = vst [vmem:[#allocation58_spill] sm:$0xff] %v4649_v63  ;;  %v4680_v22 = vmul.f32 %v4505_v45, %v4550_v4  ;;  %v1444_v63 = vadd.f32 %v3343_v9, %v4577_v34  ;;  %v4684_v24 = vmul.f32 %v4460_v36, %v1826_v39 }
 0x2d0   : > { %5341 = vst [vmem:[#allocation59_spill] sm:$0xff] %v4653_v5  ;;  %5342 = vst [vmem:[#allocation60_spill] sm:$0xff] %v4657_v46  ;;  %v4676_v5 = vmul.f32 %v4460_v36, %v4560_v47  ;;  %v1849_v0 = vadd.f32 %v1841_v44, %v4468_v43  ;;  %v1439_v28 = vadd.f32 %v4577_v34, %v1438_v33  ;;  %v4704_v33 = vld [vmem:[%s5260_s5 + $0x11] ss:$0 sm:$0xff] }
 0x2d1   : > { %5343 = vst [vmem:[#allocation61_spill] sm:$0xff] %v4661_v10  ;;  %1469 = vst [vmem:[#allocation2 + $0x181] sm:$0xff] %v4638_v23  ;;  %v4689_v55 = vadd.f32 %v3346_v56, %v4577_v34  ;;  %v4692_v1 = vmul.f32 %v4510_v7, %v1826_v39  ;;  %v1462_v25 = vmax.f32 %v1444_v63, 0.0  ;;  %v1449_v4 = vadd.f32 %v4577_v34, %v1448_v8  ;;  %v4696_v10 = vld [vmem:[#allocation2 + $0x120] sm:$0xff] }
 0x2d2   : > { %5344 = vst [vmem:[#allocation62_spill] sm:$0xff] %v4672_v13  ;;  %5345 = vst [vmem:[#allocation63_spill] sm:$0xff] %v4676_v5  ;;  %v3385_v13 = vpop.f32.mrb[16].mxu1  ;;  %v1878_v19 = vadd.f32 %v4428_v12, %v1849_v0  ;;  %v1899_v43 = vmul.f32 %v4126_v26, %v4562_v51  ;;  %v4706_v39 = vmax.f32 %v1439_v28, 0.0  ;;  %v4711_v8 = vmul.f32 %v4505_v45, %v4562_v51 }
 0x2d3   : > { %5346 = vst [vmem:[#allocation64_spill] sm:$0xff] %v4680_v22  ;;  %1468 = vst [vmem:[#allocation2 + $0x171] sm:$0xff] %v1459_v6  ;;  %v1741_v22 = vadd.f32 %v3385_v13, %v4577_v34  ;;  %v1735_v9 = vpop.f32.mrb[17].mxu1  ;;  %v5275_v56 = vmax.f32 %v4689_v55, 0.0  ;;  %v1931_v63 = vadd.f32 %v4270_v40, %v4542_v18  ;;  %v4715_v12 = vmax.f32 %v1449_v4, 0.0  ;;  %v1940_v13 = vld [vmem:[#allocation2 + $0x160] sm:$0xff] }
 0x2d4   : > { %5347 = vst [vmem:[#allocation65_spill] sm:$0xff] %v4684_v24  ;;  %5348 = vst [vmem:[#allocation66_spill] sm:$0xff] %v4692_v1  ;;  %v4719_v44 = vadd.f32 %v1899_v43, %v1878_v19  ;;  %v1930_v28 = vadd.f32 %v4294_v50, %v4555_v31  ;;  %v2221_v0 = vadd.f32 %v4297_v30, %v4557_v53  ;;  %v4730_v40 = vpop.f32.mrb[18].mxu1  ;;  %v4742_v50 = vld [vmem:[%s5260_s5 + $0xf] ss:$0 sm:$0xff]  ;;  %v2057_v43 = vld [vmem:[#allocation2 + $0x162] sm:$0xff] }
 0x2d5   : > { %5349 = vst [vmem:[#allocation67_spill] sm:$0xff] %v4696_v10  ;;  %5350 = vst [vmem:[#allocation68_spill] sm:$0xff] %v4711_v8  ;;  %v4717_v26 = vmax.f32 %v1741_v22, 0.0  ;;  %v1933_v45 = vadd.f32 %v4328_v61, %v4588_v14  ;;  %v4734_v4 = vmul.f32 %v4460_v36, %v4696_v10  ;;  %v4737_v18 = vmul.f32 %v4178_v54, %v1458_v49  ;;  %v1745_v53 = vpop.f32.mrb[19].mxu1 }
 0x2d6   : > { %1471 = vst [vmem:[#allocation2 + $0x1a1] sm:$0xff] %v1462_v25  ;;  %1470 = vst [vmem:[#allocation2 + $0x191] sm:$0xff] %v4706_v39  ;;  %v4745_v30 = vmul.f32 %v4704_v33, %v1458_v49  ;;  %v1939_v61 = vld [vmem:[#allocation2 + $0x150] sm:$0xff]  ;;  %v1932_v31 = vadd.f32 %v4358_v29, %v4599_v38  ;;  %v4753_v19 = vmul.f32 %v4460_v36, %v4644_v59 }
 0x2d7   : > { %1473 = vst [vmem:[#allocation2 + $0x1c1] sm:$0xff] %v5275_v56  ;;  %5351 = vst [vmem:[#allocation69_spill] sm:$0xff] %v4734_v4  ;;  %v4757_v14 = vmul.f32 %v4178_v54, %v4625_v52  ;;  %v4761_v49 = vmul.f32 %v4704_v33, %v4625_v52  ;;  %v4765_v29 = vmul.f32 %v4178_v54, %v4638_v23  ;;  %v4771_v36 = vld [vmem:[%s5260_s5 + $0x13] ss:$0 sm:$0xff] }
 0x2d8   : > { %5352 = vst [vmem:[#allocation70_spill] sm:$0xff] %v4745_v30  ;;  %1472 = vst [vmem:[#allocation2 + $0x1b1] sm:$0xff] %v4715_v12  ;;  %v1942_v22 = vld [vmem:[#allocation2 + $0x180] sm:$0xff]  ;;  %v1953_v38 = vmul.f32 %v4152_v41, %v1940_v13  ;;  %v4775_v56 = vmul.f32 %v4704_v33, %v4638_v23  ;;  %v4778_v52 = vmul.f32 %v4178_v54, %v1459_v6  ;;  %v2056_v59 = vld [vmem:[#allocation2 + $0x152] sm:$0xff] }
 0x2d9   : > { %1784 = vst [vmem:[#allocation2 + $0x201] sm:$0xff] %v4717_v26  ;;  %5353 = vst [vmem:[#allocation71_spill] sm:$0xff] %v4753_v19  ;;  %v4781_v51 = vmul.f32 %v4704_v33, %v1459_v6  ;;  %v1952_v1 = vmul.f32 %v4152_v41, %v1939_v61  ;;  %v2242_v10 = vmul.f32 %v4742_v50, %v1939_v61  ;;  %v2059_v58 = vld [vmem:[#allocation2 + $0x182] sm:$0xff] }
 0x2da   : > { %5354 = vst [vmem:[#allocation72_spill] sm:$0xff] %v4771_v36  ;;  %5355 = vst [vmem:[#allocation73_spill] sm:$0xff] %v4775_v56  ;;  %v1941_v30 = vld [vmem:[#allocation2 + $0x170] sm:$0xff]  ;;  %v4787_v4 = vadd.f32 %v4382_v27, %v4623_v57  ;;  %v4791_v23 = vadd.f32 %v4406_v17, %v4636_v21  ;;  %v3391_v56 = vpop.f32.mrb[20].mxu1  ;;  %v1955_v8 = vmul.f32 %v4152_v41, %v1942_v22 }
 0x2db   : > { %5356 = vst [vmem:[#allocation74_spill] sm:$0xff] %v4781_v51  ;;  %v4795_v6 = vmul.f32 %v4178_v54, %v1462_v25  ;;  %v1736_v16 = vadd.f32 %v4577_v34, %v1735_v9  ;;  %v1755_v5 = vpop.f32.mrb[21].mxu1  ;;  %v4800_v61 = vmul.f32 %v4510_v7, %v4560_v47  ;;  %v4803_v27 = vmul.f32 %v4198_v2, %v2057_v43  ;;  %v2058_v21 = vld [vmem:[#allocation2 + $0x172] sm:$0xff] }
 0x2dc   : > { %v4806_v17 = vmul.f32 %v4742_v50, %v1940_v13  ;;  %v4809_v57 = vmul.f32 %v4771_v36, %v2057_v43  ;;  %v4812_v19 = vmul.f32 %v4704_v33, %v1462_v25  ;;  %v1961_v35 = vadd.f32 %v1953_v38, %v1931_v63  ;;  %v3394_v63 = vpop.f32.mrb[22].mxu1 }
 0x2dd   : > { %5357 = vst [vmem:[#allocation75_spill] sm:$0xff] %v4800_v61  ;;  %v4815_v9 = vmul.f32 %v4198_v2, %v2056_v59  ;;  %v4818_v47 = vmul.f32 %v4771_v36, %v2056_v59  ;;  %v1954_v61 = vmul.f32 %v4152_v41, %v1941_v30  ;;  %v4821_v7 = vadd.f32 %v1952_v1, %v1930_v28 }
 0x2de   : > { %5358 = vst [vmem:[#allocation76_spill] sm:$0xff] %v4806_v17  ;;  %5359 = vst [vmem:[#allocation77_spill] sm:$0xff] %v4809_v57  ;;  %v4823_v13 = vadd.f32 %v2242_v10, %v2221_v0  ;;  %v4826_v43 = vmul.f32 %v4198_v2, %v2059_v58  ;;  %v4829_v57 = vmul.f32 %v4742_v50, %v1942_v22  ;;  %v1765_v10 = vpop.f32.mrb[23].mxu1  ;;  %v1944_v0 = vld [vmem:[#allocation2 + $0x1a0] sm:$0xff]  ;;  %v1943_v17 = vld [vmem:[#allocation2 + $0x190] sm:$0xff] }
 0x2df   : > { %5360 = vst [vmem:[#allocation78_spill] sm:$0xff] %v4812_v19  ;;  %v4833_v38 = vadd.f32 %v1955_v8, %v1933_v45  ;;  %v4836_v59 = vmul.f32 %v4771_v36, %v2059_v58  ;;  %v4839_v19 = vmul.f32 %v4198_v2, %v2058_v21  ;;  %v4842_v1 = vmul.f32 %v4742_v50, %v1941_v30 }
 0x2e0   : > { %5361 = vst [vmem:[#allocation79_spill] sm:$0xff] %v4829_v57  ;;  %v4831_v25 = vld [vmem:[#allocation2 + $0x200] sm:$0xff]  ;;  %v4845_v28 = vmul.f32 %v4771_v36, %v2058_v21  ;;  %v4849_v22 = vmul.f32 %v4178_v54, %v4706_v39  ;;  %v4853_v8 = vmul.f32 %v4704_v33, %v4706_v39  ;;  %v4857_v45 = vadd.f32 %v1954_v61, %v1932_v31  ;;  %v1945_v61 = vld [vmem:[#allocation2 + $0x1b0] sm:$0xff] }
 0x2e1   : > { %5362 = vst [vmem:[#allocation80_spill] sm:$0xff] %v4836_v59  ;;  %v1983_v58 = vmul.f32 %v4165_v48, %v4831_v25  ;;  %v5365_v30 = vmax.f32 %v4689_v55, 0.0  ;;  %v1936_v21 = vadd.f32 %v4471_v3, %v4719_v44  ;;  %v1774_v57 = vmax.f32 %v1736_v16, 0.0  ;;  %v2060_v16 = vld [vmem:[#allocation2 + $0x192] sm:$0xff] }
 0x2e2   : > { %5363 = vst [vmem:[#allocation81_spill] sm:$0xff] %v4845_v28  ;;  %5364 = vst [vmem:[#allocation82_spill] sm:$0xff] %v4853_v8  ;;  %v1751_v39 = vadd.f32 %v4730_v40, %v4577_v34  ;;  %v1746_v8 = vadd.f32 %v4577_v34, %v1745_v53  ;;  %v1761_v37 = vadd.f32 %v3391_v56, %v4577_v34 }
 0x2e3   : > { %v4862_v59 = vmul.f32 %v4704_v33, %v5365_v30  ;;  %v1991_v28 = vadd.f32 %v1983_v58, %v1961_v35  ;;  %v1957_v31 = vmul.f32 %v4152_v41, %v1944_v0  ;;  %v2041_v55 = vmul.f32 %v4191_v60, %v4717_v26  ;;  %1783 = vst [vmem:[#allocation2 + $0x1f1] sm:$0xff] %v1774_v57  ;;  %v2061_v35 = vld [vmem:[#allocation2 + $0x1a2] sm:$0xff] }
 0x2e4   : > { %v1756_v30 = vadd.f32 %v4577_v34, %v1755_v5  ;;  %v4875_v3 = vadd.f32 %v3394_v63, %v4577_v34  ;;  %v1777_v40 = vmax.f32 %v1751_v39, 0.0  ;;  %v1776_v53 = vmax.f32 %v1746_v8, 0.0  ;;  %v2236_v5 = vld [vmem:[#allocation2 + $0x1c0] sm:$0xff]  ;;  %v4925_v39 = vld [vmem:[%s5260_s5 + $0x12] ss:$0 sm:$0xff] }
 0x2e5   : > { %5366 = vst [vmem:[#allocation83_spill] sm:$0xff] %v4862_v59  ;;  %v2020_v44 = vadd.f32 %v4737_v18, %v1991_v28  ;;  %v4878_v58 = vmax.f32 %v1761_v37, 0.0  ;;  %v1956_v56 = vmul.f32 %v4152_v41, %v1943_v17  ;;  %v1766_v24 = vadd.f32 %v4577_v34, %v1765_v10  ;;  %v2062_v18 = vld [vmem:[#allocation2 + $0x1b2] sm:$0xff] }
 0x2e6   : > { %v4881_v59 = vmax.f32 %v1756_v30, 0.0  ;;  %v5281_v46 = vmax.f32 %v4875_v3, 0.0  ;;  %v1958_v63 = vmul.f32 %v4152_v41, %v1945_v61  ;;  %v4888_v51 = vmul.f32 %v4178_v54, %v4715_v12  ;;  %1786 = vst [vmem:[#allocation2 + $0x221] sm:$0xff] %v1777_v40  ;;  %1785 = vst [vmem:[#allocation2 + $0x211] sm:$0xff] %v1776_v53 }
 0x2e7   : > { %v4892_v37 = vmul.f32 %v4704_v33, %v4715_v12  ;;  %v2049_v28 = vadd.f32 %v2041_v55, %v2020_v44  ;;  %1788 = vst [vmem:[#allocation2 + $0x241] sm:$0xff] %v4878_v58  ;;  %v4896_v8 = vmul.f32 %v4198_v2, %v2061_v35  ;;  %v4899_v34 = vmul.f32 %v4742_v50, %v1944_v0  ;;  %v4910_v33 = vld [vmem:[%s5260_s5 + $0x10] ss:$0 sm:$0xff] }
 0x2e8   : > { %v4902_v41 = vmul.f32 %v4771_v36, %v2061_v35  ;;  %v4905_v54 = vmul.f32 %v4198_v2, %v2060_v16  ;;  %1787 = vst [vmem:[#allocation2 + $0x231] sm:$0xff] %v4881_v59  ;;  %1790 = vst [vmem:[#allocation2 + $0x261] sm:$0xff] %v5281_v46  ;;  %v4916_v12 = vmul.f32 %v4742_v50, %v1943_v17  ;;  %v4927_v55 = vmax.f32 %v1766_v24, 0.0 }
 0x2e9   : > { %v4919_v10 = vmul.f32 %v4771_v36, %v2060_v16  ;;  %v2078_v0 = vadd.f32 %v4803_v27, %v2049_v28  ;;  %v1965_v30 = vadd.f32 %v1957_v31, %v4787_v4  ;;  %v1964_v35 = vadd.f32 %v1956_v56, %v4791_v23 }
 0x2ea   : > { %5367 = vst [vmem:[#allocation84_spill] sm:$0xff] %v4902_v41  ;;  %v4932_v44 = vmul.f32 %v4742_v50, %v2236_v5  ;;  %v4935_v17 = vmul.f32 %v4198_v2, %v2062_v18  ;;  %v1966_v16 = vadd.f32 %v1958_v63, %v1936_v21  ;;  %v4938_v27 = vmul.f32 %v4742_v50, %v1945_v61  ;;  %v1969_v46 = vld [vmem:[#allocation2 + $0x1f0] sm:$0xff] }
 0x2eb   : > { %5368 = vst [vmem:[#allocation85_spill] sm:$0xff] %v4919_v10  ;;  %v2107_v28 = vadd.f32 %v4361_v20, %v2078_v0  ;;  %v4943_v24 = vmul.f32 %v4910_v33, %v4831_v25  ;;  %1789 = vst [vmem:[#allocation2 + $0x251] sm:$0xff] %v4927_v55  ;;  %v4948_v4 = vmul.f32 %v4925_v39, %v4717_v26 }
 0x2ec   : > { %v1982_v2 = vmul.f32 %v4165_v48, %v1969_v46  ;;  %v2040_v23 = vmul.f32 %v4191_v60, %v1774_v57  ;;  %v2271_v50 = vmul.f32 %v4910_v33, %v1969_v46  ;;  %v2329_v20 = vmul.f32 %v4925_v39, %v1774_v57 }
 0x2ed   : > { %v2136_v21 = vadd.f32 %v4665_v32, %v2107_v28  ;;  %v2043_v25 = vmul.f32 %v4191_v60, %v1777_v40  ;;  %v4957_v31 = vmul.f32 %v4771_v36, %v2062_v18  ;;  %v1972_v56 = vld [vmem:[#allocation2 + $0x220] sm:$0xff]  ;;  %v4962_v5 = vmul.f32 %v4925_v39, %v1777_v40  ;;  %v1971_v63 = vld [vmem:[#allocation2 + $0x210] sm:$0xff] }
 0x2ee   : > { %v1990_v61 = vadd.f32 %v1982_v2, %v4821_v7  ;;  %v2279_v26 = vadd.f32 %v2271_v50, %v4823_v13  ;;  %v2042_v46 = vmul.f32 %v4191_v60, %v1776_v53  ;;  %v4965_v0 = vld [vmem:[#allocation2 + $0x240] sm:$0xff]  ;;  %v1985_v32 = vmul.f32 %v4165_v48, %v1972_v56 }
 0x2ef   : > { %5369 = vst [vmem:[#allocation86_spill] sm:$0xff] %v4957_v31  ;;  %v1984_v57 = vmul.f32 %v4165_v48, %v1971_v63  ;;  %v2165_v18 = vadd.f32 %v4274_v11, %v2136_v21  ;;  %v2331_v28 = vmul.f32 %v4925_v39, %v1776_v53  ;;  %v4971_v7 = vld [vmem:[#allocation2 + $0x230] sm:$0xff]  ;;  %v1987_v2 = vmul.f32 %v4165_v48, %v4965_v0 }
 0x2f0   : > { %v2019_v13 = vadd.f32 %v4757_v14, %v1990_v61  ;;  %v2308_v40 = vadd.f32 %v4761_v49, %v2279_v26  ;;  %v2045_v50 = vmul.f32 %v4191_v60, %v4878_v58  ;;  %v1993_v41 = vadd.f32 %v1985_v32, %v4833_v38 }
 0x2f1   : > { %v1992_v31 = vadd.f32 %v1984_v57, %v4857_v45  ;;  %v2194_v11 = vadd.f32 %v4603_v15, %v2165_v18  ;;  %v2044_v53 = vmul.f32 %v4191_v60, %v4881_v59  ;;  %v1995_v14 = vadd.f32 %v1987_v2, %v1965_v30 }
 0x2f2   : > { %v2048_v21 = vadd.f32 %v2040_v23, %v2019_v13  ;;  %v2337_v10 = vadd.f32 %v2329_v20, %v2308_v40  ;;  %v1986_v49 = vmul.f32 %v4165_v48, %v4971_v7  ;;  %v2022_v61 = vadd.f32 %v4765_v29, %v1993_v41  ;;  %v4989_v38 = vld [vmem:[#allocation2 + $0x250] sm:$0xff]  ;;  %v5370_v41 = vld [vmem:[#allocation8_spill] sm:$0xff]  ;;  %v5372_v13 = vld [vmem:[#allocation14_spill] sm:$0xff] }
 0x2f3   : > { %v2021_v26 = vadd.f32 %v4778_v52, %v1992_v31  ;;  %v2223_v36 = vadd.f32 %v4365_v42, %v2194_v11  ;;  %v2046_v15 = vmul.f32 %v4191_v60, %v4927_v55  ;;  %v2273_v23 = vmul.f32 %v4910_v33, %v1971_v63  ;;  %v5373_v40 = vld [vmem:[#allocation74_spill] sm:$0xff] }
 0x2f4   : > { %v2077_v45 = vadd.f32 %v4815_v9, %v2048_v21  ;;  %v2024_v30 = vadd.f32 %v4795_v6, %v1995_v14  ;;  %v1994_v20 = vadd.f32 %v1986_v49, %v1964_v35  ;;  %v2366_v32 = vadd.f32 %v4818_v47, %v2337_v10  ;;  %v5377_v14 = vld [vmem:[#allocation65_spill] sm:$0xff] }
 0x2f5   : > { %v2051_v57 = vadd.f32 %v2043_v25, %v2022_v61  ;;  %v2050_v29 = vadd.f32 %v2042_v46, %v2021_v26  ;;  %v2252_v52 = vadd.f32 %v4842_v1, %v2223_v36  ;;  %v1988_v60 = vmul.f32 %v4165_v48, %v4989_v38  ;;  %v5371_v25 = vld [vmem:[#allocation23_spill] sm:$0xff]  ;;  %v5374_v48 = vld [vmem:[#allocation10_spill] sm:$0xff] }
 0x2f6   : > { %v2106_v42 = vadd.f32 %v5370_v41, %v2077_v45  ;;  %v2053_v31 = vadd.f32 %v2045_v50, %v2024_v30  ;;  %v2023_v18 = vadd.f32 %v4849_v22, %v1994_v20  ;;  %v2274_v63 = vmul.f32 %v4910_v33, %v1972_v56  ;;  %v5376_v56 = vld [vmem:[#allocation35_spill] sm:$0xff]  ;;  %v5379_v61 = vld [vmem:[#allocation54_spill] sm:$0xff]  ;;  %v5380_v45 = vld [vmem:[#allocation49_spill] sm:$0xff] }
 0x2f7   : > { %v2080_v9 = vadd.f32 %v4826_v43, %v2051_v57  ;;  %v2079_v6 = vadd.f32 %v4839_v19, %v2050_v29  ;;  %v2281_v35 = vadd.f32 %v2273_v23, %v2252_v52  ;;  %v1996_v1 = vadd.f32 %v1988_v60, %v1966_v16  ;;  %v5375_v43 = vld [vmem:[#allocation3_spill] sm:$0xff]  ;;  %v5383_v52 = vld [vmem:[#allocation5_spill] sm:$0xff] }
 0x2f8   : > { %v2135_v47 = vadd.f32 %v4621_v62, %v2106_v42  ;;  %v2082_v10 = vadd.f32 %v4896_v8, %v2053_v31  ;;  %v2052_v36 = vadd.f32 %v2044_v53, %v2023_v18  ;;  %v2396_v50 = vadd.f32 %v5374_v48, %v2366_v32  ;;  %v5378_v53 = vld [vmem:[#allocation60_spill] sm:$0xff]  ;;  %v5381_v30 = vld [vmem:[#allocation71_spill] sm:$0xff]  ;;  %v5384_v42 = vld [vmem:[#allocation81_spill] sm:$0xff] }
 0x2f9   : > { %v2109_v46 = vadd.f32 %v5371_v25, %v2080_v9  ;;  %v2108_v22 = vadd.f32 %v5372_v13, %v2079_v6  ;;  %v2310_v2 = vadd.f32 %v5373_v40, %v2281_v35  ;;  %v2025_v62 = vadd.f32 %v4888_v51, %v1996_v1  ;;  %v5382_v32 = vld [vmem:[#allocation20_spill] sm:$0xff]  ;;  %v5387_v9 = vld [vmem:[#allocation9_spill] sm:$0xff]  ;;  %v5390_v1 = vld [vmem:[#allocation51_spill] sm:$0xff] }
 0x2fa   : > { %v2164_v11 = vadd.f32 %v5375_v43, %v2135_v47  ;;  %v2111_v21 = vadd.f32 %v5376_v56, %v2082_v10  ;;  %v2081_v19 = vadd.f32 %v4905_v54, %v2052_v36  ;;  %v2426_v26 = vadd.f32 %v5379_v61, %v2396_v50  ;;  %v5385_v31 = vld [vmem:[#allocation12_spill] sm:$0xff]  ;;  %v5389_v10 = vld [vmem:[#allocation27_spill] sm:$0xff]  ;;  %v5393_v40 = vld [vmem:[#allocation50_spill] sm:$0xff] }
 0x2fb   : > { %v2138_v8 = vadd.f32 %v5377_v14, %v2109_v46  ;;  %v2137_v16 = vadd.f32 %v5378_v53, %v2108_v22  ;;  %v2339_v49 = vadd.f32 %v2331_v28, %v2310_v2  ;;  %v2054_v29 = vadd.f32 %v2046_v15, %v2025_v62  ;;  %v5386_v18 = vld [vmem:[#allocation4_spill] sm:$0xff]  ;;  %v5388_v28 = vld [vmem:[#allocation63_spill] sm:$0xff] }
 0x2fc   : > { %v2193_v23 = vadd.f32 %v5380_v45, %v2164_v11  ;;  %v2140_v20 = vadd.f32 %v5381_v30, %v2111_v21  ;;  %v2110_v57 = vadd.f32 %v5382_v32, %v2081_v19  ;;  %v2455_v60 = vadd.f32 %v5386_v18, %v2426_v26  ;;  %v5391_v46 = vld [vmem:[#allocation56_spill] sm:$0xff]  ;;  %v5394_v48 = vld [vmem:[#allocation11_spill] sm:$0xff]  ;;  %v5401_v26 = vld [vmem:[#allocation69_spill] sm:$0xff] }
 0x2fd   : > { %v2166_v41 = vadd.f32 %v5383_v52, %v2137_v16  ;;  %v2368_v54 = vadd.f32 %v5384_v42, %v2339_v49  ;;  %v2167_v51 = vadd.f32 %v5385_v31, %v2138_v8  ;;  %v2083_v47 = vadd.f32 %v4935_v17, %v2054_v29  ;;  %v5392_v13 = vld [vmem:[#allocation16_spill] sm:$0xff]  ;;  %v5399_v53 = vld [vmem:[#allocation15_spill] sm:$0xff]  ;;  %v5400_v49 = vld [vmem:[#allocation61_spill] sm:$0xff] }
 0x2fe   : > { %v2222_v6 = vadd.f32 %v5387_v9, %v2193_v23  ;;  %v2139_v35 = vadd.f32 %v5388_v28, %v2110_v57  ;;  %v2169_v36 = vadd.f32 %v5389_v10, %v2140_v20  ;;  %v2484_v2 = vadd.f32 %v5393_v40, %v2455_v60  ;;  %v5395_v43 = vld [vmem:[#allocation32_spill] sm:$0xff]  ;;  %v5403_v20 = vld [vmem:[#allocation55_spill] sm:$0xff]  ;;  %v5407_v60 = vld [vmem:[#allocation21_spill] sm:$0xff] }
 0x2ff   : > { %v2195_v25 = vadd.f32 %v5390_v1, %v2166_v41  ;;  %v2196_v15 = vadd.f32 %v5391_v46, %v2167_v51  ;;  %v2398_v22 = vadd.f32 %v5392_v13, %v2368_v54  ;;  %v2112_v11 = vadd.f32 %v5395_v43, %v2083_v47  ;;  %v5396_v56 = vld [vmem:[#allocation68_spill] sm:$0xff]  ;;  %v5404_v41 = vld [vmem:[#allocation79_spill] sm:$0xff]  ;;  %v5406_v51 = vld [vmem:[#allocation26_spill] sm:$0xff] }
 0x300   : > { %v2168_v50 = vadd.f32 %v5394_v48, %v2139_v35  ;;  %v2198_v21 = vadd.f32 %v5396_v56, %v2169_v36  ;;  %v5397_v19 = vld [vmem:[#allocation76_spill] sm:$0xff]  ;;  %v2275_v8 = vmul.f32 %v4910_v33, %v4971_v7  ;;  %v2277_v52 = vmul.f32 %v4910_v33, %v4989_v38  ;;  %v5405_v7 = vld [vmem:[#allocation6_spill] sm:$0xff]  ;;  %v2265_v38 = vld [vmem:[#allocation2 + $0x260] sm:$0xff] }
 0x301   : > { %v2251_v62 = vadd.f32 %v5397_v19, %v2222_v6  ;;  %v5398_v14 = vld [vmem:[#allocation24_spill] sm:$0xff]  ;;  %v2224_v16 = vadd.f32 %v5399_v53, %v2195_v25  ;;  %v2428_v61 = vadd.f32 %v5400_v49, %v2398_v22  ;;  %v2141_v45 = vadd.f32 %v5401_v26, %v2112_v11  ;;  %v5408_v6 = vld [vmem:[#allocation70_spill] sm:$0xff]  ;;  %v5412_v40 = vld [vmem:[#allocation73_spill] sm:$0xff] }
 0x302   : > { %v2225_v17 = vadd.f32 %v5398_v14, %v2196_v15  ;;  %v5402_v23 = vld [vmem:[#allocation36_spill] sm:$0xff]  ;;  %v2197_v32 = vadd.f32 %v5403_v20, %v2168_v50  ;;  %v5411_v15 = vld [vmem:[#allocation82_spill] sm:$0xff]  ;;  %v2333_v22 = vmul.f32 %v4925_v39, %v4881_v59  ;;  %v5413_v48 = vld [vmem:[#allocation33_spill] sm:$0xff] }
 0x303   : > { %v2227_v30 = vadd.f32 %v5402_v23, %v2198_v21  ;;  %v2280_v57 = vadd.f32 %v4943_v24, %v2251_v62  ;;  %v2253_v42 = vadd.f32 %v5404_v41, %v2224_v16  ;;  %v2457_v54 = vadd.f32 %v5405_v7, %v2428_v61  ;;  %v5409_v47 = vld [vmem:[#allocation52_spill] sm:$0xff]  ;;  %v5414_v21 = vld [vmem:[#allocation77_spill] sm:$0xff]  ;;  %v5415_v14 = vld [vmem:[#allocation78_spill] sm:$0xff] }
 0x304   : > { %v2254_v29 = vadd.f32 %v4916_v12, %v2225_v17  ;;  %v2170_v18 = vadd.f32 %v5406_v51, %v2141_v45  ;;  %v2226_v9 = vadd.f32 %v5407_v60, %v2197_v32  ;;  %v2276_v24 = vmul.f32 %v4910_v33, %v4965_v0  ;;  %v5410_v1 = vld [vmem:[#allocation64_spill] sm:$0xff]  ;;  %v5416_v53 = vld [vmem:[#allocation17_spill] sm:$0xff]  ;;  %v5424_v41 = vld [vmem:[#allocation22_spill] sm:$0xff] }
 0x305   : > { %v2256_v31 = vadd.f32 %v4938_v27, %v2227_v30  ;;  %v2309_v28 = vadd.f32 %v5408_v6, %v2280_v57  ;;  %v2282_v12 = vadd.f32 %v2274_v63, %v2253_v42  ;;  %v2486_v10 = vadd.f32 %v5409_v47, %v2457_v54  ;;  %v2352_v56 = vld [vmem:[#allocation2 + $0x1c2] sm:$0xff]  ;;  %v5420_v23 = vld [vmem:[#allocation85_spill] sm:$0xff]  ;;  %v5430_v6 = vld [vmem:[#allocation38_spill] sm:$0xff] }
 0x306   : > { %v2283_v35 = vadd.f32 %v2275_v8, %v2254_v29  ;;  %v2199_v25 = vadd.f32 %v5410_v1, %v2170_v18  ;;  %v2255_v46 = vadd.f32 %v4899_v34, %v2226_v9  ;;  %v2335_v0 = vmul.f32 %v4925_v39, %v4927_v55  ;;  %v5418_v61 = vld [vmem:[#allocation72_spill] sm:$0xff]  ;;  %v5423_v29 = vld [vmem:[#allocation25_spill] sm:$0xff]  ;;  %v5425_v7 = vld [vmem:[#allocation67_spill] sm:$0xff] }
 0x307   : > { %v2285_v36 = vadd.f32 %v2277_v52, %v2256_v31  ;;  %v2338_v27 = vadd.f32 %v4948_v4, %v2309_v28  ;;  %v2311_v63 = vadd.f32 %v5412_v40, %v2282_v12  ;;  %v2334_v4 = vmul.f32 %v4925_v39, %v4878_v58  ;;  %v5419_v45 = vld [vmem:[#allocation80_spill] sm:$0xff]  ;;  %v5428_v51 = vld [vmem:[#allocation83_spill] sm:$0xff]  ;;  %v5432_v47 = vld [vmem:[#allocation57_spill] sm:$0xff] }
 0x308   : > { %v2312_v13 = vadd.f32 %v5411_v15, %v2283_v35  ;;  %v2228_v50 = vadd.f32 %v5413_v48, %v2199_v25  ;;  %v2284_v43 = vadd.f32 %v2276_v24, %v2255_v46  ;;  %v2278_v62 = vmul.f32 %v4910_v33, %v2265_v38  ;;  %v5429_v60 = vld [vmem:[#allocation84_spill] sm:$0xff]  ;;  %v5431_v24 = vld [vmem:[#allocation7_spill] sm:$0xff]  ;;  %v5437_v40 = vld [vmem:[#allocation53_spill] sm:$0xff] }
 0x309   : > { %v2314_v11 = vadd.f32 %v4892_v37, %v2285_v36  ;;  %v2367_v34 = vadd.f32 %v5414_v21, %v2338_v27  ;;  %v2340_v59 = vadd.f32 %v4962_v5, %v2311_v63  ;;  %v5417_v37 = vmax.f32 %v4875_v3, 0.0  ;;  %v5421_v5 = vld [vmem:[#allocation86_spill] sm:$0xff]  ;;  %v5426_v3 = vld [vmem:[#allocation41_spill] sm:$0xff]  ;;  %v3038_v12 = vld [vmem:[%s5261_s6] ss:$0 sm:$0xff] }
 0x30a   : > { %v2341_v19 = vadd.f32 %v2333_v22, %v2312_v13  ;;  %v2257_v55 = vadd.f32 %v4932_v44, %v2228_v50  ;;  %v2313_v17 = vadd.f32 %v5415_v14, %v2284_v43  ;;  %v2365_v26 = vmul.f32 %v5418_v61, %v2352_v56  ;;  %v5422_v44 = vld [vmem:[#allocation62_spill] sm:$0xff]  ;;  %v5434_v25 = vld [vmem:[#allocation75_spill] sm:$0xff]  ;;  %v5436_v13 = vld [vmem:[#allocation37_spill] sm:$0xff] }
 0x30b   : > { %v2343_v8 = vadd.f32 %v2335_v0, %v2314_v11  ;;  %v2397_v16 = vadd.f32 %v5416_v53, %v2367_v34  ;;  %v2336_v49 = vmul.f32 %v4925_v39, %v5417_v37  ;;  %v2369_v58 = vadd.f32 %v5419_v45, %v2340_v59  ;;  %v5427_v39 = vld [vmem:[#allocation19_spill] sm:$0xff]  ;;  %v5433_v36 = vld [vmem:[#allocation66_spill] sm:$0xff]  ;;  %v5439_v43 = vld [vmem:[#allocation28_spill] sm:$0xff] }
 0x30c   : > { %v2370_v30 = vadd.f32 %v5420_v23, %v2341_v19  ;;  %v2286_v33 = vadd.f32 %v2278_v62, %v2257_v55  ;;  %v2342_v20 = vadd.f32 %v2334_v4, %v2313_v17  ;;  %v2424_v54 = vmul.f32 %v5426_v3, %v5425_v7  ;;  %v5438_v48 = vld [vmem:[#allocation18_spill] sm:$0xff]  ;;  %v5441_v21 = vld [vmem:[#allocation45_spill] sm:$0xff]  ;;  %v5442_v59 = vld [vmem:[#allocation40_spill] sm:$0xff] }
 0x30d   : > { %v2372_v32 = vadd.f32 %v5421_v5, %v2343_v8  ;;  %v2427_v57 = vadd.f32 %v5422_v44, %v2397_v16  ;;  %v2399_v52 = vadd.f32 %v5423_v29, %v2369_v58  ;;  %v2513_v31 = vadd.f32 %v5427_v39, %v2484_v2  ;;  %v5435_v2 = vld [vmem:[#allocation30_spill] sm:$0xff]  ;;  %v2498_v14 = vld [vmem:[#allocation2 + $0x82] sm:$0xff]  ;;  %v5443_v17 = vld [vmem:[#allocation29_spill] sm:$0xff] }
 0x30e   : > { %v2400_v42 = vadd.f32 %v5424_v41, %v2370_v30  ;;  %v2315_v18 = vadd.f32 %v5428_v51, %v2286_v33  ;;  %v2371_v9 = vadd.f32 %v5429_v60, %v2342_v20  ;;  %v2423_v38 = vmul.f32 %v5426_v3, %v5432_v47  ;;  %v5440_v56 = vld [vmem:[#allocation46_spill] sm:$0xff]  ;;  %v5444_v53 = vld [vmem:[#allocation48_spill] sm:$0xff]  ;;  %v5446_v61 = vld [vmem:[#allocation59_spill] sm:$0xff] }
 0x30f   : > { %v2402_v28 = vadd.f32 %v5430_v6, %v2372_v32  ;;  %v2456_v35 = vadd.f32 %v5431_v24, %v2427_v57  ;;  %v2429_v1 = vadd.f32 %v5433_v36, %v2399_v52  ;;  %v2515_v27 = vadd.f32 %v5435_v2, %v2486_v10  ;;  %v2470_v10 = vld [vmem:[#allocation2 + $0x131] sm:$0xff]  ;;  %v5448_v33 = vld [vmem:[#allocation39_spill] sm:$0xff]  ;;  %v5452_v3 = vld [vmem:[#allocation44_spill] sm:$0xff] }
 0x310   : > { %v2430_v46 = vadd.f32 %v5434_v25, %v2400_v42  ;;  %v2344_v15 = vadd.f32 %v2336_v49, %v2315_v18  ;;  %v2401_v22 = vadd.f32 %v5436_v13, %v2371_v9  ;;  %v2482_v34 = vmul.f32 %v5441_v21, %v5440_v56  ;;  %v5445_v37 = vld [vmem:[#allocation58_spill] sm:$0xff]  ;;  %v5449_v57 = vld [vmem:[#allocation13_spill] sm:$0xff]  ;;  %v5450_v52 = vld [vmem:[#allocation31_spill] sm:$0xff] }
 0x311   : > { %v2432_v0 = vadd.f32 %v2424_v54, %v2402_v28  ;;  %v2485_v63 = vadd.f32 %v5437_v40, %v2456_v35  ;;  %v2458_v50 = vadd.f32 %v5438_v48, %v2429_v1  ;;  %v5108_v4 = vadd.f32 %v3038_v12, %v2513_v31  ;;  %v5447_v23 = vld [vmem:[#allocation42_spill] sm:$0xff]  ;;  %v5453_v24 = vld [vmem:[#allocation47_spill] sm:$0xff] }
 0x312   : > { %v2459_v11 = vadd.f32 %v5439_v43, %v2430_v46  ;;  %v2373_v19 = vadd.f32 %v2365_v26, %v2344_v15  ;;  %v2431_v62 = vadd.f32 %v2423_v38, %v2401_v22  ;;  %v2481_v16 = vmul.f32 %v5441_v21, %v5444_v53  ;;  %v2499_v5 = vld [vmem:[#allocation2 + $0x92] sm:$0xff]  ;;  %v5454_v47 = vld [vmem:[#allocation43_spill] sm:$0xff] }
 0x313   : > { %v2461_v55 = vadd.f32 %v5442_v59, %v2432_v0  ;;  %v2514_v8 = vadd.f32 %v5443_v17, %v2485_v63  ;;  %v2487_v49 = vadd.f32 %v5445_v37, %v2458_v50  ;;  %v5116_v58 = vadd.f32 %v3038_v12, %v2515_v27  ;;  %v5451_v42 = vld [vmem:[#allocation34_spill] sm:$0xff]  ;;  %v2742_v17 = vld [vmem:[%s5266_s11 + $0x8] sm:$0xff]  ;;  %v2575_v53 = vld [vmem:[%s5263_s8] sm:$0x1] }
 0x314   : > { %v2488_v45 = vadd.f32 %v5446_v61, %v2459_v11  ;;  %v2403_v30 = vadd.f32 %v5447_v23, %v2373_v19  ;;  %v2460_v26 = vadd.f32 %v5448_v33, %v2431_v62  ;;  %v2483_v44 = vmul.f32 %v5441_v21, %v2470_v10  ;;  %v3655_v18 = vld [vmem:[%s5260_s5 + $0x18] ss:$0 sm:$0xff]  ;;  %v2743_v37 = vld [vmem:[%s5266_s11 + $0x10] sm:$0xff]  ;;  %v2745_v33 = vld [vmem:[%s5266_s11 + $0x20] sm:$0xff] }
 0x315   : > { %v2490_v20 = vadd.f32 %v2482_v34, %v2461_v55  ;;  %v5120_v32 = vadd.f32 %v3038_v12, %v2514_v8  ;;  %v2511_v29 = vmul.f32 %v5449_v57, %v2498_v14  ;;  %v2516_v41 = vadd.f32 %v5450_v52, %v2487_v49  ;;  %v2741_v14 = vld [vmem:[%s5266_s11] sm:$0xff]  ;;  %v2744_v49 = vld [vmem:[%s5266_s11 + $0x18] sm:$0xff]  ;;  %v2750_v52 = vld [vmem:[%s5266_s11 + $0x48] sm:$0xff] }
 0x316   : > { %v2517_v7 = vadd.f32 %v5451_v42, %v2488_v45  ;;  %v2433_v54 = vadd.f32 %v5452_v3, %v2403_v30  ;;  %v2489_v39 = vadd.f32 %v2481_v16, %v2460_v26  ;;  %v2536_v31 = vmax.f32 %v5108_v4, 0.0  ;;  %v2746_v26 = vld [vmem:[%s5266_s11 + $0x28] sm:$0xff] }
 0x317   : > { %v2537_v51 = vmax.f32 %v5120_v32, 0.0  ;;  %v2512_v60 = vmul.f32 %v3655_v18, %v2499_v5  ;;  %v2519_v9 = vadd.f32 %v2511_v29, %v2490_v20  ;;  %v5132_v6 = vadd.f32 %v3038_v12, %v2516_v41  ;;  %v2747_v5 = vld [vmem:[%s5266_s11 + $0x30] sm:$0xff]  ;;  %v2749_v29 = vld [vmem:[%s5266_s11 + $0x40] sm:$0xff] }
 0x318   : > { %v2538_v28 = vmax.f32 %v5116_v58, 0.0  ;;  %v2462_v35 = vadd.f32 %v5453_v24, %v2433_v54  ;;  %v2518_v38 = vadd.f32 %v5454_v47, %v2489_v39  ;;  %v5137_v36 = vadd.f32 %v3038_v12, %v2517_v7  ;;  %v2751_v41 = vld [vmem:[%s5266_s11 + $0x50] sm:$0xff]  ;;  %v2752_v7 = vld [vmem:[%s5266_s11 + $0x58] sm:$0xff]  ;;  %v2753_v54 = vld [vmem:[%s5266_s11 + $0x60] sm:$0xff] }
 0x319   : > { %v2544_v1 = vadd.f32 %v2537_v51, %v2536_v31  ;;  %v2539_v25 = vmax.f32 %v5132_v6, 0.0  ;;  %v5148_v15 = vadd.f32 %v3038_v12, %v2519_v9  ;;  %v3611_v8 = vpack.c.bf16 %v2742_v17, %v2741_v14  ;;  %v2754_v39 = vld [vmem:[%s5266_s11 + $0x68] sm:$0xff]  ;;  %v2756_v9 = vld [vmem:[%s5266_s11 + $0x78] sm:$0xff] }
 0x31a   : > { %v2491_v46 = vadd.f32 %v2483_v44, %v2462_v35  ;;  %v5144_v2 = vadd.f32 %v3038_v12, %v2518_v38  ;;  %v2540_v22 = vmax.f32 %v5137_v36, 0.0  ;;  %v3615_v30 = vpack.c.bf16 %v2744_v49, %v2743_v37  ;;  %v2748_v44 = vld [vmem:[%s5266_s11 + $0x38] sm:$0xff]  ;;  %v2651_v35 = vld [vmem:[%s5265_s10] sm:$0x1] }
 0x31b   : > { %v2545_v27 = vadd.f32 %v2544_v1, %v2538_v28  ;;  %v2542_v50 = vmax.f32 %v5148_v15, 0.0  ;;  %3612 = vmatprep.subr.bf16.mxu1 %v3611_v8  ;;  %v3619_v20 = vpack.c.bf16 %v2746_v26, %v2745_v33  ;;  %v3623_v57 = vpack.c.bf16 %v2748_v44, %v2747_v5 }
 0x31c   : > { %v2520_v13 = vadd.f32 %v2512_v60, %v2491_v46  ;;  %v2541_v0 = vmax.f32 %v5144_v2, 0.0  ;;  %v3627_v42 = vpack.c.bf16 %v2750_v52, %v2749_v29  ;;  %v3631_v3 = vpack.c.bf16 %v2752_v7, %v2751_v41  ;;  %v2755_v60 = vld [vmem:[%s5266_s11 + $0x70] sm:$0xff] }
 0x31d   : > { %v2546_v40 = vadd.f32 %v2545_v27, %v2539_v25  ;;  %v3635_v18 = vpack.c.bf16 %v2754_v39, %v2753_v54  ;;  %v3639_v24 = vpack.c.bf16 %v2756_v9, %v2755_v60  ;;  %v2729_v47 = vlaneseq }
 0x31e   : > { %v5154_v63 = vadd.f32 %v3038_v12, %v2520_v13 }
 0x31f   : > { %v2547_v48 = vadd.f32 %v2546_v40, %v2540_v22  ;;  %v2730_v13 = vshrl.u32 %v2729_v47, 7 }
 0x320   : > { %v2543_v43 = vmax.f32 %v5154_v63, 0.0 }
 0x321   : > { %v2548_v11 = vadd.f32 %v2547_v48, %v2541_v0 }
 0x323   : > { %v2549_v56 = vadd.f32 %v2548_v11, %v2542_v50  ;;  %v2731_v11 = vsub.s32 0, %v2730_v13 }
 0x325   : > { %v2550_v21 = vadd.f32 %v2549_v56, %v2543_v43 }
 0x327   : > { %v2551_v34 = vrot.slane %v2550_v21, 4 }
 0x329   : > { %v2552_v19 = vadd.f32 %v2551_v34, %v2550_v21 }
 0x32b   : > { %v2553_v12 = vrot.slane %v2552_v19, 2 }
 0x32d   : > { %v2554_v62 = vadd.f32 %v2553_v12, %v2552_v19 }
 0x32f   : > { %v2555_v59 = vrot.slane %v2554_v62, 1 }
 0x331   : > { %v2556_v55 = vadd.f32 %v2555_v59, %v2554_v62 }
 0x333   : > { %v2558_v10 = vmul.f32 0.015625, %v2556_v55 }
 0x335   : > { %3428 = vmatmul.mubr.f32.vlgmr.msra.gmra.mrb[40].mxu0 %v2558_v10 }
 0x408   : > { %v2642_v16 = vpop.f32.mrb[40].mxu0 }
 0x409   : > { %v2643_v61 = vadd.f32 %v2642_v16, %v2575_v53  ;;  %v3429_v45 = vpop.f32.mrb[41].mxu0 }
 0x40b   : > { %v2646_v23 = vmax.f32 %v2643_v61, 0.0 }
 0x40d   : > { %3439 = vmatmul.mubr.msk.f32.vlgmr.msra.gmra.mrb[24].mxu1 %vm540_vm0, %v2646_v23 }
 0x40e   : > { %3614 = vmatpush3.bf16.msra.mxu1 %v3611_v8 }
 0x40f   : > { %3616 = vmatprep.subr.bf16.mxu1 %v3615_v30 }
 0x412   : > { %3618 = vmatpush3.bf16.msra.mxu1 %v3615_v30 }
 0x413   : > { %3620 = vmatprep.subr.bf16.mxu1 %v3619_v20 }
 0x416   : > { %3622 = vmatpush3.bf16.msra.mxu1 %v3619_v20 }
 0x417   : > { %3624 = vmatprep.subr.bf16.mxu1 %v3623_v57 }
 0x41a   : > { %3626 = vmatpush3.bf16.msra.mxu1 %v3623_v57 }
 0x41b   : > { %3628 = vmatprep.subr.bf16.mxu1 %v3627_v42 }
 0x41e   : > { %3630 = vmatpush3.bf16.msra.mxu1 %v3627_v42 }
 0x41f   : > { %3632 = vmatprep.subr.bf16.mxu1 %v3631_v3 }
 0x422   : > { %3634 = vmatpush3.bf16.msra.mxu1 %v3631_v3 }
 0x423   : > { %3636 = vmatprep.subr.bf16.mxu1 %v3635_v18 }
 0x426   : > { %3638 = vmatpush3.bf16.msra.mxu1 %v3635_v18 }
 0x427   : > { %3640 = vmatprep.subr.bf16.mxu1 %v3639_v24 }
 0x42a   : > { %3642 = vmatpush3.bf16.msra.mxu1 %v3639_v24 }
 0x4e0   : > { %v2721_v38 = vpop.f32.mrb[24].mxu1 }
 0x4e1   : > { %v2722_v1 = vadd.f32 %v2721_v38, %v2651_v35  ;;  %v3440_v46 = vpop.f32.mrb[25].mxu1 }
 0x4e3   : > { %v2725_v27 = vadd.f32 3.0, %v2722_v1 }
 0x4e5   : > { %v2726_v40 = vmax.f32 %v2725_v27, 0.0 }
 0x4e7   : > { %v2727_v48 = vmin.f32 %v2726_v40, 6.0 }
 0x4e9   : > { %v2728_v56 = vmul.f32 0.16666667, %v2727_v48 }
 0x4eb   : > { %v2732_v21 = vrot.slane %v2728_v56, %v2731_v11 }
 0x4ed   : > { %v2733_v34 = vmul.f32 %v2732_v21, %v2536_v31  ;;  %v2734_v19 = vmul.f32 %v2732_v21, %v2537_v51  ;;  %v2735_v12 = vmul.f32 %v2732_v21, %v2538_v28  ;;  %v2736_v62 = vmul.f32 %v2732_v21, %v2539_v25  ;;  %v3040_v31 = vld [vmem:[%s5267_s12] ss:$0 sm:$0xff] }
 0x4ee   : > { %v2737_v59 = vmul.f32 %v2732_v21, %v2540_v22  ;;  %v2738_v4 = vmul.f32 %v2732_v21, %v2541_v0  ;;  %v2739_v32 = vmul.f32 %v2732_v21, %v2542_v50  ;;  %v2740_v58 = vmul.f32 %v2732_v21, %v2543_v43 }
 0x4ef   : > { %3473 = vmatprep.mubr.f32.mxu1 %v2733_v34 }
 0x4f0   : > { %3474 = vmatmul.mubr.f32.vlgmr.msra.gmra.mrb[26].mxu1 %v2734_v19 }
 0x4f1   : > { %3476 = vmatprep.mubr.f32.mxu1 %v2735_v12 }
 0x4f4   : > { %3477 = vmatmul.mubr.f32.gmra.mrb[28].mxu1 %v2736_v62 }
 0x4f5   : > { %3479 = vmatprep.mubr.f32.mxu1 %v2737_v59 }
 0x4f8   : > { %3480 = vmatmul.mubr.f32.gmra.mrb[30].mxu1 %v2738_v4 }
 0x4f9   : > { %3482 = vmatprep.mubr.f32.mxu1 %v2739_v32 }
 0x4fc   : > { %3483 = vmatmul.mubr.f32.gmra.mrb[32].mxu1 %v2740_v58 }
 0x5c3   : > { %v3475_v51 = vpop.f32.mrb[26].mxu1 }
 0x5c4   : > { %v2836_v6 = vadd.f32 %v3475_v51, %v3040_v31  ;;  %v2830_v28 = vpop.f32.mrb[27].mxu1 }
 0x5c5   : > { %v2831_v36 = vadd.f32 %v3040_v31, %v2830_v28 }
 0x5c6   : > { %2870 = vst.msk [vmem:[%s440_s14 + $0x8] sm:$0xff] %vm693_vm1, %v2836_v6 }
 0x5c7   : > { %2869 = vst.msk [vmem:[%s440_s14] sm:$0xff] %vm693_vm1, %v2831_v36  ;;  %v3478_v25 = vpop.f32.mrb[28].mxu1 }
 0x5c8   : > { %v2846_v2 = vadd.f32 %v3478_v25, %v3040_v31  ;;  %v2840_v15 = vpop.f32.mrb[29].mxu1 }
 0x5c9   : > { %v2841_v22 = vadd.f32 %v3040_v31, %v2840_v15 }
 0x5ca   : > { %2872 = vst.msk [vmem:[%s440_s14 + $0x18] sm:$0xff] %vm693_vm1, %v2846_v2 }
 0x5cb   : > { %2871 = vst.msk [vmem:[%s440_s14 + $0x10] sm:$0xff] %vm693_vm1, %v2841_v22  ;;  %v3481_v0 = vpop.f32.mrb[30].mxu1 }
 0x5cc   : > { %v2856_v63 = vadd.f32 %v3481_v0, %v3040_v31  ;;  %v2850_v50 = vpop.f32.mrb[31].mxu1 }
 0x5cd   : > { %v2851_v43 = vadd.f32 %v3040_v31, %v2850_v50 }
 0x5ce   : > { %2874 = vst.msk [vmem:[%s440_s14 + $0x28] sm:$0xff] %vm693_vm1, %v2856_v63 }
 0x5cf   : > { %2873 = vst.msk [vmem:[%s440_s14 + $0x20] sm:$0xff] %vm693_vm1, %v2851_v43  ;;  %v3484_v55 = vpop.f32.mrb[32].mxu1 }
 0x5d0   : > { %v2866_v10 = vadd.f32 %v3484_v55, %v3040_v31  ;;  %v2860_v14 = vpop.f32.mrb[33].mxu1 }
 0x5d1   : > { %v2861_v17 = vadd.f32 %v3040_v31, %v2860_v14 }
 0x5d2   : > { %2876 = vst.msk [vmem:[%s440_s14 + $0x38] sm:$0xff] %vm693_vm1, %v2866_v10 }
 0x5d3   : > { %2875 = vst.msk [vmem:[%s440_s14 + $0x30] sm:$0xff] %vm693_vm1, %v2861_v17 }
 0x5d4 PF: > { %s23_s25 = sadd.s32 1, %s3662_s25  }
 0x5d5   : > { %p20_p4 = scmp.ge.s32.totalorder %s23_s25, 4  }
 0x5d7   :  { %22 = sbr.rel (!%p20_p4) target bundleno = 1 (0x1), region = 111 }

</bundles_post_ra>
